<compile_context>
chip_gen: v7x
topology: tpu7x:2x2x1
jax: 0.10.0
libtpu: 0.0.40
codegen_flags: <defaults>
</compile_context>

<pallas_src>
import functools

import jax
import jax.numpy as jnp
from jax.experimental import pallas as pl
from jax.experimental.pallas import tpu as pltpu

# Set to jnp.bfloat16 on v5e/v6e to run the one-hot gather/scatter matmuls at the full bf16 MXU
# rate (0/1 one-hots are exact in bf16; accumulation stays f32).  Default f32 keeps the gathered
# / scattered *values* bit-clean so the tight reference tolerance holds on all generations.
ONE_HOT_DTYPE = jnp.float32


def _round_up(x, m):
    return (x + m - 1) // m * m


def mbp_gat_kernel(dst_ref, src_ref, ef_ref, x_ref,
                   wqk_ref, bqk_ref, wew_ref, bew_ref, web_ref, beb_ref,
                   wconn_ref, bconn_ref, awb_ref, expand_ref,
                   agg_ref, conn_ref,
                   q_sc, k_sc, nmax_sc, den_sc,
                   *, num_heads, num_edges, edge_tile):
    f32 = jnp.float32
    NEG = jnp.float32(-1e30)
    pass_id = pl.program_id(0)        # 0 = segment-max pass, 1 = normalise/accumulate pass
    tile_id = pl.program_id(1)
    n_tiles = pl.num_programs(1)
    hd = q_sc.shape[1]                # attn_heads * attn_dim
    n_pad = q_sc.shape[0]

    # ---- one-time init: fused Q|K node projection + accumulator reset -------------------
    @pl.when((pass_id == 0) & (tile_id == 0))
    def _init():
        qk = jnp.dot(x_ref[...], wqk_ref[...], preferred_element_type=f32) + bqk_ref[...]
        q_sc[...] = qk[:, :hd]        # one-time lane split (not per-tile)
        k_sc[...] = qk[:, hd:]
        nmax_sc[...] = jnp.full_like(nmax_sc, NEG)
        den_sc[...] = jnp.zeros_like(den_sc)
        agg_ref[...] = jnp.zeros_like(agg_ref)

    # ---- per-tile edge message (recomputed in both passes; only O(EDGE_TILE) live state) --
    ef = ef_ref[...]                                   # [T, hidden]
    dst_col = dst_ref[...]                             # [T, 1] int32
    src_col = src_ref[...]

    iota_n = jax.lax.broadcasted_iota(jnp.int32, (edge_tile, n_pad), 1)
    row_id = tile_id * edge_tile + jax.lax.broadcasted_iota(jnp.int32, (edge_tile, 1), 0)
    valid = row_id < num_edges                         # mask out padded edge rows
    mask_dst = (iota_n == dst_col) & valid             # [T, N_pad]
    mask_src = (iota_n == src_col) & valid
    oh_dst = mask_dst.astype(ONE_HOT_DTYPE)
    oh_src = mask_src.astype(ONE_HOT_DTYPE)

    # gathers Q(x)[dst], K(x)[src] via one-hot matmuls (MXU)
    qd = jnp.dot(oh_dst, q_sc[...].astype(ONE_HOT_DTYPE), preferred_element_type=f32)
    ks = jnp.dot(oh_src, k_sc[...].astype(ONE_HOT_DTYPE), preferred_element_type=f32)

    # E projection as two lane-aligned matmuls (avoids the mid-tile slice of Eh)
    ew = jnp.dot(ef, wew_ref[...], preferred_element_type=f32) + bew_ref[...]
    eb = jnp.dot(ef, web_ref[...], preferred_element_type=f32) + beb_ref[...]

    conn1 = (qd + ks) * ew
    # sqrt(relu(x)) - sqrt(relu(-x)) == sign(x) * sqrt(|x|): one EUP sqrt instead of two
    conn2 = jnp.where(conn1 < 0.0, -1.0, 1.0) * jnp.sqrt(jnp.abs(conn1))
    conn4 = jnp.maximum(conn2 + eb, 0.0)               # act = ReLU
    score = jnp.dot(conn4, awb_ref[...], preferred_element_type=f32)   # [T, H]

    # ---- pass 0: per-(node, head) segment max --------------------------------------------
    @pl.when(pass_id == 0)
    def _segment_max():
        rows = []
        for h in range(num_heads):                     # static loop, H is small
            masked = jnp.where(mask_dst, score[:, h:h + 1], NEG)       # [T, N_pad]
            rows.append(jnp.max(masked, axis=0, keepdims=True))        # [1, N_pad]
        tile_max = jnp.concatenate(rows, axis=0)                       # [H, N_pad]
        nmax_sc[...] = jnp.maximum(nmax_sc[...], tile_max)

    # ---- pass 1: softmax numerator / denominator and outputs ------------------------------
    @pl.when(pass_id == 1)
    def _accumulate():
        # gather the per-edge segment max with ONE matmul (replaces per-head XLU reductions)
        max_g = jnp.einsum('en,hn->eh', oh_dst,
                           nmax_sc[...].astype(ONE_HOT_DTYPE),
                           preferred_element_type=f32)                 # [T, H]
        p_exp = jnp.exp(score - max_g)                                 # [T, H]
        den_sc[...] += jnp.einsum('en,eh->nh', oh_dst,
                                  p_exp.astype(ONE_HOT_DTYPE),
                                  preferred_element_type=f32)          # [N_pad, H]

        conn_out = jnp.dot(conn4, wconn_ref[...],
                           preferred_element_type=f32) + bconn_ref[...]  # [T, hidden]
        conn_ref[...] = conn_out

        p_full = jnp.dot(p_exp, expand_ref[...], preferred_element_type=f32)  # [T, HD]
        w_conn = conn_out * p_full
        agg_ref[...] += jnp.einsum('en,ed->nd', oh_dst,
                                   w_conn.astype(ONE_HOT_DTYPE),
                                   preferred_element_type=f32)          # [N_pad, hidden]

    # ---- finalize on the very last grid step: agg = numerator / (denominator + 1e-16) -----
    @pl.when((pass_id == 1) & (tile_id == n_tiles - 1))
    def _finalize():
        den_full = jnp.dot(den_sc[...], expand_ref[...],
                           preferred_element_type=f32)                  # [N_pad, hidden]
        agg_ref[...] = agg_ref[...] * pl.reciprocal(den_full + 1e-16, approx=True)


def mbp_gat_forward(x, conn_feat, dst, src, params, *, attn_heads, attn_dim,
                    edge_tile=128):
    """Fused MbpGAT forward.  Returns (agg [N, hidden], conn [E, hidden])."""
    N, hidden = x.shape
    E = conn_feat.shape[0]
    HD = attn_heads * attn_dim
    assert hidden == HD, "MbpGAT requires hidden_dim == attn_heads * attn_dim"

    f32 = jnp.float32
    n_pad = _round_up(max(N, 8), 8)
    e_pad = _round_up(max(E, edge_tile), edge_tile)
    n_tiles = e_pad // edge_tile

    x_p = jnp.zeros((n_pad, hidden), f32).at[:N].set(x.astype(f32))
    ef_p = jnp.zeros((e_pad, hidden), f32).at[:E].set(conn_feat.astype(f32))
    dst_p = jnp.zeros((e_pad, 1), jnp.int32).at[:E, 0].set(dst.astype(jnp.int32))
    src_p = jnp.zeros((e_pad, 1), jnp.int32).at[:E, 0].set(src.astype(jnp.int32))

    # Fused Q|K projection weight (doubles MXU output width per review).
    w_qk = jnp.concatenate([params["WQ"], params["WK"]], axis=1).astype(f32)   # [hidden, 2*HD]
    b_qk = jnp.concatenate([params["bQ"], params["bK"]], axis=1).astype(f32)   # [1, 2*HD]
    # E projection split into its Ew / Eb halves (lane-aligned, no mid-tile slicing in-kernel).
    we_w, we_b = params["WE"][:, :HD].astype(f32), params["WE"][:, HD:].astype(f32)
    be_w, be_b = params["bE"][:, :HD].astype(f32), params["bE"][:, HD:].astype(f32)

    # Block-diagonal Aw: score = conn4 @ awb  (== einsum('ehd,dhc->ehc') with c == 1),
    # plus the 0/1 head->feature broadcast matrix used for the per-head expansion.
    aw = params["Aw"].astype(f32)
    awb = jnp.zeros((HD, attn_heads), f32)
    expand = jnp.zeros((attn_heads, HD), f32)
    for h in range(attn_heads):
        awb = awb.at[h * attn_dim:(h + 1) * attn_dim, h].set(aw[:, h, 0])
        expand = expand.at[h, h * attn_dim:(h + 1) * attn_dim].set(1.0)

    kernel = functools.partial(mbp_gat_kernel, num_heads=attn_heads,
                               num_edges=E, edge_tile=edge_tile)

    def edge_spec(width):
        return pl.BlockSpec((edge_tile, width), lambda p, t: (t, 0))

    def full_spec(arr):
        return pl.BlockSpec(arr.shape, lambda p, t: (0, 0))

    inputs = (dst_p, src_p, ef_p, x_p, w_qk, b_qk, we_w, be_w, we_b, be_b,
              params["Wconn"].astype(f32), params["bconn"].astype(f32), awb, expand)
    in_specs = [edge_spec(1), edge_spec(1), edge_spec(hidden)] + \
               [full_spec(a) for a in inputs[3:]]

    # Advisory cost estimate for the XLA scheduler.
    flops = 2 * (n_pad * hidden * 2 * HD
                 + 2 * e_pad * n_pad * (2 * HD + hidden + 2 * attn_heads)
                 + 2 * e_pad * hidden * 2 * HD
                 + e_pad * HD * (hidden + attn_heads))
    cost = pl.CostEstimate(
        flops=int(flops),
        transcendentals=int(2 * e_pad * HD + e_pad * attn_heads),
        bytes_accessed=int(4 * (x_p.size + 2 * ef_p.size + 2 * e_pad
                                + n_pad * hidden + e_pad * hidden)))

    agg, conn = pl.pallas_call(
        kernel,
        out_shape=(jax.ShapeDtypeStruct((n_pad, hidden), f32),
                   jax.ShapeDtypeStruct((e_pad, hidden), f32)),
        grid=(2, n_tiles),
        in_specs=in_specs,
        out_specs=(
            # agg: resident accumulator (constant block index), finalized on the last step.
            pl.BlockSpec((n_pad, hidden), lambda p, t: (0, 0)),
            # conn: written only in pass 1; during pass 0 the index is pinned to block 0,
            # so no garbage tiles are ever written back to HBM.
            pl.BlockSpec((edge_tile, hidden), lambda p, t: (t * p, 0)),
        ),
        scratch_shapes=[
            pltpu.VMEM((n_pad, HD), f32),           # Q(x)   (node-resident)
            pltpu.VMEM((n_pad, HD), f32),           # K(x)   (node-resident)
            pltpu.VMEM((attn_heads, n_pad), f32),   # per-(head, node) segment max
            pltpu.VMEM((n_pad, attn_heads), f32),   # per-(node, head) softmax denominator
        ],
        compiler_params=pltpu.CompilerParams(
            # both axes carry dependencies (pass ordering + cross-tile accumulation).
            # TODO(synk): on v7x, split edge tiles across the two TensorCores with
            # per-core partial accumulators reduced at the end.
            dimension_semantics=("arbitrary", "arbitrary")),
        cost_estimate=cost,
    )(*inputs)
    return agg[:N], conn[:E]


def mbp_gat_reference(x, conn_feat, dst, src, params, *, attn_heads, attn_dim):
    """Pure-JAX reference mirroring the PyTorch forward."""
    HD = attn_heads * attn_dim
    N = x.shape[0]
    Eh = conn_feat @ params["WE"] + params["bE"][0]
    Ew, Eb = Eh[:, :HD], Eh[:, HD:]
    Qdst = (x @ params["WQ"] + params["bQ"][0])[dst]
    Ksrc = (x @ params["WK"] + params["bK"][0])[src]
    msg1 = Qdst + Ksrc
    conn1 = msg1 * Ew
    conn2 = jnp.sqrt(jnp.maximum(conn1, 0.0)) - jnp.sqrt(jnp.maximum(-conn1, 0.0))
    conn4 = jax.nn.relu(conn2 + Eb)
    conn5 = conn4.reshape(-1, attn_heads, attn_dim)
    score = jnp.einsum("ehd,dhc->ehc", conn5, params["Aw"])       # [E, H, 1]
    smax = jax.ops.segment_max(score, dst, num_segments=N)
    out = jnp.exp(score - smax[dst])
    ssum = jax.ops.segment_sum(out, dst, num_segments=N)
    score = out / (ssum[dst] + 1e-16)
    conn = conn4 @ params["Wconn"] + params["bconn"][0]
    w_conn = (conn.reshape(-1, attn_heads, attn_dim) * score).reshape(-1, HD)
    agg = jax.ops.segment_sum(w_conn, dst, num_segments=N)
    return agg, conn


if __name__ == "__main__":
    key = jax.random.PRNGKey(0)
    N, E = 16, 256
    attn_heads, attn_dim = 4, 8
    hidden = attn_heads * attn_dim      # 32

    keys = jax.random.split(key, 13)

    def xavier(k, shape):
        std = (2.0 / (shape[0] + shape[1])) ** 0.5
        return std * jax.random.normal(k, shape, jnp.float32)

    params = {
        "WQ": xavier(keys[0], (hidden, hidden)),
        "bQ": 0.01 * jax.random.normal(keys[1], (1, hidden), jnp.float32),
        "WK": xavier(keys[2], (hidden, hidden)),
        "bK": 0.01 * jax.random.normal(keys[3], (1, hidden), jnp.float32),
        "WE": xavier(keys[4], (hidden, 2 * hidden)),
        "bE": 0.01 * jax.random.normal(keys[5], (1, 2 * hidden), jnp.float32),
        "Wconn": xavier(keys[6], (hidden, hidden)),
        "bconn": 0.01 * jax.random.normal(keys[7], (1, hidden), jnp.float32),
        "Aw": ((2.0 / (attn_dim + attn_heads)) ** 0.5)
              * jax.random.normal(keys[8], (attn_dim, attn_heads, 1), jnp.float32),
    }

    x = jax.random.normal(keys[9], (N, hidden), jnp.float32)
    conn_feat = jax.random.normal(keys[10], (E, hidden), jnp.float32)
    # every node receives E // N incoming edges
    dst = jax.random.permutation(keys[11],
                                 jnp.tile(jnp.arange(N, dtype=jnp.int32), E // N))
    src = jax.random.randint(keys[12], (E,), 0, N, dtype=jnp.int32)

    agg, conn = mbp_gat_forward(x, conn_feat, dst, src, params,
                                attn_heads=attn_heads, attn_dim=attn_dim,
                                edge_tile=128)
    jax.block_until_ready((agg, conn))

    agg_ref, conn_ref = mbp_gat_reference(x, conn_feat, dst, src, params,
                                          attn_heads=attn_heads, attn_dim=attn_dim)
    assert agg.shape == (N, hidden) and conn.shape == (E, hidden)
    assert jnp.allclose(conn, conn_ref, rtol=1e-2, atol=1e-3)
    assert jnp.allclose(agg, agg_ref, rtol=1e-2, atol=1e-3)
    print("KERNEL_OK")
</pallas_src>

<mosaic_0001>
module attributes {stable_mosaic.version = 11 : i64} {
  func.func @mbp_gat_kernel(%arg0: i32, %arg1: i32, %arg2: memref<128x1xi32, #tpu.memory_space<vmem>>, %arg3: memref<128x1xi32, #tpu.memory_space<vmem>>, %arg4: memref<128x32xf32, #tpu.memory_space<vmem>>, %arg5: memref<16x32xf32, #tpu.memory_space<vmem>>, %arg6: memref<32x64xf32, #tpu.memory_space<vmem>>, %arg7: memref<1x64xf32, #tpu.memory_space<vmem>>, %arg8: memref<32x32xf32, #tpu.memory_space<vmem>>, %arg9: memref<1x32xf32, #tpu.memory_space<vmem>>, %arg10: memref<32x32xf32, #tpu.memory_space<vmem>>, %arg11: memref<1x32xf32, #tpu.memory_space<vmem>>, %arg12: memref<32x32xf32, #tpu.memory_space<vmem>>, %arg13: memref<1x32xf32, #tpu.memory_space<vmem>>, %arg14: memref<32x4xf32, #tpu.memory_space<vmem>>, %arg15: memref<4x32xf32, #tpu.memory_space<vmem>>, %arg16: memref<16x32xf32, #tpu.memory_space<vmem>>, %arg17: memref<128x32xf32, #tpu.memory_space<vmem>>, %arg18: memref<16x32xf32, #tpu.memory_space<vmem>>, %arg19: memref<16x32xf32, #tpu.memory_space<vmem>>, %arg20: memref<4x16xf32, #tpu.memory_space<vmem>>, %arg21: memref<16x4xf32, #tpu.memory_space<vmem>>) attributes {dimension_semantics = [#tpu.dimension_semantics<arbitrary>, #tpu.dimension_semantics<arbitrary>], iteration_bounds = array<i64: 2, 2>, scalar_prefetch = 0 : i64, scratch_operands = 4 : i64, tpu.core_type = #tpu.core_type<tc>, window_params = [{transform_indices = @transform_0, window_bounds = array<i64: 128, 1>}, {transform_indices = @transform_1, window_bounds = array<i64: 128, 1>}, {transform_indices = @transform_2, window_bounds = array<i64: 128, 32>}, {pipeline_mode = #tpu.pipeline_mode<synchronous>, transform_indices = @transform_3, window_bounds = array<i64: 16, 32>}, {pipeline_mode = #tpu.pipeline_mode<synchronous>, transform_indices = @transform_4, window_bounds = array<i64: 32, 64>}, {pipeline_mode = #tpu.pipeline_mode<synchronous>, transform_indices = @transform_5, window_bounds = array<i64: 1, 64>}, {pipeline_mode = #tpu.pipeline_mode<synchronous>, transform_indices = @transform_6, window_bounds = array<i64: 32, 32>}, {pipeline_mode = #tpu.pipeline_mode<synchronous>, transform_indices = @transform_7, window_bounds = array<i64: 1, 32>}, {pipeline_mode = #tpu.pipeline_mode<synchronous>, transform_indices = @transform_8, window_bounds = array<i64: 32, 32>}, {pipeline_mode = #tpu.pipeline_mode<synchronous>, transform_indices = @transform_9, window_bounds = array<i64: 1, 32>}, {pipeline_mode = #tpu.pipeline_mode<synchronous>, transform_indices = @transform_10, window_bounds = array<i64: 32, 32>}, {pipeline_mode = #tpu.pipeline_mode<synchronous>, transform_indices = @transform_11, window_bounds = array<i64: 1, 32>}, {pipeline_mode = #tpu.pipeline_mode<synchronous>, transform_indices = @transform_12, window_bounds = array<i64: 32, 4>}, {pipeline_mode = #tpu.pipeline_mode<synchronous>, transform_indices = @transform_13, window_bounds = array<i64: 4, 32>}, {pipeline_mode = #tpu.pipeline_mode<synchronous>, transform_indices = @transform_14, window_bounds = array<i64: 16, 32>}, {transform_indices = @transform_15, window_bounds = array<i64: 128, 32>}]} {
    %c0_i32 = arith.constant 0 : i32
    %0 = arith.cmpi eq, %arg0, %c0_i32 : i32
    %c0_i32_0 = arith.constant 0 : i32
    %1 = arith.cmpi eq, %arg1, %c0_i32_0 : i32
    %2 = arith.andi %0, %1 : i1
    %3 = arith.extui %2 : i1 to i32
    %cst = arith.constant -1.000000e+30 : f32
    %c0_i32_1 = arith.constant 0 : i32
    %4 = arith.cmpi ne, %3, %c0_i32_1 : i32
    scf.if %4 {
      %c0_37 = arith.constant 0 : index
      %c0_38 = arith.constant 0 : index
      %67 = vector.load %arg5[%c0_37, %c0_38] : memref<16x32xf32, #tpu.memory_space<vmem>>, vector<16x32xf32>
      %c0_39 = arith.constant 0 : index
      %c0_40 = arith.constant 0 : index
      %68 = vector.load %arg6[%c0_39, %c0_40] : memref<32x64xf32, #tpu.memory_space<vmem>>, vector<32x64xf32>
      %cst_41 = arith.constant dense<0.000000e+00> : vector<16x64xf32>
      %69 = tpu.matmul %67, %68, %cst_41 {dimension_numbers = #tpu.dot_dimension_numbers<[1], [0], [0], [1], [0, 0, 1, 1], [], []>} : vector<16x32xf32>, vector<32x64xf32>, vector<16x64xf32> -> vector<16x64xf32>
      %c0_42 = arith.constant 0 : index
      %c0_43 = arith.constant 0 : index
      %70 = vector.load %arg7[%c0_42, %c0_43] : memref<1x64xf32, #tpu.memory_space<vmem>>, vector<1x64xf32>
      %71 = vector.broadcast %70 : vector<1x64xf32> to vector<16x64xf32>
      %72 = arith.addf %69, %71 : vector<16x64xf32>
      %73 = vector.extract_strided_slice %72 {offsets = [0, 0], sizes = [16, 32], strides = [1, 1]} : vector<16x64xf32> to vector<16x32xf32>
      %c0_44 = arith.constant 0 : index
      %c0_45 = arith.constant 0 : index
      %74 = vector.load %arg18[%c0_44, %c0_45] : memref<16x32xf32, #tpu.memory_space<vmem>>, vector<16x32xf32>
      tpu.vector_store %arg18[%c0_44, %c0_45], %73 {strides = array<i32>} : memref<16x32xf32, #tpu.memory_space<vmem>>, vector<16x32xf32>,
      %75 = vector.extract_strided_slice %72 {offsets = [0, 32], sizes = [16, 32], strides = [1, 1]} : vector<16x64xf32> to vector<16x32xf32>
      %c0_46 = arith.constant 0 : index
      %c0_47 = arith.constant 0 : index
      %76 = vector.load %arg19[%c0_46, %c0_47] : memref<16x32xf32, #tpu.memory_space<vmem>>, vector<16x32xf32>
      tpu.vector_store %arg19[%c0_46, %c0_47], %75 {strides = array<i32>} : memref<16x32xf32, #tpu.memory_space<vmem>>, vector<16x32xf32>,
      %77 = vector.broadcast %cst : f32 to vector<4x16xf32>
      %c0_48 = arith.constant 0 : index
      %c0_49 = arith.constant 0 : index
      %78 = vector.load %arg20[%c0_48, %c0_49] : memref<4x16xf32, #tpu.memory_space<vmem>>, vector<4x16xf32>
      tpu.vector_store %arg20[%c0_48, %c0_49], %77 {strides = array<i32>} : memref<4x16xf32, #tpu.memory_space<vmem>>, vector<4x16xf32>,
      %cst_50 = arith.constant 0.000000e+00 : f32
      %79 = vector.broadcast %cst_50 : f32 to vector<16x4xf32>
      %c0_51 = arith.constant 0 : index
      %c0_52 = arith.constant 0 : index
      %80 = vector.load %arg21[%c0_51, %c0_52] : memref<16x4xf32, #tpu.memory_space<vmem>>, vector<16x4xf32>
      tpu.vector_store %arg21[%c0_51, %c0_52], %79 {strides = array<i32>} : memref<16x4xf32, #tpu.memory_space<vmem>>, vector<16x4xf32>,
      %cst_53 = arith.constant 0.000000e+00 : f32
      %81 = vector.broadcast %cst_53 : f32 to vector<16x32xf32>
      %c0_54 = arith.constant 0 : index
      %c0_55 = arith.constant 0 : index
      %82 = vector.load %arg16[%c0_54, %c0_55] : memref<16x32xf32, #tpu.memory_space<vmem>>, vector<16x32xf32>
      tpu.vector_store %arg16[%c0_54, %c0_55], %81 {strides = array<i32>} : memref<16x32xf32, #tpu.memory_space<vmem>>, vector<16x32xf32>,
    } else {
    }
    %c0 = arith.constant 0 : index
    %c0_2 = arith.constant 0 : index
    %5 = vector.load %arg4[%c0, %c0_2] : memref<128x32xf32, #tpu.memory_space<vmem>>, vector<128x32xf32>
    %c0_3 = arith.constant 0 : index
    %c0_4 = arith.constant 0 : index
    %6 = vector.load %arg2[%c0_3, %c0_4] : memref<128x1xi32, #tpu.memory_space<vmem>>, vector<128x1xi32>
    %c0_5 = arith.constant 0 : index
    %c0_6 = arith.constant 0 : index
    %7 = vector.load %arg3[%c0_5, %c0_6] : memref<128x1xi32, #tpu.memory_space<vmem>>, vector<128x1xi32>
    %8 = tpu.iota {dimensions = array<i32: 1>} : vector<128x16xi32>
    %c128_i32 = arith.constant 128 : i32
    %9 = arith.muli %arg1, %c128_i32 : i32
    %10 = tpu.iota {dimensions = array<i32: 0>} : vector<128x1xi32>
    %11 = vector.broadcast %9 : i32 to vector<128x1xi32>
    %12 = arith.addi %11, %10 : vector<128x1xi32>
    %c256_i32 = arith.constant 256 : i32
    %13 = vector.broadcast %c256_i32 : i32 to vector<128x1xi32>
    %14 = arith.cmpi slt, %12, %13 : vector<128x1xi32>
    %15 = vector.broadcast %6 : vector<128x1xi32> to vector<128x16xi32>
    %16 = arith.cmpi eq, %8, %15 : vector<128x16xi32>
    %17 = vector.broadcast %14 : vector<128x1xi1> to vector<128x16xi1>
    %18 = arith.andi %16, %17 : vector<128x16xi1>
    %19 = vector.broadcast %7 : vector<128x1xi32> to vector<128x16xi32>
    %20 = arith.cmpi eq, %8, %19 : vector<128x16xi32>
    %21 = vector.broadcast %14 : vector<128x1xi1> to vector<128x16xi1>
    %22 = arith.andi %20, %21 : vector<128x16xi1>
    %23 = arith.extui %18 : vector<128x16xi1> to vector<128x16xi32>
    %24 = arith.sitofp %23 : vector<128x16xi32> to vector<128x16xf32>
    %25 = arith.extui %22 : vector<128x16xi1> to vector<128x16xi32>
    %26 = arith.sitofp %25 : vector<128x16xi32> to vector<128x16xf32>
    %c0_7 = arith.constant 0 : index
    %c0_8 = arith.constant 0 : index
    %27 = vector.load %arg18[%c0_7, %c0_8] : memref<16x32xf32, #tpu.memory_space<vmem>>, vector<16x32xf32>
    %cst_9 = arith.constant dense<0.000000e+00> : vector<128x32xf32>
    %28 = tpu.matmul %24, %27, %cst_9 {dimension_numbers = #tpu.dot_dimension_numbers<[1], [0], [0], [1], [0, 0, 1, 1], [], []>} : vector<128x16xf32>, vector<16x32xf32>, vector<128x32xf32> -> vector<128x32xf32>
    %c0_10 = arith.constant 0 : index
    %c0_11 = arith.constant 0 : index
    %29 = vector.load %arg19[%c0_10, %c0_11] : memref<16x32xf32, #tpu.memory_space<vmem>>, vector<16x32xf32>
    %cst_12 = arith.constant dense<0.000000e+00> : vector<128x32xf32>
    %30 = tpu.matmul %26, %29, %cst_12 {dimension_numbers = #tpu.dot_dimension_numbers<[1], [0], [0], [1], [0, 0, 1, 1], [], []>} : vector<128x16xf32>, vector<16x32xf32>, vector<128x32xf32> -> vector<128x32xf32>
    %c0_13 = arith.constant 0 : index
    %c0_14 = arith.constant 0 : index
    %31 = vector.load %arg8[%c0_13, %c0_14] : memref<32x32xf32, #tpu.memory_space<vmem>>, vector<32x32xf32>
    %cst_15 = arith.constant dense<0.000000e+00> : vector<128x32xf32>
    %32 = tpu.matmul %5, %31, %cst_15 {dimension_numbers = #tpu.dot_dimension_numbers<[1], [0], [0], [1], [0, 0, 1, 1], [], []>} : vector<128x32xf32>, vector<32x32xf32>, vector<128x32xf32> -> vector<128x32xf32>
    %c0_16 = arith.constant 0 : index
    %c0_17 = arith.constant 0 : index
    %33 = vector.load %arg9[%c0_16, %c0_17] : memref<1x32xf32, #tpu.memory_space<vmem>>, vector<1x32xf32>
    %34 = vector.broadcast %33 : vector<1x32xf32> to vector<128x32xf32>
    %35 = arith.addf %32, %34 : vector<128x32xf32>
    %c0_18 = arith.constant 0 : index
    %c0_19 = arith.constant 0 : index
    %36 = vector.load %arg10[%c0_18, %c0_19] : memref<32x32xf32, #tpu.memory_space<vmem>>, vector<32x32xf32>
    %cst_20 = arith.constant dense<0.000000e+00> : vector<128x32xf32>
    %37 = tpu.matmul %5, %36, %cst_20 {dimension_numbers = #tpu.dot_dimension_numbers<[1], [0], [0], [1], [0, 0, 1, 1], [], []>} : vector<128x32xf32>, vector<32x32xf32>, vector<128x32xf32> -> vector<128x32xf32>
    %c0_21 = arith.constant 0 : index
    %c0_22 = arith.constant 0 : index
    %38 = vector.load %arg11[%c0_21, %c0_22] : memref<1x32xf32, #tpu.memory_space<vmem>>, vector<1x32xf32>
    %39 = vector.broadcast %38 : vector<1x32xf32> to vector<128x32xf32>
    %40 = arith.addf %37, %39 : vector<128x32xf32>
    %41 = arith.addf %28, %30 : vector<128x32xf32>
    %42 = arith.mulf %41, %35 : vector<128x32xf32>
    %cst_23 = arith.constant 0.000000e+00 : f32
    %43 = vector.broadcast %cst_23 : f32 to vector<128x32xf32>
    %44 = arith.cmpf olt, %42, %43 : vector<128x32xf32>
    %cst_24 = arith.constant -1.000000e+00 : f32
    %cst_25 = arith.constant 1.000000e+00 : f32
    %45 = vector.broadcast %cst_24 : f32 to vector<128x32xf32>
    %46 = vector.broadcast %cst_25 : f32 to vector<128x32xf32>
    %47 = arith.select %44, %45, %46 : vector<128x32xi1>, vector<128x32xf32>
    %48 = math.absf %42 : vector<128x32xf32>
    %49 = math.sqrt %48 : vector<128x32xf32>
    %50 = arith.mulf %47, %49 : vector<128x32xf32>
    %51 = arith.addf %50, %40 : vector<128x32xf32>
    %cst_26 = arith.constant 0.000000e+00 : f32
    %52 = vector.broadcast %cst_26 : f32 to vector<128x32xf32>
    %53 = arith.maximumf %51, %52 : vector<128x32xf32>
    %c0_27 = arith.constant 0 : index
    %c0_28 = arith.constant 0 : index
    %54 = vector.load %arg14[%c0_27, %c0_28] : memref<32x4xf32, #tpu.memory_space<vmem>>, vector<32x4xf32>
    %cst_29 = arith.constant dense<0.000000e+00> : vector<128x4xf32>
    %55 = tpu.matmul %53, %54, %cst_29 {dimension_numbers = #tpu.dot_dimension_numbers<[1], [0], [0], [1], [0, 0, 1, 1], [], []>} : vector<128x32xf32>, vector<32x4xf32>, vector<128x4xf32> -> vector<128x4xf32>
    %c0_i32_30 = arith.constant 0 : i32
    %56 = arith.cmpi eq, %arg0, %c0_i32_30 : i32
    %57 = arith.extui %56 : i1 to i32
    %cst_31 = arith.constant -1.000000e+30 : f32
    %c0_i32_32 = arith.constant 0 : i32
    %58 = arith.cmpi ne, %57, %c0_i32_32 : i32
    scf.if %58 {
      %67 = vector.extract_strided_slice %55 {offsets = [0, 0], sizes = [128, 1], strides = [1, 1]} : vector<128x4xf32> to vector<128x1xf32>
      %68 = vector.shape_cast %67 : vector<128x1xf32> to vector<128x1xf32>
      %69 = vector.broadcast %68 : vector<128x1xf32> to vector<128x16xf32>
      %70 = vector.broadcast %cst_31 : f32 to vector<128x16xf32>
      %71 = arith.select %18, %69, %70 : vector<128x16xi1>, vector<128x16xf32>
      %cst_37 = arith.constant dense<0xFF800000> : vector<16xf32>
      %72 = vector.multi_reduction <maximumf>, %71, %cst_37 [0] : vector<128x16xf32> to vector<16xf32>
      %73 = vector.shape_cast %72 : vector<16xf32> to vector<1x16xf32>
      %74 = vector.extract_strided_slice %55 {offsets = [0, 1], sizes = [128, 1], strides = [1, 1]} : vector<128x4xf32> to vector<128x1xf32>
      %75 = vector.shape_cast %74 : vector<128x1xf32> to vector<128x1xf32>
      %76 = vector.broadcast %75 : vector<128x1xf32> to vector<128x16xf32>
      %77 = vector.broadcast %cst_31 : f32 to vector<128x16xf32>
      %78 = arith.select %18, %76, %77 : vector<128x16xi1>, vector<128x16xf32>
      %cst_38 = arith.constant dense<0xFF800000> : vector<16xf32>
      %79 = vector.multi_reduction <maximumf>, %78, %cst_38 [0] : vector<128x16xf32> to vector<16xf32>
      %80 = vector.shape_cast %79 : vector<16xf32> to vector<1x16xf32>
      %81 = vector.extract_strided_slice %55 {offsets = [0, 2], sizes = [128, 1], strides = [1, 1]} : vector<128x4xf32> to vector<128x1xf32>
      %82 = vector.shape_cast %81 : vector<128x1xf32> to vector<128x1xf32>
      %83 = vector.broadcast %82 : vector<128x1xf32> to vector<128x16xf32>
      %84 = vector.broadcast %cst_31 : f32 to vector<128x16xf32>
      %85 = arith.select %18, %83, %84 : vector<128x16xi1>, vector<128x16xf32>
      %cst_39 = arith.constant dense<0xFF800000> : vector<16xf32>
      %86 = vector.multi_reduction <maximumf>, %85, %cst_39 [0] : vector<128x16xf32> to vector<16xf32>
      %87 = vector.shape_cast %86 : vector<16xf32> to vector<1x16xf32>
      %88 = vector.extract_strided_slice %55 {offsets = [0, 3], sizes = [128, 1], strides = [1, 1]} : vector<128x4xf32> to vector<128x1xf32>
      %89 = vector.shape_cast %88 : vector<128x1xf32> to vector<128x1xf32>
      %90 = vector.broadcast %89 : vector<128x1xf32> to vector<128x16xf32>
      %91 = vector.broadcast %cst_31 : f32 to vector<128x16xf32>
      %92 = arith.select %18, %90, %91 : vector<128x16xi1>, vector<128x16xf32>
      %cst_40 = arith.constant dense<0xFF800000> : vector<16xf32>
      %93 = vector.multi_reduction <maximumf>, %92, %cst_40 [0] : vector<128x16xf32> to vector<16xf32>
      %94 = vector.shape_cast %93 : vector<16xf32> to vector<1x16xf32>
      %95 = tpu.concatenate %73, %80, %87, %94 in 0 : vector<1x16xf32>, vector<1x16xf32>, vector<1x16xf32>, vector<1x16xf32> -> vector<4x16xf32>
      %c0_41 = arith.constant 0 : index
      %c0_42 = arith.constant 0 : index
      %96 = vector.load %arg20[%c0_41, %c0_42] : memref<4x16xf32, #tpu.memory_space<vmem>>, vector<4x16xf32>
      %97 = arith.maximumf %96, %95 : vector<4x16xf32>
      %c0_43 = arith.constant 0 : index
      %c0_44 = arith.constant 0 : index
      %98 = vector.load %arg20[%c0_43, %c0_44] : memref<4x16xf32, #tpu.memory_space<vmem>>, vector<4x16xf32>
      tpu.vector_store %arg20[%c0_43, %c0_44], %97 {strides = array<i32>} : memref<4x16xf32, #tpu.memory_space<vmem>>, vector<4x16xf32>,
    } else {
    }
    %c1_i32 = arith.constant 1 : i32
    %59 = arith.cmpi eq, %arg0, %c1_i32 : i32
    %60 = arith.extui %59 : i1 to i32
    %c0_i32_33 = arith.constant 0 : i32
    %61 = arith.cmpi ne, %60, %c0_i32_33 : i32
    scf.if %61 {
      %c0_37 = arith.constant 0 : index
      %c0_38 = arith.constant 0 : index
      %67 = vector.load %arg20[%c0_37, %c0_38] : memref<4x16xf32, #tpu.memory_space<vmem>>, vector<4x16xf32>
      "tpu.trace_start"() <{level = 10 : i32, message = "en,hn->eh"}> : () -> ()
      %cst_39 = arith.constant dense<0.000000e+00> : vector<128x4xf32>
      %68 = tpu.matmul %24, %67, %cst_39 {dimension_numbers = #tpu.dot_dimension_numbers<[1], [1], [0], [0], [0, 0, 1, 0], [], []>} : vector<128x16xf32>, vector<4x16xf32>, vector<128x4xf32> -> vector<128x4xf32>
      "tpu.trace_stop"() : () -> ()
      %69 = arith.subf %55, %68 : vector<128x4xf32>
      %70 = math.exp %69 : vector<128x4xf32>
      %c0_40 = arith.constant 0 : index
      %c0_41 = arith.constant 0 : index
      %71 = vector.load %arg21[%c0_40, %c0_41] : memref<16x4xf32, #tpu.memory_space<vmem>>, vector<16x4xf32>
      "tpu.trace_start"() <{level = 10 : i32, message = "en,eh->nh"}> : () -> ()
      %cst_42 = arith.constant dense<0.000000e+00> : vector<16x4xf32>
      %72 = tpu.matmul %24, %70, %cst_42 {dimension_numbers = #tpu.dot_dimension_numbers<[0], [0], [1], [1], [0, 1, 1, 1], [], []>} : vector<128x16xf32>, vector<128x4xf32>, vector<16x4xf32> -> vector<16x4xf32>
      "tpu.trace_stop"() : () -> ()
      %73 = arith.addf %71, %72 : vector<16x4xf32>
      %c0_43 = arith.constant 0 : index
      %c0_44 = arith.constant 0 : index
      %74 = vector.load %arg21[%c0_43, %c0_44] : memref<16x4xf32, #tpu.memory_space<vmem>>, vector<16x4xf32>
      tpu.vector_store %arg21[%c0_43, %c0_44], %73 {strides = array<i32>} : memref<16x4xf32, #tpu.memory_space<vmem>>, vector<16x4xf32>,
      %c0_45 = arith.constant 0 : index
      %c0_46 = arith.constant 0 : index
      %75 = vector.load %arg12[%c0_45, %c0_46] : memref<32x32xf32, #tpu.memory_space<vmem>>, vector<32x32xf32>
      %cst_47 = arith.constant dense<0.000000e+00> : vector<128x32xf32>
      %76 = tpu.matmul %53, %75, %cst_47 {dimension_numbers = #tpu.dot_dimension_numbers<[1], [0], [0], [1], [0, 0, 1, 1], [], []>} : vector<128x32xf32>, vector<32x32xf32>, vector<128x32xf32> -> vector<128x32xf32>
      %c0_48 = arith.constant 0 : index
      %c0_49 = arith.constant 0 : index
      %77 = vector.load %arg13[%c0_48, %c0_49] : memref<1x32xf32, #tpu.memory_space<vmem>>, vector<1x32xf32>
      %78 = vector.broadcast %77 : vector<1x32xf32> to vector<128x32xf32>
      %79 = arith.addf %76, %78 : vector<128x32xf32>
      %c0_50 = arith.constant 0 : index
      %c0_51 = arith.constant 0 : index
      %80 = vector.load %arg17[%c0_50, %c0_51] : memref<128x32xf32, #tpu.memory_space<vmem>>, vector<128x32xf32>
      tpu.vector_store %arg17[%c0_50, %c0_51], %79 {strides = array<i32>} : memref<128x32xf32, #tpu.memory_space<vmem>>, vector<128x32xf32>,
      %c0_52 = arith.constant 0 : index
      %c0_53 = arith.constant 0 : index
      %81 = vector.load %arg15[%c0_52, %c0_53] : memref<4x32xf32, #tpu.memory_space<vmem>>, vector<4x32xf32>
      %cst_54 = arith.constant dense<0.000000e+00> : vector<128x32xf32>
      %82 = tpu.matmul %70, %81, %cst_54 {dimension_numbers = #tpu.dot_dimension_numbers<[1], [0], [0], [1], [0, 0, 1, 1], [], []>} : vector<128x4xf32>, vector<4x32xf32>, vector<128x32xf32> -> vector<128x32xf32>
      %83 = arith.mulf %79, %82 : vector<128x32xf32>
      %c0_55 = arith.constant 0 : index
      %c0_56 = arith.constant 0 : index
      %84 = vector.load %arg16[%c0_55, %c0_56] : memref<16x32xf32, #tpu.memory_space<vmem>>, vector<16x32xf32>
      "tpu.trace_start"() <{level = 10 : i32, message = "en,ed->nd"}> : () -> ()
      %cst_57 = arith.constant dense<0.000000e+00> : vector<16x32xf32>
      %85 = tpu.matmul %24, %83, %cst_57 {dimension_numbers = #tpu.dot_dimension_numbers<[0], [0], [1], [1], [0, 1, 1, 1], [], []>} : vector<128x16xf32>, vector<128x32xf32>, vector<16x32xf32> -> vector<16x32xf32>
      "tpu.trace_stop"() : () -> ()
      %86 = arith.addf %84, %85 : vector<16x32xf32>
      %c0_58 = arith.constant 0 : index
      %c0_59 = arith.constant 0 : index
      %87 = vector.load %arg16[%c0_58, %c0_59] : memref<16x32xf32, #tpu.memory_space<vmem>>, vector<16x32xf32>
      tpu.vector_store %arg16[%c0_58, %c0_59], %86 {strides = array<i32>} : memref<16x32xf32, #tpu.memory_space<vmem>>, vector<16x32xf32>,
    } else {
    }
    %c1_i32_34 = arith.constant 1 : i32
    %62 = arith.cmpi eq, %arg0, %c1_i32_34 : i32
    %c1_i32_35 = arith.constant 1 : i32
    %63 = arith.cmpi eq, %arg1, %c1_i32_35 : i32
    %64 = arith.andi %62, %63 : i1
    %65 = arith.extui %64 : i1 to i32
    %c0_i32_36 = arith.constant 0 : i32
    %66 = arith.cmpi ne, %65, %c0_i32_36 : i32
    scf.if %66 {
      %c0_37 = arith.constant 0 : index
      %c0_38 = arith.constant 0 : index
      %67 = vector.load %arg21[%c0_37, %c0_38] : memref<16x4xf32, #tpu.memory_space<vmem>>, vector<16x4xf32>
      %c0_39 = arith.constant 0 : index
      %c0_40 = arith.constant 0 : index
      %68 = vector.load %arg15[%c0_39, %c0_40] : memref<4x32xf32, #tpu.memory_space<vmem>>, vector<4x32xf32>
      %cst_41 = arith.constant dense<0.000000e+00> : vector<16x32xf32>
      %69 = tpu.matmul %67, %68, %cst_41 {dimension_numbers = #tpu.dot_dimension_numbers<[1], [0], [0], [1], [0, 0, 1, 1], [], []>} : vector<16x4xf32>, vector<4x32xf32>, vector<16x32xf32> -> vector<16x32xf32>
      %c0_42 = arith.constant 0 : index
      %c0_43 = arith.constant 0 : index
      %70 = vector.load %arg16[%c0_42, %c0_43] : memref<16x32xf32, #tpu.memory_space<vmem>>, vector<16x32xf32>
      %cst_44 = arith.constant 1.000000e-16 : f32
      %71 = vector.broadcast %cst_44 : f32 to vector<16x32xf32>
      %72 = arith.addf %69, %71 : vector<16x32xf32>
      %73 = tpu.reciprocal %72 {approx = true} : vector<16x32xf32> -> vector<16x32xf32>
      %74 = arith.mulf %70, %73 : vector<16x32xf32>
      %c0_45 = arith.constant 0 : index
      %c0_46 = arith.constant 0 : index
      %75 = vector.load %arg16[%c0_45, %c0_46] : memref<16x32xf32, #tpu.memory_space<vmem>>, vector<16x32xf32>
      tpu.vector_store %arg16[%c0_45, %c0_46], %74 {strides = array<i32>} : memref<16x32xf32, #tpu.memory_space<vmem>>, vector<16x32xf32>,
    } else {
    }
    return
  }
  func.func @transform_0(%arg0: i32, %arg1: i32) -> (i32, i32) {
    %c0_i32 = arith.constant 0 : i32
    %c0_i32_0 = arith.constant 0 : i32
    return %arg1, %c0_i32 : i32, i32
  }
  func.func @transform_1(%arg0: i32, %arg1: i32) -> (i32, i32) {
    %c0_i32 = arith.constant 0 : i32
    %c0_i32_0 = arith.constant 0 : i32
    return %arg1, %c0_i32 : i32, i32
  }
  func.func @transform_2(%arg0: i32, %arg1: i32) -> (i32, i32) {
    %c0_i32 = arith.constant 0 : i32
    %c0_i32_0 = arith.constant 0 : i32
    return %arg1, %c0_i32 : i32, i32
  }
  func.func @transform_3(%arg0: i32, %arg1: i32) -> (i32, i32) {
    %c0_i32 = arith.constant 0 : i32
    %c0_i32_0 = arith.constant 0 : i32
    %c0_i32_1 = arith.constant 0 : i32
    return %c0_i32, %c0_i32_0 : i32, i32
  }
  func.func @transform_4(%arg0: i32, %arg1: i32) -> (i32, i32) {
    %c0_i32 = arith.constant 0 : i32
    %c0_i32_0 = arith.constant 0 : i32
    %c0_i32_1 = arith.constant 0 : i32
    return %c0_i32, %c0_i32_0 : i32, i32
  }
  func.func @transform_5(%arg0: i32, %arg1: i32) -> (i32, i32) {
    %c0_i32 = arith.constant 0 : i32
    %c0_i32_0 = arith.constant 0 : i32
    %c0_i32_1 = arith.constant 0 : i32
    return %c0_i32, %c0_i32_0 : i32, i32
  }
  func.func @transform_6(%arg0: i32, %arg1: i32) -> (i32, i32) {
    %c0_i32 = arith.constant 0 : i32
    %c0_i32_0 = arith.constant 0 : i32
    %c0_i32_1 = arith.constant 0 : i32
    return %c0_i32, %c0_i32_0 : i32, i32
  }
  func.func @transform_7(%arg0: i32, %arg1: i32) -> (i32, i32) {
    %c0_i32 = arith.constant 0 : i32
    %c0_i32_0 = arith.constant 0 : i32
    %c0_i32_1 = arith.constant 0 : i32
    return %c0_i32, %c0_i32_0 : i32, i32
  }
  func.func @transform_8(%arg0: i32, %arg1: i32) -> (i32, i32) {
    %c0_i32 = arith.constant 0 : i32
    %c0_i32_0 = arith.constant 0 : i32
    %c0_i32_1 = arith.constant 0 : i32
    return %c0_i32, %c0_i32_0 : i32, i32
  }
  func.func @transform_9(%arg0: i32, %arg1: i32) -> (i32, i32) {
    %c0_i32 = arith.constant 0 : i32
    %c0_i32_0 = arith.constant 0 : i32
    %c0_i32_1 = arith.constant 0 : i32
    return %c0_i32, %c0_i32_0 : i32, i32
  }
  func.func @transform_10(%arg0: i32, %arg1: i32) -> (i32, i32) {
    %c0_i32 = arith.constant 0 : i32
    %c0_i32_0 = arith.constant 0 : i32
    %c0_i32_1 = arith.constant 0 : i32
    return %c0_i32, %c0_i32_0 : i32, i32
  }
  func.func @transform_11(%arg0: i32, %arg1: i32) -> (i32, i32) {
    %c0_i32 = arith.constant 0 : i32
    %c0_i32_0 = arith.constant 0 : i32
    %c0_i32_1 = arith.constant 0 : i32
    return %c0_i32, %c0_i32_0 : i32, i32
  }
  func.func @transform_12(%arg0: i32, %arg1: i32) -> (i32, i32) {
    %c0_i32 = arith.constant 0 : i32
    %c0_i32_0 = arith.constant 0 : i32
    %c0_i32_1 = arith.constant 0 : i32
    return %c0_i32, %c0_i32_0 : i32, i32
  }
  func.func @transform_13(%arg0: i32, %arg1: i32) -> (i32, i32) {
    %c0_i32 = arith.constant 0 : i32
    %c0_i32_0 = arith.constant 0 : i32
    %c0_i32_1 = arith.constant 0 : i32
    return %c0_i32, %c0_i32_0 : i32, i32
  }
  func.func @transform_14(%arg0: i32, %arg1: i32) -> (i32, i32) {
    %c0_i32 = arith.constant 0 : i32
    %c0_i32_0 = arith.constant 0 : i32
    %c0_i32_1 = arith.constant 0 : i32
    return %c0_i32, %c0_i32_0 : i32, i32
  }
  func.func @transform_15(%arg0: i32, %arg1: i32) -> (i32, i32) {
    %0 = arith.muli %arg1, %arg0 : i32
    %c0_i32 = arith.constant 0 : i32
    %c0_i32_0 = arith.constant 0 : i32
    return %0, %c0_i32 : i32, i32
  }
}

</mosaic_0001>

<bundles_post_ra>
// kernel: tpu_custom_call.1
= control target key start
LH: loop header
LB: loop body
LE: loop exit
PB: predicated region body
PF: predicated region fallthrough
CT: control target
= control target key end

     0   :  { %s6535_s0 = inlined_call_operand.vmem [shape: s32[256,1], index: 0, kind: input, shape index: {}]   ;;  %s6536_s1 = inlined_call_operand.vmem [shape: s32[256,1], index: 1, kind: input, shape index: {}]   ;;  %s6537_s2 = inlined_call_operand.vmem [shape: f32[256,32], index: 2, kind: input, shape index: {}]   ;;  %s6538_s3 = inlined_call_operand.vmem [shape: f32[16,32], index: 3, kind: input, shape index: {}]   ;;  %s6539_s4 = inlined_call_operand.vmem [shape: f32[32,64], index: 4, kind: input, shape index: {}]   ;;  %s6540_s5 = inlined_call_operand.vmem [shape: f32[1,64], index: 5, kind: input, shape index: {}]   ;;  %s6541_s6 = inlined_call_operand.vmem [shape: f32[32,32], index: 6, kind: input, shape index: {}]   ;;  %s6542_s7 = inlined_call_operand.vmem [shape: f32[1,32], index: 7, kind: input, shape index: {}]   ;;  %s6543_s8 = inlined_call_operand.vmem [shape: f32[32,32], index: 8, kind: input, shape index: {}]   ;;  %s6544_s9 = inlined_call_operand.vmem [shape: f32[1,32], index: 9, kind: input, shape index: {}]   ;;  %s6545_s10 = inlined_call_operand.vmem [shape: f32[32,32], index: 10, kind: input, shape index: {}]   ;;  %s6546_s11 = inlined_call_operand.vmem [shape: f32[1,32], index: 11, kind: input, shape index: {}]   ;;  %s6547_s12 = inlined_call_operand.vmem [shape: f32[32,4], index: 12, kind: input, shape index: {}]   ;;  %s6548_s13 = inlined_call_operand.vmem [shape: f32[4,32], index: 13, kind: input, shape index: {}]   ;;  %s6549_s14 = inlined_call_operand.hbm [shape: f32[16,32], index: 14, kind: output, shape index: {0}]   ;;  %s6550_s15 = inlined_call_operand.vmem [shape: f32[256,32], index: 15, kind: output, shape index: {1}]  }
   0x1   :  { %6694 = sst [smem:[#allocation68_spill]] %s6535_s0 }
   0x2   :  { %6695 = sst [smem:[#allocation69_spill]] %s6546_s11 }
   0x3   :  { %6696 = sst [smem:[#allocation70_spill]] %s6549_s14 }
   0x4   :  { %21 = vsyncpa [#allocation7], 0  ;;  %s4852_s18 = smov 0   ;;  %s4854_s19 = smov 0  }
   0x5   :  { %s4856_s20 = smov 0   ;;  %s4858_s21 = smov 0  }
   0x6   :  { %s4860_s22 = smov 0  }
   0x7 LB: > { %6697 = sst [smem:[#allocation9_spill]] %s4749_s20  ;;  %s36_s24 = sadd.s32 1, %s4749_s20  ;;  %s4757_s22 = sphi %s4860_s22, %s27_s22   ;;  %s4753_s21 = sphi %s4858_s21, %s7048_s21   ;;  %s4749_s20 = sphi %s4856_s20, %s7047_s20   ;;  %s4745_s19 = sphi %s4854_s19, %s7046_s19   ;;  %s4741_s18 = sphi %s4852_s18, %s7045_s18  }
   0x8   : > { %6698 = sst [smem:[#allocation10_spill]] %s4753_s21  ;;  %p37_p0 = scmp.ge.s32.totalorder %s36_s24, 2 }
   0x9   : > { %6699 = sst [smem:[#allocation11_spill]] %s4757_s22  ;;  %s39_s25 = sadd.s32 1, %s4753_s21 }
   0xa   : > { %p3714_p1 = scmp.ge.s32.totalorder %s4757_s22, 1  ;;  %p473_p2 = scmp.lt.s32.totalorder %s4757_s22, 5 }
   0xb   : > { %s7050_s24 = smov (%p37_p0, %s36_s24), 0  ;;  %s7052_s25 = smov (!%p37_p0, %s39_s25), %s4753_s21 }
   0xc   : > { %6700 = sst [smem:[#allocation12_spill]] %s7050_s24  ;;  %p474_p3 = pnand %p3714_p1, %p473_p2 }
   0xd   : > { %p41_p4 = scmp.ge.s32.totalorder %s7052_s25, 2 }
   0xe   : > { %477 = sbr.rel (%p474_p3) target bundleno = 2336 (0x920), region = 76 }
   0xf   : > { %s7054_s25 = smov (%p41_p4, %s7052_s25), 0 }
  0x10   : > { %6701 = sst [smem:[#allocation13_spill]] %s7054_s25 }
  0x15   : > { %s3715_s26 = sshll.u32 %s4741_s18, 4  ;;  %s550_s27 = smul.u32 %s4741_s18, %s4745_s19 }
  0x16   : > { %p533_p5 = scmp.lt.s32.totalorder %s3715_s26, 31  ;;  %p558_p6 = scmp.eq.s32.totalorder %s4745_s19, 0 }
  0x17   : > { %s3721_s28 = sshll.u32 %s550_s27, 4  ;;  %p559_p7 = scmp.eq.s32.totalorder %s4741_s18, 0 }
  0x18   : > { %s7056_s26 = smov (!%p533_p5, %s3715_s26), 31  ;;  %p552_p8 = scmp.lt.s32.totalorder %s3721_s28, 31 }
  0x19   : > { %p560_p9 = pnand %p559_p7, %p558_p6  ;;  %s3716_s29 = sshll.u32 %s7056_s26, 3 }
  0x1a   : > { %s6702_s0 = sld [smem:[#allocation68_spill]]  ;;  %s4900_s24 = scalar_lea.vmem %s6536_s1, %s3716_s29  ;;  %v566_v0 = vld [vmem:[%s6539_s4] sm:$0xff] (!%p560_p9)  ;;  %v567_v1 = vld [vmem:[%s6539_s4 + $0x8] sm:$0xff] (!%p560_p9)  ;;  %v568_v2 = vld [vmem:[%s6539_s4 + $0x10] sm:$0xff] (!%p560_p9)  ;;  %vm577_vm0 = vcmask (!%p560_p9), 261120   ;;  %vm673_vm1 = vcmask (!%p560_p9), 31744  }
  0x1b   : > { %s4905_s14 = scalar_lea.vmem %s6537_s2, %s3716_s29  ;;  %s7058_s28 = smov (!%p552_p8, %s3721_s28), 31  ;;  %v4418_v3 = vpack.c.bf16 (!%p560_p9), %v567_v1, %v566_v0  ;;  %v569_v4 = vld [vmem:[%s6539_s4 + $0x18] sm:$0xff] (!%p560_p9)  ;;  %v564_v5 = vld [vmem:[%s6538_s3] sm:$0xff] (!%p560_p9)  ;;  %v4759_v6 = vmov (!%p560_p9), 0.0   ;;  %v565_v8 = vld [vmem:[%s6538_s3 + $0x8] sm:$0xff] (!%p560_p9)  ;;  %vm671_vm2 = vcmask (!%p560_p9), 125952  }
  0x1c   : > { %s3722_s27 = sshll.u32 %s7058_s28, 3  ;;  %563 = sbr.rel (%p560_p9) target bundleno = 372 (0x174), region = 80  ;;  %674 = vst.msk [vmem:[#allocation5] sm:$0xff] (!%p560_p9), %vm673_vm1, %v4759_v6  ;;  %675 = vst.msk [vmem:[#allocation5 + $0x8] sm:$0xff] (!%p560_p9), %vm673_vm1, %v4759_v6  ;;  %v4422_v7 = vpack.c.bf16 (!%p560_p9), %v569_v4, %v568_v2  ;;  %4104 = vmatprep.mubr.msk.f32.mxu0 (!%p560_p9), %vm577_vm0, %v564_v5  ;;  %v4760_v9 = vmov (!%p560_p9), -1e+30  }
  0x1d   : > { %s4910_s26 = scalar_lea.vmem %s6550_s15, %s3722_s27  ;;  %676 = vst.msk [vmem:[#allocation6] sm:$0xff] (!%p560_p9), %vm577_vm0, %v4759_v6  ;;  %677 = vst.msk [vmem:[#allocation6 + $0x8] sm:$0xff] (!%p560_p9), %vm577_vm0, %v4759_v6  ;;  %4419 = vmatprep.subr.bf16.mxu0 (!%p560_p9), %v4418_v3  ;;  %v3723_v10 = vld [vmem:[%s6540_s5] ss:$0 sm:$0xff] (!%p560_p9)  ;;  %s4761_s16 = smov (!%p560_p9), 96  }
  0x1e   : > { %4421 = vmatpush3.bf16.msra.mxu0 (!%p560_p9), %v4418_v3  ;;  %672 = vst.msk [vmem:[#allocation4] sm:$0xf] (!%p560_p9), %vm671_vm2, %v4760_v9 }
  0x1f   : > { %4423 = vmatprep.subr.bf16.mxu0 (!%p560_p9), %v4422_v7 }
  0x20   : > { %s4895_s17 = scalar_lea.vmem %s6702_s0, %s3716_s29 }
  0x22   : > { %4425 = vmatpush3.bf16.msra.mxu0 (!%p560_p9), %v4422_v7 }
  0x25   : > { %4105 = vmatmul.mubr.msk.f32.vlgmr.msra.gmra.mrb[0].mxu0 %vm577_vm0, %v565_v8 }
  0xf8   : > { %v4106_v11 = vpop.f32.mrb[0].mxu0 }
  0xf9   : > { %v656_v12 = vadd.f32 %v4106_v11, %v3723_v10  ;;  %v650_v13 = vpop.f32.mrb[1].mxu0 }
  0xfa   : > { %v651_v14 = vadd.f32 %v3723_v10, %v650_v13 }
  0xfb   : > { %660 = vst.msk [vmem:[#allocation2 + $0x8] sm:$0xff] %vm577_vm0, %v656_v12 }
  0xfc   : > { %659 = vst.msk [vmem:[#allocation2] sm:$0xff] %vm577_vm0, %v651_v14  ;;  %663 = vrot.lane.b32.xlu0 %v651_v14, %s4761_s16 }
 0x100   : > { %665 = vrot.lane.b32.xlu0 %v656_v12, %s4761_s16 }
 0x16e   : > { %v664_v15 = vpop.permute.xlu0 %663 }
 0x16f   : > { %669 = vst.msk [vmem:[#allocation3] sm:$0xff] %vm577_vm0, %v664_v15 }
 0x172   : > { %v666_v16 = vpop.permute.xlu0 %665 }
 0x173   : > { %670 = vst.msk [vmem:[#allocation3 + $0x8] sm:$0xff] %vm577_vm0, %v666_v16 }
 0x174 PF: > { %v712_v17 = vld [vmem:[%s4900_s24 + $0x10] sm:$0xff]  ;;  %v710_v18 = vld [vmem:[%s4900_s24] sm:$0xff]  ;;  %v4762_v19 = vmov 0   ;;  %v713_v20 = vld [vmem:[%s4900_s24 + $0x18] sm:$0xff]  ;;  %v726_v59 = vlaneseq  ;;  %s3726_s0 = sshll.u32 %s4741_s18, 7  ;;  %vm6623_vm7 = vcmask 130048  }
 0x175   : > { %4608 = vset.pattern.permute.xlu1 %v4762_v19  ;;  %4607 = vset.pattern.permute.xlu0 %v4762_v19  ;;  %v711_v21 = vld [vmem:[%s4900_s24 + $0x8] sm:$0xff]  ;;  %v714_v23 = vld [vmem:[%s4900_s24 + $0x20] sm:$0xff]  ;;  %v717_v24 = vld [vmem:[%s4900_s24 + $0x38] sm:$0xff]  ;;  %v4995_v62 = vstv %s3726_s0  ;;  %v4763_v12 = vmov 0.0   ;;  %p3841_p10 = scmp.ne.s32.totalorder %s4745_s19, 0 }
 0x176   : > { %898 = vperm.xlu1 %4608, %v712_v17   ;;  %892 = vperm.xlu0 %4607, %v710_v18   ;;  %v715_v22 = vld [vmem:[%s4900_s24 + $0x28] sm:$0xff]  ;;  %v716_v25 = vld [vmem:[%s4900_s24 + $0x30] sm:$0xff]  ;;  %v1438_v28 = vld [vmem:[%s6543_s8] sm:$0xff]  ;;  %v4992_v60 = vshrl.u32 %v726_v59, 7  ;;  %v5002_v1 = vand.u32 127, %v726_v59 }
 0x177   : > { %v1037_v26 = vld [vmem:[#allocation3] sm:$0xff]  ;;  %v1439_v29 = vld [vmem:[%s6543_s8 + $0x8] sm:$0xff]  ;;  %v718_v33 = vld [vmem:[%s4900_s24 + $0x40] sm:$0xff] }
 0x178   : > { %v4955_v31 = vpack.c.bf16 %v1439_v29, %v1438_v28  ;;  %v719_v32 = vld [vmem:[%s4900_s24 + $0x48] sm:$0xff]  ;;  %v721_v34 = vld [vmem:[%s4900_s24 + $0x58] sm:$0xff]  ;;  %v720_v35 = vld [vmem:[%s4900_s24 + $0x50] sm:$0xff]  ;;  %v732_v61 = vadd.s32 16, %v4992_v60  ;;  %v4999_v63 = vadd.s32 %v4995_v62, %v4992_v60  ;;  %v731_v0 = vadd.s32 8, %v4992_v60 }
 0x179   : > { %v723_v36 = vld [vmem:[%s4900_s24 + $0x68] sm:$0xff]  ;;  %v722_v37 = vld [vmem:[%s4900_s24 + $0x60] sm:$0xff]  ;;  %v725_v38 = vld [vmem:[%s4900_s24 + $0x78] sm:$0xff]  ;;  %v733_v3 = vadd.s32 24, %v4992_v60  ;;  %v734_v7 = vadd.s32 32, %v4992_v60  ;;  %v735_v8 = vadd.s32 40, %v4992_v60 }
 0x17a   : > { %901 = vperm.xlu1 %4608, %v713_v20   ;;  %895 = vperm.xlu0 %4607, %v711_v21   ;;  %v1038_v27 = vld [vmem:[#allocation3 + $0x8] sm:$0xff]  ;;  %v724_v39 = vld [vmem:[%s4900_s24 + $0x70] sm:$0xff]  ;;  %v695_v40 = vld [vmem:[%s4895_s17 + $0x8] sm:$0xff]  ;;  %v5005_v2 = vadd.s32 %v4995_v62, %v732_v61  ;;  %vm763_vm3 = vcmp.lt.s32.totalorder %v4999_v63, 256  ;;  %v5010_v6 = vadd.s32 %v4995_v62, %v731_v0  ;;  %v736_v16 = vadd.s32 48, %v4992_v60 }
 0x17b   : > { %v4426_v30 = vpack.c.bf16 %v1038_v27, %v1037_v26  ;;  %v694_v41 = vld [vmem:[%s4895_s17] sm:$0xff]  ;;  %v697_v42 = vld [vmem:[%s4895_s17 + $0x18] sm:$0xff]  ;;  %v696_v43 = vld [vmem:[%s4895_s17 + $0x10] sm:$0xff]  ;;  %v5018_v9 = vadd.s32 %v4995_v62, %v733_v3  ;;  %v5031_v15 = vadd.s32 %v4995_v62, %v734_v7  ;;  %v5043_v19 = vadd.s32 %v4995_v62, %v735_v8 }
 0x17c   : > { %v699_v44 = vld [vmem:[%s4895_s17 + $0x28] sm:$0xff]  ;;  %v698_v45 = vld [vmem:[%s4895_s17 + $0x20] sm:$0xff]  ;;  %v701_v49 = vld [vmem:[%s4895_s17 + $0x38] sm:$0xff]  ;;  %vm765_vm4 = vcmp.lt.s32.totalorder %v5005_v2, 256  ;;  %vm764_vm10 = vcmp.lt.s32.totalorder %v5010_v6, 256  ;;  %v737_v20 = vadd.s32 56, %v4992_v60  ;;  %v5057_v27 = vadd.s32 %v4995_v62, %v736_v16 }
 0x17d   : > { %4427 = vmatprep.subr.bf16.mxu0 %v4426_v30  ;;  %4530 = vmatprep.subr.bf16.mxu1 %v4426_v30  ;;  %v1233_v46 = vld [vmem:[%s6541_s6] sm:$0xff]  ;;  %v1234_v47 = vld [vmem:[%s6541_s6 + $0x8] sm:$0xff]  ;;  %v700_v50 = vld [vmem:[%s4895_s17 + $0x30] sm:$0xff]  ;;  %vm6558_vm12 = vcmp.lt.s32.totalorder %v5018_v9, 256  ;;  %vm6557_vm15 = vcmp.lt.s32.totalorder %v5031_v15, 256  ;;  %v738_v28 = vadd.s32 64, %v4992_v60 }
 0x17e   : > { %907 = vperm.xlu1 %4608, %v715_v22   ;;  %904 = vperm.xlu0 %4607, %v714_v23   ;;  %v4978_v48 = vpack.c.bf16 %v1234_v47, %v1233_v46  ;;  %v703_v51 = vld [vmem:[%s4895_s17 + $0x48] sm:$0xff]  ;;  %v702_v52 = vld [vmem:[%s4895_s17 + $0x40] sm:$0xff]  ;;  %v705_v53 = vld [vmem:[%s4895_s17 + $0x58] sm:$0xff]  ;;  %v739_v23 = vadd.s32 72, %v4992_v60  ;;  %vm6556_vm1 = vcmp.lt.s32.totalorder %v5043_v19, 256  ;;  %v744_v3 = vadd.s32 112, %v4992_v60 }
 0x17f   : > { %4429 = vmatpush3.bf16.msra.mxu0 %v4426_v30  ;;  %4531 = vmatpush3.bf16.msra.mxu1 %v4426_v30  ;;  %v704_v54 = vld [vmem:[%s4895_s17 + $0x50] sm:$0xff]  ;;  %v707_v55 = vld [vmem:[%s4895_s17 + $0x68] sm:$0xff]  ;;  %v706_v56 = vld [vmem:[%s4895_s17 + $0x60] sm:$0xff]  ;;  %v6726_v6 = vmov 0 }
 0x180   : > { %4439 = vmatprep.subr.bf16.mxu0 %v4955_v31  ;;  %4431 = vmatprep.subr.bf16.mxu1 %v4978_v48  ;;  %v709_v57 = vld [vmem:[%s4895_s17 + $0x78] sm:$0xff]  ;;  %v708_v58 = vld [vmem:[%s4895_s17 + $0x70] sm:$0xff]  ;;  %v1035_v29 = vld [vmem:[#allocation2] sm:$0xff] }
 0x181   : > { %v1440_v17 = vld [vmem:[%s6543_s8 + $0x10] sm:$0xff]  ;;  %v1441_v18 = vld [vmem:[%s6543_s8 + $0x18] sm:$0xff]  ;;  %v1036_v30 = vld [vmem:[#allocation2 + $0x8] sm:$0xff] }
 0x182   : > { %913 = vperm.xlu1 %4608, %v717_v24   ;;  %910 = vperm.xlu0 %4607, %v716_v25   ;;  %v4442_v22 = vpack.c.bf16 %v1441_v18, %v1440_v17  ;;  %v682_v16 = vld [vmem:[%s4905_s14 + $0x20] sm:$0xff]  ;;  %v693_v63 = vld [vmem:[%s4905_s14 + $0x78] sm:$0xff] }
 0x186   : > { %919 = vperm.xlu1 %4608, %v719_v32   ;;  %916 = vperm.xlu0 %4607, %v718_v33   ;;  %v5069_v32 = vadd.s32 %v4995_v62, %v737_v20  ;;  %v741_v33 = vadd.s32 88, %v4992_v60 }
 0x18a   : > { %925 = vperm.xlu1 %4608, %v721_v34   ;;  %922 = vperm.xlu0 %4607, %v720_v35   ;;  %v740_v34 = vadd.s32 80, %v4992_v60  ;;  %v5076_v35 = vadd.s32 %v4995_v62, %v739_v23  ;;  %v684_v23 = vld [vmem:[%s4905_s14 + $0x30] sm:$0xff] }
 0x18e   : > { %931 = vperm.xlu1 %4608, %v723_v36   ;;  %928 = vperm.xlu0 %4607, %v722_v37   ;;  %v5078_v36 = vpack.c.bf16 %v1036_v30, %v1035_v29  ;;  %v686_v29 = vld [vmem:[%s4905_s14 + $0x40] sm:$0xff] }
 0x192   : > { %937 = vperm.xlu1 %4608, %v725_v38   ;;  %934 = vperm.xlu0 %4607, %v724_v39  }
 0x196   : > { %783 = vperm.xlu1 %4608, %v695_v40   ;;  %780 = vperm.xlu0 %4607, %v694_v41   ;;  %v5084_v40 = vadd.s32 %v4995_v62, %v738_v28  ;;  %v5096_v41 = vadd.s32 %v4995_v62, %v741_v33  ;;  %v685_v28 = vld [vmem:[%s4905_s14 + $0x38] sm:$0xff] }
 0x19a   : > { %789 = vperm.xlu1 %4608, %v697_v42   ;;  %786 = vperm.xlu0 %4607, %v696_v43   ;;  %v5099_v42 = vadd.s32 %v4995_v62, %v740_v34  ;;  %v743_v43 = vadd.s32 104, %v4992_v60  ;;  %v687_v34 = vld [vmem:[%s4905_s14 + $0x48] sm:$0xff] }
 0x19e   : > { %795 = vperm.xlu1 %4608, %v699_v44   ;;  %792 = vperm.xlu0 %4607, %v698_v45   ;;  %v742_v44 = vadd.s32 96, %v4992_v60 }
 0x1a2   : > { %801 = vperm.xlu1 %4608, %v701_v49   ;;  %798 = vperm.xlu0 %4607, %v700_v50  }
 0x1a6   : > { %807 = vperm.xlu1 %4608, %v703_v51   ;;  %804 = vperm.xlu0 %4607, %v702_v52   ;;  %v1235_v51 = vld [vmem:[%s6541_s6 + $0x10] sm:$0xff]  ;;  %v1236_v52 = vld [vmem:[%s6541_s6 + $0x18] sm:$0xff] }
 0x1aa   : > { %813 = vperm.xlu1 %4608, %v705_v53   ;;  %810 = vperm.xlu0 %4607, %v704_v54   ;;  %v5136_v54 = vld [vmem:[%s4905_s14] sm:$0xff] }
 0x1ae   : > { %819 = vperm.xlu1 %4608, %v707_v55   ;;  %816 = vperm.xlu0 %4607, %v706_v56   ;;  %v5139_v55 = vadd.s32 %v4995_v62, %v743_v43  ;;  %v5142_v56 = vadd.s32 %v4995_v62, %v742_v44 }
 0x1b2   : > { %825 = vperm.xlu1 %4608, %v709_v57   ;;  %822 = vperm.xlu0 %4607, %v708_v58   ;;  %v745_v57 = vadd.s32 120, %v4992_v60 }
 0x1b4   : > { %v5165_v7 = vadd.s32 %v4995_v62, %v745_v57 }
 0x1f5   : > { %v899_v4 = vpop.permute.xlu1 %898  ;;  %v893_v5 = vpop.permute.xlu0 %892 }
 0x1f6   : > { %vm941_vm5 = vcmp.eq.s32.totalorder %v5002_v1, %v899_v4  ;;  %vm939_vm6 = vcmp.eq.s32.totalorder %v5002_v1, %v893_v5  ;;  %v4434_v4 = vpack.c.bf16 %v1236_v52, %v1235_v51  ;;  %v679_v5 = vld [vmem:[%s4905_s14 + $0x8] sm:$0xff]  ;;  %v6711_v51 = vmov 0 }
 0x1f7   : > { %vm955_vm8 = vmand %vm939_vm6, %vm763_vm3  ;;  %v6714_v52 = vmov 0 }
 0x1f8   : > { %vm5024_vm9 = vmand %vm941_vm5, %vm765_vm4  ;;  %v3743_v13 = vsel %vm955_vm8, 1.0, %v4763_v12  ;;  %vm6555_vm8 = vcmp.lt.s32.totalorder %v5057_v27, 256 }
 0x1f9   : > { %v902_v11 = vpop.permute.xlu1 %901  ;;  %v896_v14 = vpop.permute.xlu0 %895  ;;  %4111 = vmatprep.mubr.msk.f32.mxu0 %vm6623_vm7, %v3743_v13  ;;  %v3745_v21 = vsel %vm5024_vm9, 1.0, %v4763_v12  ;;  %v680_v13 = vld [vmem:[%s4905_s14 + $0x10] sm:$0xff] }
 0x1fa   : > { %vm940_vm11 = vcmp.eq.s32.totalorder %v5002_v1, %v896_v14  ;;  %vm942_vm13 = vcmp.eq.s32.totalorder %v5002_v1, %v902_v11  ;;  %v5172_v14 = vadd.s32 %v4995_v62, %v744_v3  ;;  %v6739_v3 = vmov 0 }
 0x1fb   : > { %vm956_vm14 = vmand %vm940_vm11, %vm764_vm10 }
 0x1fc   : > { %v3744_v24 = vsel %vm956_vm14, 1.0, %v4763_v12  ;;  %vm958_vm0 = vmand %vm942_vm13, %vm6558_vm12  ;;  %vm770_vm13 = vcmp.lt.s32.totalorder %v5069_v32, 256 }
 0x1fd   : > { %v908_v25 = vpop.permute.xlu1 %907  ;;  %v905_v26 = vpop.permute.xlu0 %904  ;;  %4112 = vmatmul.mubr.msk.f32.vlgmr.msra.gmra.mrb[0].mxu0 %vm6623_vm7, %v3744_v24 }
 0x1fe   : > { %vm943_vm2 = vcmp.eq.s32.totalorder %v5002_v1, %v905_v26  ;;  %vm944_vm5 = vcmp.eq.s32.totalorder %v5002_v1, %v908_v25  ;;  %4441 = vmatpush3.bf16.msra.mxu0 %v4955_v31  ;;  %4114 = vmatprep.mubr.msk.f32.mxu0 %vm6623_vm7, %v3745_v21  ;;  %v3746_v31 = vsel %vm958_vm0, 1.0, %v4763_v12  ;;  %v683_v21 = vld [vmem:[%s4905_s14 + $0x28] sm:$0xff] }
 0x1ff   : > { %vm959_vm6 = vmand %vm943_vm2, %vm6557_vm15  ;;  %4443 = vmatprep.subr.bf16.mxu0 %v4442_v22  ;;  %vm772_vm2 = vcmp.lt.s32.totalorder %v5076_v35, 256  ;;  %v6721_v35 = vmov 0 }
 0x200   : > { %v3747_v37 = vsel %vm959_vm6, 1.0, %v4763_v12  ;;  %vm960_vm9 = vmand %vm944_vm5, %vm6556_vm1  ;;  %vm771_vm5 = vcmp.lt.s32.totalorder %v5084_v40, 256  ;;  %vm6564_vm1 = vcmask 261120  }
 0x201   : > { %v914_v38 = vpop.permute.xlu1 %913  ;;  %v911_v39 = vpop.permute.xlu0 %910  ;;  %4115 = vmatmul.mubr.msk.f32.gmra.mrb[2].mxu0 %vm6623_vm7, %v3746_v31  ;;  %v3748_v45 = vsel %vm960_vm9, 1.0, %v4763_v12 }
 0x202   : > { %vm945_vm11 = vcmp.eq.s32.totalorder %v5002_v1, %v911_v39  ;;  %vm946_vm14 = vcmp.eq.s32.totalorder %v5002_v1, %v914_v38  ;;  %4117 = vmatprep.mubr.msk.f32.mxu0 %vm6623_vm7, %v3747_v37  ;;  %4445 = vmatpush3.bf16.msra.mxu0 %v4442_v22  ;;  %v689_v38 = vld [vmem:[%s4905_s14 + $0x58] sm:$0xff]  ;;  %v5226_v39 = vld [vmem:[%s4905_s14 + $0x60] sm:$0xff] }
 0x203   : > { %vm961_vm0 = vmand %vm945_vm11, %vm6555_vm8  ;;  %4447 = vmatprep.subr.bf16.mxu0 %v5078_v36  ;;  %vm6559_vm8 = vcmp.lt.s32.totalorder %v5099_v42, 256 }
 0x204   : > { %v3749_v46 = vsel %vm961_vm0, 1.0, %v4763_v12  ;;  %vm5114_vm6 = vmand %vm946_vm14, %vm770_vm13  ;;  %vm774_vm0 = vcmp.lt.s32.totalorder %v5096_v41, 256 }
 0x205   : > { %v920_v47 = vpop.permute.xlu1 %919  ;;  %v917_v49 = vpop.permute.xlu0 %916  ;;  %4118 = vmatmul.mubr.msk.f32.gmra.mrb[4].mxu0 %vm6623_vm7, %v3748_v45  ;;  %v3750_v58 = vsel %vm5114_vm6, 1.0, %v4763_v12  ;;  %vm6560_vm6 = vcmp.lt.s32.totalorder %v5139_v55, 256  ;;  %v6707_v45 = vmov 0 }
 0x206   : > { %vm948_vm11 = vcmp.eq.s32.totalorder %v5002_v1, %v920_v47  ;;  %vm947_vm9 = vcmp.eq.s32.totalorder %v5002_v1, %v917_v49  ;;  %4120 = vmatprep.mubr.msk.f32.mxu0 %vm6623_vm7, %v3749_v46  ;;  %v5243_v46 = vld [vmem:[%s4905_s14 + $0x68] sm:$0xff]  ;;  %v5252_v49 = vld [vmem:[%s4905_s14 + $0x70] sm:$0xff] }
 0x207   : > { %vm964_vm14 = vmand %vm948_vm11, %vm772_vm2 }
 0x208   : > { %v3752_v53 = vsel %vm964_vm14, 1.0, %v4763_v12  ;;  %vm963_vm15 = vmand %vm947_vm9, %vm771_vm5 }
 0x209   : > { %v926_v59 = vpop.permute.xlu1 %925  ;;  %v3751_v61 = vsel %vm963_vm15, 1.0, %v4763_v12  ;;  %v923_v0 = vpop.permute.xlu0 %922  ;;  %4121 = vmatmul.mubr.msk.f32.gmra.mrb[6].mxu0 %vm6623_vm7, %v3750_v58 }
 0x20a   : > { %vm950_vm11 = vcmp.eq.s32.totalorder %v5002_v1, %v926_v59  ;;  %4123 = vmatprep.mubr.msk.f32.mxu1 %vm6623_vm7, %v3751_v61  ;;  %vm949_vm9 = vcmp.eq.s32.totalorder %v5002_v1, %v923_v0  ;;  %4175 = vmatprep.mubr.msk.f32.mxu0 %vm6564_vm1, %v5136_v54  ;;  %v6729_v61 = vmov 0  ;;  %v6734_v0 = vmov 0 }
 0x20b   : > { %vm966_vm14 = vmand %vm950_vm11, %vm774_vm0  ;;  %4124 = vmatmul.mubr.msk.f32.vlgmr.msra.gmra.mrb[0].mxu1 %vm6623_vm7, %v3752_v53  ;;  %vm6563_vm11 = vcmp.lt.s32.totalorder %v5142_v56, 256 }
 0x20c   : > { %v3754_v60 = vsel %vm966_vm14, 1.0, %v4763_v12  ;;  %vm965_vm15 = vmand %vm949_vm9, %vm6559_vm8  ;;  %4433 = vmatpush3.bf16.msra.mxu1 %v4978_v48  ;;  %v681_v48 = vld [vmem:[%s4905_s14 + $0x18] sm:$0xff]  ;;  %vm6562_vm8 = vcmp.lt.s32.totalorder %v5165_v7, 256 }
 0x20d   : > { %v3753_v8 = vsel %vm965_vm15, 1.0, %v4763_v12  ;;  %v932_v10 = vpop.permute.xlu1 %931  ;;  %v929_v11 = vpop.permute.xlu0 %928  ;;  %4435 = vmatprep.subr.bf16.mxu1 %v4434_v4  ;;  %4176 = vmatmul.mubr.msk.f32.vlgmr.msra.gmra.mrb[8].mxu0 %vm6564_vm1, %v679_v5 }
 0x20e   : > { %vm952_vm9 = vcmp.eq.s32.totalorder %v5002_v1, %v932_v10  ;;  %4126 = vmatprep.mubr.msk.f32.mxu1 %vm6623_vm7, %v3753_v8  ;;  %vm951_vm14 = vcmp.eq.s32.totalorder %v5002_v1, %v929_v11  ;;  %4449 = vmatpush3.bf16.msra.mxu0 %v5078_v36  ;;  %v688_v36 = vld [vmem:[%s4905_s14 + $0x50] sm:$0xff]  ;;  %v6749_v8 = vmov 0  ;;  %v6755_v10 = vmov 0 }
 0x20f   : > { %vm968_vm15 = vmand %vm952_vm9, %vm6560_vm6  ;;  %4127 = vmatmul.mubr.msk.f32.gmra.mrb[2].mxu1 %vm6623_vm7, %v3754_v60  ;;  %4178 = vmatprep.mubr.msk.f32.mxu0 %vm6564_vm1, %v680_v13  ;;  %vm6561_vm9 = vcmp.lt.s32.totalorder %v5172_v14, 256  ;;  %v6761_v11 = vmov 0 }
 0x210   : > { %v3756_v62 = vsel %vm968_vm15, 1.0, %v4763_v12  ;;  %vm967_vm12 = vmand %vm951_vm14, %vm6563_vm11  ;;  %4437 = vmatpush3.bf16.msra.mxu1 %v4434_v4 }
 0x211   : > { %v3755_v17 = vsel %vm967_vm12, 1.0, %v4763_v12  ;;  %v938_v18 = vpop.permute.xlu1 %937  ;;  %v935_v20 = vpop.permute.xlu0 %934  ;;  %4179 = vmatmul.mubr.msk.f32.gmra.mrb[10].mxu0 %vm6564_vm1, %v681_v48 }
 0x212   : > { %vm954_vm6 = vcmp.eq.s32.totalorder %v5002_v1, %v938_v18  ;;  %4129 = vmatprep.mubr.msk.f32.mxu1 %vm6623_vm7, %v3755_v17  ;;  %vm953_vm14 = vcmp.eq.s32.totalorder %v5002_v1, %v935_v20  ;;  %4181 = vmatprep.mubr.msk.f32.mxu0 %vm6564_vm1, %v682_v16  ;;  %v2012_v18 = vld [vmem:[%s6547_s12 + $0x8] sm:$0xff] }
 0x213   : > { %vm970_vm15 = vmand %vm954_vm6, %vm6562_vm8  ;;  %4130 = vmatmul.mubr.msk.f32.gmra.mrb[4].mxu1 %vm6623_vm7, %v3756_v62 }
 0x214   : > { %v3758_v22 = vsel %vm970_vm15, 1.0, %v4763_v12  ;;  %vm969_vm12 = vmand %vm953_vm14, %vm6561_vm9 }
 0x215   : > { %v3757_v24 = vsel %vm969_vm12, 1.0, %v4763_v12  ;;  %v784_v25 = vpop.permute.xlu1 %783  ;;  %v781_v26 = vpop.permute.xlu0 %780  ;;  %4182 = vmatmul.mubr.msk.f32.gmra.mrb[12].mxu0 %vm6564_vm1, %v683_v21 }
 0x216   : > { %4132 = vmatprep.mubr.msk.f32.mxu1 %vm6623_vm7, %v3757_v24  ;;  %4184 = vmatprep.mubr.msk.f32.mxu0 %vm6564_vm1, %v684_v23  ;;  %vm827_vm14 = vcmp.eq.s32.totalorder %v5002_v1, %v781_v26 }
 0x217   : > { %4133 = vmatmul.mubr.msk.f32.gmra.mrb[6].mxu1 %vm6623_vm7, %v3758_v22  ;;  %vm5258_vm12 = vmand %vm827_vm14, %vm763_vm3  ;;  %v2014_v22 = vld [vmem:[%s6547_s12 + $0x18] sm:$0xff] }
 0x218   : > { %4143 = vmatprep.mubr.msk.f32.mxu1 %vm6564_vm1, %v5136_v54  ;;  %v6712_v51 = vsel %vm5258_vm12, 4294967295, %v6711_v51  ;;  %v6718_v54 = vmov 0  ;;  %v5303_v40 = vsel %vm5258_vm12, 1.0, %v4763_v12 }
 0x219   : > { %v790_v30 = vpop.permute.xlu1 %789  ;;  %v787_v33 = vpop.permute.xlu0 %786  ;;  %4185 = vmatmul.mubr.msk.f32.gmra.mrb[14].mxu0 %vm6564_vm1, %v685_v28  ;;  %6713 = vst [vmem:[#allocation16_spill] sm:$0xff] %v6712_v51  ;;  %6725 = vst [vmem:[#allocation22_spill] sm:$0xff] %v5303_v40 }
 0x21a   : > { %4187 = vmatprep.mubr.msk.f32.mxu0 %vm6564_vm1, %v686_v29  ;;  %vm829_vm8 = vcmp.eq.s32.totalorder %v5002_v1, %v787_v33 }
 0x21b   : > { %4144 = vmatmul.mubr.msk.f32.vlgmr.msra.gmra.mrb[8].mxu1 %vm6564_vm1, %v679_v5 }
 0x21c   : > { %4146 = vmatprep.mubr.msk.f32.mxu1 %vm6564_vm1, %v680_v13 }
 0x21d   : > { %v5219_v31 = vpop.permute.xlu1 %795  ;;  %v793_v37 = vpop.permute.xlu0 %792  ;;  %4188 = vmatmul.mubr.msk.f32.gmra.mrb[16].mxu0 %vm6564_vm1, %v687_v34 }
 0x21e   : > { %4190 = vmatprep.mubr.msk.f32.mxu0 %vm6564_vm1, %v688_v36 }
 0x21f   : > { %4147 = vmatmul.mubr.msk.f32.gmra.mrb[10].mxu1 %vm6564_vm1, %v681_v48 }
 0x220   : > { %4149 = vmatprep.mubr.msk.f32.mxu1 %vm6564_vm1, %v682_v16  ;;  %v6771_v16 = vmov 0 }
 0x221   : > { %v802_v43 = vpop.permute.xlu1 %801  ;;  %v5229_v44 = vpop.permute.xlu0 %798  ;;  %4191 = vmatmul.mubr.msk.f32.gmra.mrb[18].mxu0 %vm6564_vm1, %v689_v38 }
 0x222   : > { %vm834_vm6 = vcmp.eq.s32.totalorder %v5002_v1, %v802_v43  ;;  %4193 = vmatprep.mubr.msk.f32.mxu0 %vm6564_vm1, %v5226_v39 }
 0x223   : > { %vm5236_vm15 = vmand %vm834_vm6, %vm770_vm13  ;;  %4150 = vmatmul.mubr.msk.f32.gmra.mrb[12].mxu1 %vm6564_vm1, %v683_v21  ;;  %vm828_vm13 = vcmp.eq.s32.totalorder %v5002_v1, %v784_v25  ;;  %v2013_v21 = vld [vmem:[%s6547_s12 + $0x10] sm:$0xff] }
 0x224   : > { %v6708_v45 = vsel %vm5236_vm15, 4294967295, %v6707_v45  ;;  %v5249_v47 = vsel %vm5236_vm15, 1.0, %v4763_v12  ;;  %4152 = vmatprep.mubr.msk.f32.mxu1 %vm6564_vm1, %v684_v23  ;;  %v4454_v23 = vpack.c.bf16 %v2014_v22, %v2013_v21  ;;  %v5529_v21 = vld [vmem:[%s6542_s7] ss:$0 sm:$0xff] }
 0x225   : > { %6709 = vst [vmem:[#allocation14_spill] sm:$0xff] %v6708_v45  ;;  %6710 = vst [vmem:[#allocation15_spill] sm:$0xff] %v5249_v47  ;;  %v808_v32 = vpop.permute.xlu1 %807  ;;  %v805_v50 = vpop.permute.xlu0 %804  ;;  %4194 = vmatmul.mubr.msk.f32.gmra.mrb[20].mxu0 %vm6564_vm1, %v5243_v46 }
 0x226   : > { %vm836_vm6 = vcmp.eq.s32.totalorder %v5002_v1, %v808_v32  ;;  %vm835_vm9 = vcmp.eq.s32.totalorder %v5002_v1, %v805_v50  ;;  %4196 = vmatprep.mubr.msk.f32.mxu0 %vm6564_vm1, %v5252_v49 }
 0x227   : > { %vm5269_vm11 = vmand %vm836_vm6, %vm772_vm2  ;;  %4153 = vmatmul.mubr.msk.f32.gmra.mrb[14].mxu1 %vm6564_vm1, %v685_v28 }
 0x228   : > { %v6715_v52 = vsel %vm5269_vm11, 4294967295, %v6714_v52  ;;  %v5280_v53 = vsel %vm5269_vm11, 1.0, %v4763_v12  ;;  %vm5284_vm3 = vmand %vm835_vm9, %vm771_vm5  ;;  %4155 = vmatprep.mubr.msk.f32.mxu1 %vm6564_vm1, %v686_v29  ;;  %vm830_vm5 = vcmp.eq.s32.totalorder %v5002_v1, %v790_v30 }
 0x229   : > { %6716 = vst [vmem:[#allocation17_spill] sm:$0xff] %v6715_v52  ;;  %6717 = vst [vmem:[#allocation18_spill] sm:$0xff] %v5280_v53  ;;  %v6719_v54 = vsel %vm5284_vm3, 4294967295, %v6718_v54  ;;  %v5298_v57 = vsel %vm5284_vm3, 1.0, %v4763_v12  ;;  %v814_v58 = vpop.permute.xlu1 %813  ;;  %v811_v59 = vpop.permute.xlu0 %810  ;;  %4197 = vmatmul.mubr.msk.f32.gmra.mrb[22].mxu0 %vm6564_vm1, %v693_v63 }
 0x22a   : > { %6720 = vst [vmem:[#allocation19_spill] sm:$0xff] %v6719_v54  ;;  %vm5291_vm2 = vmand %vm828_vm13, %vm764_vm10  ;;  %vm838_vm9 = vcmp.eq.s32.totalorder %v5002_v1, %v814_v58  ;;  %vm837_vm14 = vcmp.eq.s32.totalorder %v5002_v1, %v811_v59  ;;  %vm831_vm13 = vcmp.eq.s32.totalorder %v5002_v1, %v793_v37  ;;  %4203 = vmatprep.mubr.msk.f32.mxu0 %vm6623_vm7, %v5303_v40 }
 0x22b   : > { %v6722_v35 = vsel %vm5291_vm2, 4294967295, %v6721_v35  ;;  %6724 = vst [vmem:[#allocation21_spill] sm:$0xff] %v5298_v57  ;;  %vm5308_vm10 = vmand %vm829_vm8, %vm765_vm4  ;;  %4156 = vmatmul.mubr.msk.f32.gmra.mrb[16].mxu1 %vm6564_vm1, %v687_v34  ;;  %vm6733_vm4 = vcmp.lt.s32.totalorder %v5099_v42, 256  ;;  %v5340_v41 = vsel %vm5291_vm2, 1.0, %v4763_v12 }
 0x22c   : > { %6723 = vst [vmem:[#allocation20_spill] sm:$0xff] %v6722_v35  ;;  %v6727_v6 = vsel %vm5308_vm10, 4294967295, %v6726_v6  ;;  %vm5318_vm6 = vmand %vm838_vm9, %vm774_vm0  ;;  %4158 = vmatprep.mubr.msk.f32.mxu1 %vm6564_vm1, %v688_v36  ;;  %vm6738_vm0 = vcmp.lt.s32.totalorder %v5018_v9, 256  ;;  %v5356_v60 = vsel %vm5308_vm10, 1.0, %v4763_v12  ;;  %v6745_v9 = vmov 0 }
 0x22d   : > { %6728 = vst [vmem:[#allocation23_spill] sm:$0xff] %v6727_v6  ;;  %v6730_v61 = vsel %vm5318_vm6, 4294967295, %v6729_v61  ;;  %v5328_v2 = vsel %vm5318_vm6, 1.0, %v4763_v12  ;;  %vm5332_vm8 = vmand %vm837_vm14, %vm6733_vm4  ;;  %v820_v4 = vpop.permute.xlu1 %819  ;;  %v817_v5 = vpop.permute.xlu0 %816  ;;  %vm832_vm14 = vcmp.eq.s32.totalorder %v5002_v1, %v5219_v31  ;;  %4204 = vmatmul.mubr.msk.f32.vlgmr.msra.gmra.mrb[0].mxu0 %vm6623_vm7, %v5340_v41  ;;  %vm6748_vm6 = vcmp.lt.s32.totalorder %v5139_v55, 256 }
 0x22e   : > { %6731 = vst [vmem:[#allocation24_spill] sm:$0xff] %v6730_v61  ;;  %6732 = vst [vmem:[#allocation25_spill] sm:$0xff] %v5328_v2  ;;  %v6735_v0 = vsel %vm5332_vm8, 4294967295, %v6734_v0  ;;  %v5351_v42 = vsel %vm5332_vm8, 1.0, %v4763_v12  ;;  %vm839_vm1 = vcmp.eq.s32.totalorder %v5002_v1, %v817_v5  ;;  %vm833_vm8 = vcmp.eq.s32.totalorder %v5002_v1, %v5229_v44  ;;  %4206 = vmatprep.mubr.msk.f32.mxu0 %vm6623_vm7, %v5356_v60 }
 0x22f   : > { %6736 = vst [vmem:[#allocation26_spill] sm:$0xff] %v6735_v0  ;;  %6737 = vst [vmem:[#allocation27_spill] sm:$0xff] %v5340_v41 }
 0x230   : > { %vm5344_vm9 = vmand %vm830_vm5, %vm6738_vm0  ;;  %6742 = vst [vmem:[#allocation29_spill] sm:$0xff] %v5351_v42  ;;  %vm6744_vm5 = vcmp.lt.s32.totalorder %v5031_v15, 256  ;;  %vm840_vm0 = vcmp.eq.s32.totalorder %v5002_v1, %v820_v4 }
 0x231   : > { %v6740_v3 = vsel %vm5344_vm9, 4294967295, %v6739_v3  ;;  %6743 = vst [vmem:[#allocation30_spill] sm:$0xff] %v5356_v60  ;;  %vm5362_vm4 = vmand %vm831_vm13, %vm6744_vm5  ;;  %vm6752_vm13 = vcmask 261120   ;;  %vm6754_vm5 = vcmp.lt.s32.totalorder %v5142_v56, 256  ;;  %v5397_v55 = vsel %vm5344_vm9, 1.0, %v4763_v12  ;;  %v826_v13 = vpop.permute.xlu1 %825  ;;  %v823_v48 = vpop.permute.xlu0 %822 }
 0x232   : > { %6741 = vst [vmem:[#allocation28_spill] sm:$0xff] %v6740_v3  ;;  %v6746_v9 = vsel %vm5362_vm4, 4294967295, %v6745_v9  ;;  %vm5374_vm3 = vmand %vm840_vm0, %vm6748_vm6  ;;  %4159 = vmatmul.mubr.msk.f32.gmra.mrb[18].mxu1 %vm6752_vm13, %v689_v38  ;;  %vm6760_vm0 = vcmp.lt.s32.totalorder %v5043_v19, 256  ;;  %v5413_v62 = vsel %vm5362_vm4, 1.0, %v4763_v12  ;;  %v6767_v19 = vmov 0  ;;  %4207 = vmatmul.mubr.msk.f32.gmra.mrb[2].mxu0 %vm6623_vm7, %v5397_v55 }
 0x233   : > { %6747 = vst [vmem:[#allocation31_spill] sm:$0xff] %v6746_v9  ;;  %v6750_v8 = vsel %vm5374_vm3, 4294967295, %v6749_v8  ;;  %v5384_v15 = vsel %vm5374_vm3, 1.0, %v4763_v12  ;;  %vm5388_vm11 = vmand %vm839_vm1, %vm6754_vm5  ;;  %vm6766_vm1 = vcmp.lt.s32.totalorder %v5057_v27, 256  ;;  %4209 = vmatprep.mubr.msk.f32.mxu0 %vm6623_vm7, %v5413_v62  ;;  %v6789_v9 = vmov 1.0  }
 0x234   : > { %6751 = vst [vmem:[#allocation32_spill] sm:$0xff] %v6750_v8  ;;  %6753 = vst [vmem:[#allocation33_spill] sm:$0xff] %v5384_v15  ;;  %v6756_v10 = vsel %vm5388_vm11, 4294967295, %v6755_v10  ;;  %v5408_v56 = vsel %vm5388_vm11, 1.0, %v4763_v12 }
 0x235   : > { %6757 = vst [vmem:[#allocation34_spill] sm:$0xff] %v6756_v10  ;;  %vm6758_vm6 = vmmov %vm6752_vm13 }
 0x236   : > { %4161 = vmatprep.mubr.msk.f32.mxu1 %vm6758_vm6, %v5226_v39  ;;  %6759 = vst [vmem:[#allocation35_spill] sm:$0xff] %v5397_v55  ;;  %vm5401_vm13 = vmand %vm832_vm14, %vm6760_vm0  ;;  %vm842_vm14 = vcmp.eq.s32.totalorder %v5002_v1, %v826_v13  ;;  %vm841_vm6 = vcmp.eq.s32.totalorder %v5002_v1, %v823_v48  ;;  %vm6770_vm0 = vcmp.lt.s32.totalorder %v5165_v7, 256  ;;  %v6777_v1 = vmov 0 }
 0x237   : > { %v6762_v11 = vsel %vm5401_vm13, 4294967295, %v6761_v11  ;;  %6764 = vst [vmem:[#allocation37_spill] sm:$0xff] %v5408_v56  ;;  %6765 = vst [vmem:[#allocation38_spill] sm:$0xff] %v5413_v62  ;;  %v5451_v7 = vsel %vm5401_vm13, 1.0, %v4763_v12 }
 0x238   : > { %6763 = vst [vmem:[#allocation36_spill] sm:$0xff] %v6762_v11  ;;  %vm5417_vm5 = vmand %vm833_vm8, %vm6766_vm1  ;;  %vm6774_vm8 = vcmask 261120   ;;  %vm6776_vm1 = vcmp.lt.s32.totalorder %v5172_v14, 256  ;;  %4210 = vmatmul.mubr.msk.f32.gmra.mrb[4].mxu0 %vm6623_vm7, %v5451_v7 }
 0x239   : > { %v6768_v19 = vsel %vm5417_vm5, 4294967295, %v6767_v19  ;;  %vm5427_vm11 = vmand %vm842_vm14, %vm6770_vm0  ;;  %4162 = vmatmul.mubr.msk.f32.gmra.mrb[20].mxu1 %vm6774_vm8, %v5243_v46  ;;  %6781 = vst [vmem:[#allocation43_spill] sm:$0xff] %v5451_v7  ;;  %v5461_v14 = vsel %vm5417_vm5, 1.0, %v4763_v12 }
 0x23a   : > { %6769 = vst [vmem:[#allocation39_spill] sm:$0xff] %v6768_v19  ;;  %v6772_v16 = vsel %vm5427_vm11, 4294967295, %v6771_v16  ;;  %v5438_v27 = vsel %vm5427_vm11, 1.0, %v4763_v12  ;;  %vm5442_vm3 = vmand %vm841_vm6, %vm6776_vm1  ;;  %4212 = vmatprep.mubr.msk.f32.mxu0 %vm6623_vm7, %v5461_v14 }
 0x23b   : > { %6773 = vst [vmem:[#allocation40_spill] sm:$0xff] %v6772_v16  ;;  %6775 = vst [vmem:[#allocation41_spill] sm:$0xff] %v5438_v27  ;;  %v6778_v1 = vsel %vm5442_vm3, 4294967295, %v6777_v1  ;;  %v5456_v17 = vsel %vm5442_vm3, 1.0, %v4763_v12  ;;  %v2011_v12 = vld [vmem:[%s6547_s12] sm:$0xff]  ;;  %vm6805_vm3 = vcmask 261120  }
 0x23c   : > { %6779 = vst [vmem:[#allocation42_spill] sm:$0xff] %v6778_v1  ;;  %vm6780_vm14 = vmmov %vm6774_vm8  ;;  %4213 = vmatmul.mubr.msk.f32.gmra.mrb[6].mxu0 %vm6623_vm7, %v5249_v47  ;;  %v4450_v20 = vpack.c.bf16 %v2012_v18, %v2011_v12 }
 0x23d   : > { %4164 = vmatprep.mubr.msk.f32.mxu1 %vm6780_vm14, %v5252_v49  ;;  %6782 = vst [vmem:[#allocation44_spill] sm:$0xff] %v5456_v17  ;;  %6783 = vst [vmem:[#allocation45_spill] sm:$0xff] %v5461_v14  ;;  %4215 = vmatprep.mubr.msk.f32.mxu0 %vm6623_vm7, %v5298_v57 }
 0x23e   : > { %vm6784_vm6 = vmmov %vm6774_vm8  ;;  %4451 = vmatprep.subr.bf16.mxu1 %v4450_v20 }
 0x23f   : > { %4165 = vmatmul.mubr.msk.f32.gmra.mrb[22].mxu1 %vm6784_vm6, %v693_v63 }
 0x240   : > { %4216 = vmatmul.mubr.msk.f32.gmra.mrb[24].mxu0 %vm6623_vm7, %v5280_v53  ;;  %4453 = vmatpush3.bf16.msra.mxu1 %v4450_v20  ;;  %v5540_v53 = vld [vmem:[%s6544_s9] ss:$0 sm:$0xff] }
 0x241   : > { %4218 = vmatprep.mubr.msk.f32.mxu0 %vm6623_vm7, %v5351_v42  ;;  %4455 = vmatprep.subr.bf16.mxu1 %v4454_v23 }
 0x244   : > { %4219 = vmatmul.mubr.msk.f32.gmra.mrb[26].mxu0 %vm6623_vm7, %v5328_v2  ;;  %4457 = vmatpush3.bf16.msra.mxu1 %v4454_v23 }
 0x245   : > { %4221 = vmatprep.mubr.msk.f32.mxu0 %vm6623_vm7, %v5408_v56 }
 0x248   : > { %4222 = vmatmul.mubr.msk.f32.gmra.mrb[28].mxu0 %vm6623_vm7, %v5384_v15 }
 0x249   : > { %4224 = vmatprep.mubr.msk.f32.mxu0 %vm6623_vm7, %v5456_v17 }
 0x24c   : > { %4225 = vmatmul.mubr.msk.f32.gmra.mrb[30].mxu0 %vm6623_vm7, %v5438_v27 }
 0x2de   : > { %v5498_v24 = vpop.f32.mrb[0].mxu1 }
 0x2df   : > { %v5500_v25 = vpop.f32.mrb[1].mxu1 }
 0x2e0   : > { %v4177_v26 = vpop.f32.mrb[8].mxu0 }
 0x2e1   : > { %v1515_v29 = vpop.f32.mrb[9].mxu0 }
 0x2e2   : > { %v5502_v28 = vpop.f32.mrb[2].mxu1  ;;  %v5552_v1 = vadd.f32 %v5540_v53, %v1515_v29 }
 0x2e3   : > { %v5504_v30 = vpop.f32.mrb[3].mxu1 }
 0x2e4   : > { %v4180_v33 = vpop.f32.mrb[10].mxu0 }
 0x2e5   : > { %v1525_v36 = vpop.f32.mrb[11].mxu0 }
 0x2e6   : > { %v5506_v34 = vpop.f32.mrb[4].mxu1 }
 0x2e7   : > { %v5508_v31 = vpop.f32.mrb[5].mxu1 }
 0x2e8   : > { %v4183_v37 = vpop.f32.mrb[12].mxu0 }
 0x2e9   : > { %v1535_v39 = vpop.f32.mrb[13].mxu0 }
 0x2ea   : > { %v5510_v38 = vpop.f32.mrb[6].mxu1 }
 0x2eb   : > { %v5512_v43 = vpop.f32.mrb[7].mxu1 }
 0x2ec   : > { %v4186_v44 = vpop.f32.mrb[14].mxu0 }
 0x2ed   : > { %v1545_v46 = vpop.f32.mrb[15].mxu0 }
 0x2ee   : > { %v4145_v49 = vpop.f32.mrb[8].mxu1 }
 0x2ef   : > { %v1359_v32 = vpop.f32.mrb[9].mxu1  ;;  %v1365_v17 = vadd.f32 %v4145_v49, %v5529_v21 }
 0x2f0   : > { %v5514_v50 = vpop.f32.mrb[16].mxu0  ;;  %v1360_v56 = vadd.f32 %v5529_v21, %v1359_v32  ;;  %v5547_v32 = vadd.f32 %v4177_v26, %v5540_v53  ;;  %v5565_v26 = vadd.f32 %v5540_v53, %v1535_v39 }
 0x2f1   : > { %v5516_v63 = vpop.f32.mrb[17].mxu0 }
 0x2f2   : > { %v4148_v58 = vpop.f32.mrb[10].mxu1 }
 0x2f3   : > { %v1369_v59 = vpop.f32.mrb[11].mxu1  ;;  %v1375_v60 = vadd.f32 %v4148_v58, %v5529_v21  ;;  %v5562_v58 = vadd.f32 %v4183_v37, %v5540_v53 }
 0x2f4   : > { %v5518_v4 = vpop.f32.mrb[18].mxu0  ;;  %v1370_v49 = vadd.f32 %v5529_v21, %v1369_v59 }
 0x2f5   : > { %v5520_v5 = vpop.f32.mrb[19].mxu0 }
 0x2f6   : > { %v4151_v13 = vpop.f32.mrb[12].mxu1 }
 0x2f7   : > { %v1379_v48 = vpop.f32.mrb[13].mxu1  ;;  %v1385_v29 = vadd.f32 %v4151_v13, %v5529_v21 }
 0x2f8   : > { %v5522_v12 = vpop.f32.mrb[20].mxu0  ;;  %v1380_v37 = vadd.f32 %v5529_v21, %v1379_v48 }
 0x2f9   : > { %v5524_v18 = vpop.f32.mrb[21].mxu0 }
 0x2fa   : > { %v4154_v20 = vpop.f32.mrb[14].mxu1 }
 0x2fb   : > { %v1389_v22 = vpop.f32.mrb[15].mxu1  ;;  %v1395_v39 = vadd.f32 %v4154_v20, %v5529_v21 }
 0x2fc   : > { %v5531_v23 = vpop.f32.mrb[22].mxu0  ;;  %v1390_v0 = vadd.f32 %v5529_v21, %v1389_v22  ;;  %v6634_v22 = vmov 1.0  }
 0x2fd   : > { %6785 = vst [vmem:[#allocation46_spill] sm:$0xff] %v5531_v23  ;;  %v5533_v27 = vpop.f32.mrb[23].mxu0 }
 0x2fe   : > { %6786 = vst [vmem:[#allocation47_spill] sm:$0xff] %v5533_v27  ;;  %v4157_v15 = vpop.f32.mrb[16].mxu1 }
 0x2ff   : > { %v1399_v2 = vpop.f32.mrb[17].mxu1 }
 0x300   : > { %v4205_v42 = vpop.f32.mrb[0].mxu0 }
 0x301   : > { %v1788_v57 = vmul.f32 %v4205_v42, %v1365_v17  ;;  %v1708_v47 = vpop.f32.mrb[1].mxu0  ;;  %v5555_v42 = vadd.f32 %v4180_v33, %v5540_v53  ;;  %v5570_v33 = vadd.f32 %v4186_v44, %v5540_v53  ;;  %v5583_v44 = vadd.f32 %v4157_v15, %v5529_v21 }
 0x302   : > { %v1787_v7 = vmul.f32 %v1708_v47, %v1360_v56  ;;  %v5558_v47 = vadd.f32 %v5540_v53, %v1525_v36  ;;  %v5573_v36 = vadd.f32 %v5540_v53, %v1545_v46 }
 0x303   : > { %v5542_v55 = vand.u32 2147483647, %v1788_v57  ;;  %vm1804_vm0 = vcmp.lt.f32.partialorder %v1788_v57, 0.0 }
 0x304   : > { %v5549_v41 = vand.u32 2147483647, %v1787_v7  ;;  %vm1803_vm8 = vcmp.lt.f32.partialorder %v1787_v7, 0.0 }
 0x305   : > { %v4160_v14 = vpop.f32.mrb[18].mxu1  ;;  %v4208_v40 = vpop.f32.mrb[2].mxu0  ;;  %4609 = vrsqrt.f32 %v5542_v55  ;;  %vm1860_vm1 = vcmp.eq.f32.partialorder %v5542_v55, inf  ;;  %v1819_v15 = vsel %vm1803_vm8, -1.0, %v6634_v22  ;;  %vm6787_vm8 = vcmp.eq.f32.partialorder %v5542_v55, 0.0 }
 0x306   : > { %v1409_v62 = vpop.f32.mrb[19].mxu1  ;;  %v1718_v56 = vpop.f32.mrb[3].mxu0  ;;  %4611 = vrsqrt.f32 %v5549_v41  ;;  %v1790_v16 = vmul.f32 %v4208_v40, %v1375_v60  ;;  %v5586_v40 = vadd.f32 %v5529_v21, %v1399_v2  ;;  %v5589_v60 = vadd.f32 %v4160_v14, %v5529_v21 }
 0x307   : > { %v1789_v10 = vmul.f32 %v1718_v56, %v1370_v49  ;;  %v5592_v48 = vadd.f32 %v5529_v21, %v1409_v62  ;;  %v1820_v49 = vsel %vm1804_vm0, -1.0, %v6634_v22  ;;  %vm1853_vm0 = vcmp.eq.f32.partialorder %v5549_v41, inf }
 0x308   : > { %v5578_v61 = vand.u32 2147483647, %v1790_v16  ;;  %vm1806_vm6 = vcmp.lt.f32.partialorder %v1790_v16, 0.0  ;;  %v1856_v52 = vand.u32 2147483648, %v5549_v41 }
 0x309   : > { %v5580_v13 = vand.u32 2147483647, %v1789_v10  ;;  %vm1805_vm7 = vcmp.lt.f32.partialorder %v1789_v10, 0.0  ;;  %v1822_v16 = vsel %vm1806_vm6, -1.0, %v6634_v22 }
 0x30a   : > { %4613 = vrsqrt.f32 %v5578_v61  ;;  %v1877_v6 = vand.u32 2147483648, %v5578_v61 }
 0x30b   : > { %v4211_v8 = vpop.f32.mrb[4].mxu0  ;;  %4615 = vrsqrt.f32 %v5580_v13  ;;  %vm1869_vm6 = vcmp.eq.f32.partialorder %v5580_v13, 0.0 }
 0x30c   : > { %v4163_v17 = vpop.f32.mrb[20].mxu1  ;;  %v1792_v46 = vmul.f32 %v4211_v8, %v1385_v29  ;;  %v1728_v54 = vpop.f32.mrb[5].mxu0  ;;  %v1863_v8 = vand.u32 2147483648, %v5542_v55 }
 0x30d   : > { %v1419_v59 = vpop.f32.mrb[21].mxu1  ;;  %v1791_v14 = vmul.f32 %v1728_v54, %v1380_v37  ;;  %v5619_v45 = vadd.f32 %v4163_v17, %v5529_v21 }
 0x30e   : > { %v5607_v57 = vand.u32 2147483647, %v1792_v46  ;;  %v5622_v54 = vadd.f32 %v5529_v21, %v1419_v59  ;;  %vm1808_vm14 = vcmp.lt.f32.partialorder %v1792_v46, 0.0 }
 0x30f   : > { %v4214_v62 = vpop.f32.mrb[6].mxu0  ;;  %v4610_v7 = vpop.eup %4609  ;;  %v1824_v11 = vsel %vm1808_vm14, -1.0, %v6789_v9  ;;  %vm6790_vm14 = vcmp.eq.f32.partialorder %v5578_v61, inf }
 0x310   : > { %v5609_v56 = vmul.f32 %v4214_v62, %v1395_v39  ;;  %v1738_v29 = vpop.f32.mrb[7].mxu0  ;;  %4617 = vrsqrt.f32 %v5607_v57  ;;  %v4612_v37 = vpop.eup %4611  ;;  %v1859_v39 = vmul.f32 %v4610_v7, %v5542_v55  ;;  %v5628_v62 = vand.u32 2147483647, %v1791_v14 }
 0x311   : > { %v5614_v19 = vmul.f32 %v1738_v29, %v1390_v0  ;;  %v1821_v0 = vsel %vm1805_vm7, -1.0, %v6634_v22  ;;  %v1852_v3 = vmul.f32 %v4612_v37, %v5549_v41  ;;  %v1870_v22 = vand.u32 2147483648, %v5580_v13 }
 0x312   : > { %v5594_v20 = vpop.f32.mrb[22].mxu1  ;;  %v5633_v17 = vand.u32 2147483647, %v5609_v56  ;;  %v1861_v7 = vsel %vm1860_vm1, %v5542_v55, %v1859_v39  ;;  %4619 = vrsqrt.f32 %v5628_v62  ;;  %vm6788_vm1 = vcmp.eq.f32.partialorder %v5549_v41, 0.0 }
 0x313   : > { %v5601_v2 = vpop.f32.mrb[23].mxu1  ;;  %v4217_v29 = vpop.f32.mrb[24].mxu0  ;;  %v1864_v10 = vsel %vm6787_vm8, %v1863_v8, %v1861_v7  ;;  %v1854_v46 = vsel %vm1853_vm0, %v5549_v41, %v1852_v3  ;;  %vm1807_vm7 = vcmp.lt.f32.partialorder %v1791_v14, 0.0  ;;  %v5654_v3 = vand.u32 2147483647, %v5614_v19 }
 0x314   : > { %v1748_v59 = vpop.f32.mrb[25].mxu0  ;;  %4621 = vrsqrt.f32 %v5633_v17  ;;  %v1964_v37 = vmul.f32 %v1864_v10, %v1820_v49  ;;  %v1857_v39 = vsel %vm6788_vm1, %v1856_v52, %v1854_v46  ;;  %v4614_v51 = vpop.eup %4613  ;;  %v1754_v41 = vadd.f32 %v4217_v29, %v5498_v24 }
 0x315   : > { %v1963_v55 = vmul.f32 %v1857_v39, %v1819_v15  ;;  %v4616_v7 = vpop.eup %4615  ;;  %v1873_v52 = vmul.f32 %v4614_v51, %v5578_v61  ;;  %v1891_v10 = vand.u32 2147483648, %v5607_v57  ;;  %4623 = vrsqrt.f32 %v5654_v3 }
 0x316   : > { %v5659_v49 = vadd.f32 %v1964_v37, %v5547_v32  ;;  %v1866_v14 = vmul.f32 %v4616_v7, %v5580_v13  ;;  %v1823_v51 = vsel %vm1807_vm7, -1.0, %v6789_v9  ;;  %vm1810_vm1 = vcmp.lt.f32.partialorder %v5609_v56, 0.0 }
 0x317   : > { %v4220_v35 = vpop.f32.mrb[26].mxu0  ;;  %v5665_v15 = vadd.f32 %v1963_v55, %v5552_v1  ;;  %v1875_v32 = vsel %vm6790_vm14, %v5578_v61, %v1873_v52  ;;  %vm6791_vm0 = vcmp.eq.f32.partialorder %v5578_v61, 0.0  ;;  %vm6792_vm8 = vcmp.eq.f32.partialorder %v5580_v13, inf }
 0x318   : > { %v5656_v8 = vpop.f32.mrb[27].mxu0  ;;  %v1878_v37 = vsel %vm6791_vm0, %v1877_v6, %v1875_v32  ;;  %v1868_v39 = vsel %vm6792_vm8, %v5580_v13, %v1866_v14  ;;  %v5685_v55 = vmul.f32 %v1754_v41, %v5583_v44  ;;  %v1749_v29 = vadd.f32 %v1748_v59, %v5500_v25 }
 0x319   : > { %v1966_v52 = vmul.f32 %v1878_v37, %v1822_v16  ;;  %v1871_v46 = vsel %vm1869_vm6, %v1870_v22, %v1868_v39  ;;  %vm1881_vm7 = vcmp.eq.f32.partialorder %v5628_v62, inf  ;;  %v1764_v61 = vadd.f32 %v4220_v35, %v5502_v28 }
 0x31a   : > { %v4618_v1 = vpop.eup %4617  ;;  %v1965_v23 = vmul.f32 %v1871_v46, %v1821_v0  ;;  %v5695_v6 = vand.u32 2147483647, %v5685_v55  ;;  %v6793_v44 = vmax.f32 %v5665_v15, 0.0  ;;  %vm6794_vm8 = vcmask 261120  }
 0x31b   : > { %v5676_v24 = vpop.f32.mrb[28].mxu0  ;;  %v1887_v27 = vmul.f32 %v4618_v1, %v5607_v57  ;;  %v5702_v13 = vadd.f32 %v1966_v52, %v5555_v42  ;;  %vm6795_vm6 = vcmp.eq.f32.partialorder %v5607_v57, inf  ;;  %vm1883_vm0 = vcmp.eq.f32.partialorder %v5628_v62, 0.0  ;;  %vm6797_vm14 = vmmov %vm6794_vm8 }
 0x31c   : > { %v5687_v7 = vpop.f32.mrb[29].mxu0  ;;  %4235 = vmatprep.mubr.msk.f32.mxu1 %vm6794_vm8, %v6793_v44  ;;  %v4620_v16 = vpop.eup %4619  ;;  %v5709_v22 = vmul.f32 %v1749_v29, %v5586_v40  ;;  %v6796_v35 = vmax.f32 %v5659_v49, 0.0  ;;  %v5715_v59 = vadd.f32 %v1965_v23, %v5558_v47  ;;  %vm6798_vm8 = vcmp.eq.f32.partialorder %v5607_v57, 0.0 }
 0x31d   : > { %v1889_v25 = vsel %vm6795_vm6, %v5607_v57, %v1887_v27  ;;  %v1880_v41 = vmul.f32 %v4620_v16, %v5628_v62  ;;  %4625 = vrsqrt.f32 %v5695_v6  ;;  %v1884_v40 = vand.u32 2147483648, %v5628_v62 }
 0x31e   : > { %4236 = vmatmul.mubr.msk.f32.vlgmr.msra.gmra.mrb[24].mxu1 %vm6797_vm14, %v6796_v35  ;;  %v4622_v28 = vpop.eup %4621  ;;  %v1892_v42 = vsel %vm6798_vm8, %v1891_v10, %v1889_v25  ;;  %vm1902_vm6 = vcmp.eq.f32.partialorder %v5633_v17, inf  ;;  %v6659_v32 = vmax.f32 %v5715_v59, 0.0  ;;  %vm1904_vm14 = vcmp.eq.f32.partialorder %v5633_v17, 0.0 }
 0x31f   : > { %v4226_v0 = vpop.f32.mrb[30].mxu0  ;;  %v1968_v14 = vmul.f32 %v1892_v42, %v1824_v11  ;;  %v1901_v46 = vmul.f32 %v4622_v28, %v5633_v17  ;;  %v1882_v23 = vsel %vm1881_vm7, %v5628_v62, %v1880_v41  ;;  %v1905_v47 = vand.u32 2147483648, %v5633_v17  ;;  %v4624_v29 = vpop.eup %4623 }
 0x320   : > { %v1778_v27 = vpop.f32.mrb[31].mxu0  ;;  %v6658_v57 = vmax.f32 %v5702_v13, 0.0  ;;  %v1885_v10 = vsel %vm1883_vm0, %v1884_v40, %v1882_v23  ;;  %v1826_v39 = vsel %vm1810_vm1, -1.0, %v6789_v9  ;;  %v5741_v44 = vand.u32 2147483647, %v5709_v22 }
 0x321   : > { %v5732_v11 = vadd.f32 %v1968_v14, %v5562_v58  ;;  %v1903_v1 = vsel %vm1902_vm6, %v5633_v17, %v1901_v46  ;;  %v1967_v37 = vmul.f32 %v1885_v10, %v1823_v51  ;;  %vm6799_vm7 = vcmask 261120  }
 0x322   : > { %v1906_v52 = vsel %vm1904_vm14, %v1905_v47, %v1903_v1  ;;  %4238 = vmatprep.mubr.msk.f32.mxu1 %vm6799_vm7, %v6659_v32  ;;  %vm1809_vm8 = vcmp.lt.f32.partialorder %v5614_v19, 0.0  ;;  %v1894_v62 = vmul.f32 %v4624_v29, %v5654_v3  ;;  %v5749_v17 = vmul.f32 %v1764_v61, %v5589_v60  ;;  %vm6800_vm0 = vmmov %vm6799_vm7  ;;  %v6864_v32 = vld [vmem:[#allocation32_spill] sm:$0xff] (!%p3841_p10) }
 0x323   : > { %v1970_v58 = vmul.f32 %v1906_v52, %v1826_v39  ;;  %4239 = vmatmul.mubr.msk.f32.gmra.mrb[26].mxu1 %vm6800_vm0, %v6658_v57  ;;  %v5755_v56 = vadd.f32 %v1967_v37, %v5565_v26  ;;  %vm1895_vm1 = vcmp.eq.f32.partialorder %v5654_v3, inf  ;;  %v1898_v51 = vand.u32 2147483648, %v5654_v3 }
 0x324   : > { %4627 = vrsqrt.f32 %v5741_v44  ;;  %v1896_v16 = vsel %vm1895_vm1, %v5654_v3, %v1894_v62  ;;  %vm1897_vm6 = vcmp.eq.f32.partialorder %v5654_v3, 0.0  ;;  %v1435_v60 = vadd.f32 %v5594_v20, %v5529_v21 }
 0x325   : > { %v5761_v19 = vadd.f32 %v1970_v58, %v5570_v33  ;;  %v6657_v61 = vmax.f32 %v5755_v56, 0.0  ;;  %v1825_v26 = vsel %vm1809_vm8, -1.0, %v6789_v9  ;;  %v1899_v25 = vsel %vm1897_vm6, %v1898_v51, %v1896_v16  ;;  %vm6801_vm8 = vmmov %vm6800_vm0 }
 0x326   : > { %v5770_v35 = vand.u32 2147483647, %v5749_v17  ;;  %v6656_v28 = vmax.f32 %v5732_v11, 0.0  ;;  %v1969_v42 = vmul.f32 %v1899_v25, %v1825_v26  ;;  %v1759_v33 = vadd.f32 %v5656_v8, %v5504_v30  ;;  %vm6802_vm6 = vmmov %vm6800_vm0 }
 0x327   : > { %v1774_v3 = vadd.f32 %v5676_v24, %v5506_v34  ;;  %v4626_v41 = vpop.eup %4625  ;;  %vm1812_vm14 = vcmp.lt.f32.partialorder %v5685_v55, 0.0  ;;  %vm1916_vm7 = vcmp.eq.f32.partialorder %v5695_v6, inf  ;;  %v1430_v20 = vadd.f32 %v5529_v21, %v5601_v2  ;;  %4241 = vmatprep.mubr.msk.f32.mxu1 %vm6801_vm8, %v6657_v61 }
 0x328   : > { %4629 = vrsqrt.f32 %v5770_v35  ;;  %v5786_v14 = vadd.f32 %v1969_v42, %v5573_v36  ;;  %v1915_v30 = vmul.f32 %v4626_v41, %v5695_v6  ;;  %v5790_v34 = vmul.f32 %v1759_v33, %v5592_v48  ;;  %4242 = vmatmul.mubr.msk.f32.gmra.mrb[28].mxu1 %vm6800_vm0, %v6656_v28 }
 0x329   : > { %v5793_v8 = vmul.f32 %v1774_v3, %v5619_v45  ;;  %v1919_v21 = vand.u32 2147483648, %v5695_v6  ;;  %v1769_v2 = vadd.f32 %v5687_v7, %v5508_v31  ;;  %v1784_v36 = vadd.f32 %v4226_v0, %v5510_v38 }
 0x32a   : > { %v1779_v24 = vadd.f32 %v1778_v27, %v5512_v43  ;;  %v6655_v40 = vmax.f32 %v5786_v14, 0.0  ;;  %v1917_v48 = vsel %vm1916_vm7, %v5695_v6, %v1915_v30  ;;  %vm1918_vm1 = vcmp.eq.f32.partialorder %v5695_v6, 0.0 }
 0x32b   : > { %v5807_v45 = vand.u32 2147483647, %v5790_v34  ;;  %v6654_v46 = vmax.f32 %v5761_v19, 0.0  ;;  %v1828_v23 = vsel %vm1812_vm14, -1.0, %v6789_v9  ;;  %v1920_v31 = vsel %vm1918_vm1, %v1919_v21, %v1917_v48  ;;  %vm6803_vm14 = vmmov %vm6800_vm0 }
 0x32c   : > { %v5814_v38 = vand.u32 2147483647, %v5793_v8  ;;  %v1972_v43 = vmul.f32 %v1920_v31, %v1828_v23  ;;  %4244 = vmatprep.mubr.msk.f32.mxu1 %vm6802_vm6, %v6655_v40  ;;  %v1561_v6 = vadd.f32 %v5514_v50, %v5540_v53  ;;  %vm1811_vm7 = vcmp.lt.f32.partialorder %v5709_v22, 0.0 }
 0x32d   : > { %4631 = vrsqrt.f32 %v5807_v45  ;;  %4245 = vmatmul.mubr.msk.f32.gmra.mrb[30].mxu1 %vm6803_vm14, %v6654_v46  ;;  %vm1909_vm8 = vcmp.eq.f32.partialorder %v5741_v44, inf  ;;  %v1799_v0 = vmul.f32 %v1769_v2, %v5622_v54  ;;  %v1912_v27 = vand.u32 2147483648, %v5741_v44 }
 0x32e   : > { %v4628_v7 = vpop.eup %4627  ;;  %4633 = vrsqrt.f32 %v5814_v38  ;;  %v5831_v47 = vmul.f32 %v1784_v36, %v1435_v60  ;;  %v5833_v10 = vmul.f32 %v1779_v24, %v1430_v20  ;;  %v5835_v50 = vadd.f32 %v1972_v43, %v1561_v6 }
 0x32f   : > { %v1908_v55 = vmul.f32 %v4628_v7, %v5741_v44  ;;  %vm1911_vm0 = vcmp.eq.f32.partialorder %v5741_v44, 0.0  ;;  %v5839_v29 = vand.u32 2147483647, %v1799_v0  ;;  %v1827_v37 = vsel %vm1811_vm7, -1.0, %v6789_v9 }
 0x330   : > { %v5843_v54 = vand.u32 2147483647, %v5831_v47  ;;  %vm1814_vm1 = vcmp.lt.f32.partialorder %v5749_v17, 0.0  ;;  %v1556_v62 = vadd.f32 %v5540_v53, %v5516_v63  ;;  %vm1930_vm6 = vcmp.eq.f32.partialorder %v5770_v35, inf }
 0x331   : > { %v1910_v1 = vsel %vm1909_vm8, %v5741_v44, %v1908_v55  ;;  %4635 = vrsqrt.f32 %v5839_v29  ;;  %v1933_v44 = vand.u32 2147483648, %v5770_v35  ;;  %v1571_v51 = vadd.f32 %v5518_v4, %v5540_v53 }
 0x332   : > { %v4630_v22 = vpop.eup %4629  ;;  %v1913_v39 = vsel %vm1911_vm0, %v1912_v27, %v1910_v1  ;;  %4637 = vrsqrt.f32 %v5843_v54  ;;  %vm1932_vm14 = vcmp.eq.f32.partialorder %v5770_v35, 0.0  ;;  %v1830_v17 = vsel %vm1814_vm1, -1.0, %v6789_v9 }
 0x333   : > { %v1971_v52 = vmul.f32 %v1913_v39, %v1827_v37  ;;  %v1929_v58 = vmul.f32 %v4630_v22, %v5770_v35  ;;  %v5859_v26 = vand.u32 2147483647, %v5833_v10  ;;  %vm1813_vm7 = vcmp.lt.f32.partialorder %v5790_v34, 0.0 }
 0x334   : > { %vm1923_vm8 = vcmp.eq.f32.partialorder %v5807_v45, inf  ;;  %vm1944_vm1 = vcmp.eq.f32.partialorder %v5814_v38, inf  ;;  %v1947_v21 = vand.u32 2147483648, %v5814_v38  ;;  %v6652_v2 = vmax.f32 %v5835_v50, 0.0 }
 0x335   : > { %v1931_v16 = vsel %vm1930_vm6, %v5770_v35, %v1929_v58  ;;  %v5861_v63 = vadd.f32 %v1971_v52, %v1556_v62  ;;  %vm1925_vm6 = vcmp.eq.f32.partialorder %v5807_v45, 0.0  ;;  %v1926_v35 = vand.u32 2147483648, %v5807_v45 }
 0x336   : > { %v1934_v60 = vsel %vm1932_vm14, %v1933_v44, %v1931_v16  ;;  %4639 = vrsqrt.f32 %v5859_v26  ;;  %vm1815_vm14 = vcmp.lt.f32.partialorder %v1799_v0, 0.0  ;;  %v1829_v36 = vsel %vm1813_vm7, -1.0, %v6789_v9  ;;  %vm6807_vm7 = vmmov %vm6805_vm3 }
 0x337   : > { %v4632_v25 = vpop.eup %4631  ;;  %v1974_v42 = vmul.f32 %v1934_v60, %v1830_v17  ;;  %v6653_v41 = vmax.f32 %v5861_v63, 0.0  ;;  %vm1946_vm0 = vcmp.eq.f32.partialorder %v5814_v38, 0.0  ;;  %v1831_v6 = vsel %vm1815_vm14, -1.0, %v6789_v9  ;;  %v6811_v17 = vld [vmem:[#allocation46_spill] sm:$0xff] }
 0x338   : > { %v4634_v4 = vpop.eup %4633  ;;  %v1922_v33 = vmul.f32 %v4632_v25, %v5807_v45  ;;  %v1940_v0 = vand.u32 2147483648, %v5839_v29  ;;  %v1961_v22 = vand.u32 2147483648, %v5843_v54  ;;  %vm1960_vm14 = vcmp.eq.f32.partialorder %v5843_v54, 0.0 }
 0x339   : > { %v1943_v3 = vmul.f32 %v4634_v4, %v5814_v38  ;;  %v5873_v20 = vadd.f32 %v1974_v42, %v1571_v51  ;;  %4247 = vmatprep.mubr.msk.f32.mxu1 %vm6805_vm3, %v6653_v41  ;;  %vm1937_vm3 = vcmp.eq.f32.partialorder %v5839_v29, inf  ;;  %v1576_v44 = vadd.f32 %v5540_v53, %v5524_v18  ;;  %v6855_v41 = vld [vmem:[#allocation19_spill] sm:$0xff] (!%p3841_p10) }
 0x33a   : > { %v1924_v30 = vsel %vm1923_vm8, %v5807_v45, %v1922_v33  ;;  %v1566_v45 = vadd.f32 %v5540_v53, %v5520_v5  ;;  %vm6806_vm8 = vcmp.lt.f32.partialorder %v5793_v8, 0.0  ;;  %4248 = vmatmul.mubr.msk.f32.gmra.mrb[32].mxu1 %vm6807_vm7, %v6652_v2  ;;  %v1591_v60 = vadd.f32 %v6811_v17, %v5540_v53 }
 0x33b   : > { %6804 = vst [vmem:[#allocation48_spill] sm:$0xff] %v5873_v20  ;;  %v1927_v24 = vsel %vm1925_vm6, %v1926_v35, %v1924_v30  ;;  %v1945_v48 = vsel %vm1944_vm1, %v5814_v38, %v1943_v3  ;;  %v1832_v31 = vsel %vm6806_vm8, -1.0, %v6789_v9  ;;  %v4636_v34 = vpop.eup %4635  ;;  %v1581_v38 = vadd.f32 %v5522_v12, %v5540_v53  ;;  %vm6810_vm8 = vmmov %vm6807_vm7  ;;  %v6815_v3 = vld [vmem:[#allocation47_spill] sm:$0xff] }
 0x33c   : > { %v1973_v23 = vmul.f32 %v1927_v24, %v1829_v36  ;;  %v1948_v43 = vsel %vm1946_vm0, %v1947_v21, %v1945_v48  ;;  %v4638_v55 = vpop.eup %4637  ;;  %v1936_v5 = vmul.f32 %v4636_v34, %v5839_v29  ;;  %vm1818_vm6 = vcmp.lt.f32.partialorder %v5831_v47, 0.0 }
 0x33d   : > { %v1976_v7 = vmul.f32 %v1948_v43, %v1832_v31  ;;  %vm1939_vm0 = vcmp.eq.f32.partialorder %v5839_v29, 0.0  ;;  %v1957_v27 = vmul.f32 %v4638_v55, %v5843_v54  ;;  %vm1958_vm1 = vcmp.eq.f32.partialorder %v5843_v54, inf }
 0x33e   : > { %v5900_v8 = vadd.f32 %v1973_v23, %v1566_v45  ;;  %v1938_v12 = vsel %vm1937_vm3, %v5839_v29, %v1936_v5  ;;  %v6650_v58 = vmax.f32 %v5873_v20, 0.0  ;;  %v1834_v29 = vsel %vm1818_vm6, -1.0, %v6789_v9  ;;  %vm6812_vm3 = vmmov %vm6810_vm8 }
 0x33f   : > { %v5905_v1 = vadd.f32 %v1976_v7, %v1581_v38  ;;  %v1941_v39 = vsel %vm1939_vm0, %v1940_v0, %v1938_v12  ;;  %v1959_v52 = vsel %vm1958_vm1, %v5843_v54, %v1957_v27  ;;  %vm1817_vm7 = vcmp.lt.f32.partialorder %v5833_v10, 0.0  ;;  %vm6816_vm1 = vmmov %vm6812_vm3 }
 0x340   : > { %6808 = vst [vmem:[#allocation49_spill] sm:$0xff] %v5900_v8  ;;  %v6651_v37 = vmax.f32 %v5900_v8, 0.0  ;;  %v4640_v62 = vpop.eup %4639  ;;  %v1975_v51 = vmul.f32 %v1941_v39, %v1831_v6  ;;  %v1962_v16 = vsel %vm1960_vm14, %v1961_v22, %v1959_v52  ;;  %vm1951_vm0 = vcmp.eq.f32.partialorder %v5859_v26, inf  ;;  %vm6817_vm14 = vmmov %vm6816_vm1 }
 0x341   : > { %6809 = vst [vmem:[#allocation50_spill] sm:$0xff] %v5905_v1  ;;  %v1978_v54 = vmul.f32 %v1962_v16, %v1834_v29  ;;  %v1950_v25 = vmul.f32 %v4640_v62, %v5859_v26  ;;  %v1954_v18 = vand.u32 2147483648, %v5859_v26  ;;  %vm1953_vm6 = vcmp.eq.f32.partialorder %v5859_v26, 0.0 }
 0x342   : > { %4250 = vmatprep.mubr.msk.f32.mxu1 %vm6810_vm8, %v6651_v37  ;;  %v5931_v47 = vadd.f32 %v1975_v51, %v1576_v44  ;;  %v1833_v10 = vsel %vm1817_vm7, -1.0, %v6789_v9  ;;  %v1586_v30 = vadd.f32 %v5540_v53, %v6815_v3  ;;  %v6648_v36 = vmax.f32 %v5905_v1, 0.0  ;;  %vm6819_vm8 = vmmov %vm6816_vm1  ;;  %v6848_v37 = vld [vmem:[#allocation39_spill] sm:$0xff] (!%p3841_p10) }
 0x343   : > { %4251 = vmatmul.mubr.msk.f32.gmra.mrb[34].mxu1 %vm6812_vm3, %v6650_v58  ;;  %v1952_v42 = vsel %vm1951_vm0, %v5859_v26, %v1950_v25  ;;  %v5935_v4 = vadd.f32 %v1978_v54, %v1591_v60  ;;  %vm6820_vm7 = vmmov %vm6816_vm1  ;;  %v4765_v39 = vmov (!%p3841_p10), 0   ;;  %v4766_v52 = vmov (!%p3841_p10), 1   ;;  %v6837_v60 = vld [vmem:[#allocation16_spill] sm:$0xff] (!%p3841_p10)  ;;  %v6847_v58 = vld [vmem:[#allocation14_spill] sm:$0xff] (!%p3841_p10) }
 0x344   : > { %6813 = vst [vmem:[#allocation46_spill] sm:$0xff] %v5931_v47  ;;  %v1955_v33 = vsel %vm1953_vm6, %v1954_v18, %v1952_v42  ;;  %v6649_v35 = vmax.f32 %v5931_v47, 0.0  ;;  %4642 = vset.pattern.permute.xlu1 (!%p3841_p10), %v4765_v39  ;;  %4641 = vset.pattern.permute.xlu0 (!%p3841_p10), %v4765_v39  ;;  %v4767_v62 = vmov (!%p3841_p10), 2   ;;  %v4768_v44 = vmov (!%p3841_p10), 3  }
 0x345   : > { %6814 = vst [vmem:[#allocation51_spill] sm:$0xff] %v5935_v4  ;;  %v1977_v21 = vmul.f32 %v1955_v33, %v1833_v10  ;;  %v6646_v24 = vmax.f32 %v5935_v4, 0.0  ;;  %vm6839_vm3 = vcmask (!%p3841_p10), 130048  }
 0x346   : > { %4253 = vmatprep.mubr.msk.f32.mxu1 %vm6816_vm1, %v6649_v35  ;;  %vm6840_vm0 = vmmov (!%p3841_p10), %vm6839_vm3 }
 0x347   : > { %4254 = vmatmul.mubr.msk.f32.gmra.mrb[36].mxu1 %vm6817_vm14, %v6648_v36  ;;  %v5948_v26 = vadd.f32 %v1977_v21, %v1586_v30  ;;  %v6841_v30 = vld [vmem:[#allocation36_spill] sm:$0xff] (!%p3841_p10)  ;;  %vm6843_vm6 = vmmov (!%p3841_p10), %vm6840_vm0 }
 0x348   : > { %vm6844_vm1 = vmmov (!%p3841_p10), %vm6840_vm0 }
 0x349   : > { %6818 = vst [vmem:[#allocation47_spill] sm:$0xff] %v5948_v26  ;;  %v6647_v9 = vmax.f32 %v5948_v26, 0.0  ;;  %vm6849_vm14 = vmmov (!%p3841_p10), %vm6840_vm0 }
 0x34b   : > { %4256 = vmatprep.mubr.msk.f32.mxu1 %vm6819_vm8, %v6647_v9  ;;  %v6846_v9 = vld [vmem:[#allocation28_spill] sm:$0xff] (!%p3841_p10)  ;;  %vm6850_vm8 = vmmov (!%p3841_p10), %vm6840_vm0 }
 0x34c   : > { %4257 = vmatmul.mubr.msk.f32.gmra.mrb[38].mxu1 %vm6820_vm7, %v6646_v24  ;;  %vm6851_vm7 = vmmov (!%p3841_p10), %vm6840_vm0 }
 0x3f1   : > { %v5958_v53 = vpop.f32.mrb[24].mxu1 }
 0x3f2   : > { %6821 = vst [vmem:[#allocation52_spill] sm:$0xff] %v5958_v53  ;;  %v5960_v48 = vpop.f32.mrb[25].mxu1 }
 0x3f3   : > { %6822 = vst [vmem:[#allocation53_spill] sm:$0xff] %v5960_v48  ;;  %2213 = vperm.xlu0 (!%p3841_p10), %4641, %v5960_v48  }
 0x3f6   : > { %v5962_v45 = vpop.f32.mrb[26].mxu1 }
 0x3f7   : > { %6823 = vst [vmem:[#allocation54_spill] sm:$0xff] %v5962_v45  ;;  %v5964_v23 = vpop.f32.mrb[27].mxu1  ;;  %2218 = vperm.xlu0 (!%p3841_p10), %4641, %v5958_v53  }
 0x3f8   : > { %6824 = vst [vmem:[#allocation55_spill] sm:$0xff] %v5964_v23  ;;  %2223 = vperm.xlu1 (!%p3841_p10), %4642, %v5964_v23  }
 0x3fb   : > { %v5966_v31 = vpop.f32.mrb[28].mxu1 }
 0x3fc   : > { %6825 = vst [vmem:[#allocation56_spill] sm:$0xff] %v5966_v31  ;;  %v5968_v43 = vpop.f32.mrb[29].mxu1  ;;  %2228 = vperm.xlu1 (!%p3841_p10), %4642, %v5962_v45  }
 0x3fd   : > { %6826 = vst [vmem:[#allocation57_spill] sm:$0xff] %v5968_v43  ;;  %2233 = vperm.xlu0 (!%p3841_p10), %4641, %v5968_v43  }
 0x400   : > { %v5970_v34 = vpop.f32.mrb[30].mxu1  ;;  %2238 = vperm.xlu1 (!%p3841_p10), %4642, %v5966_v31  }
 0x401   : > { %6827 = vst [vmem:[#allocation58_spill] sm:$0xff] %v5970_v34  ;;  %v5972_v38 = vpop.f32.mrb[31].mxu1 }
 0x402   : > { %6828 = vst [vmem:[#allocation59_spill] sm:$0xff] %v5972_v38  ;;  %2243 = vperm.xlu0 (!%p3841_p10), %4641, %v5972_v38  }
 0x404   : > { %2248 = vperm.xlu1 (!%p3841_p10), %4642, %v5970_v34  }
 0x40d   : > { %v5974_v7 = vpop.f32.mrb[32].mxu1 }
 0x40e   : > { %6829 = vst [vmem:[#allocation60_spill] sm:$0xff] %v5974_v7  ;;  %v5976_v6 = vpop.f32.mrb[33].mxu1  ;;  %2258 = vperm.xlu1 (!%p3841_p10), %4642, %v5974_v7  }
 0x40f   : > { %6830 = vst [vmem:[#allocation61_spill] sm:$0xff] %v5976_v6  ;;  %2253 = vperm.xlu0 (!%p3841_p10), %4641, %v5976_v6  }
 0x416   : > { %v5978_v55 = vpop.f32.mrb[34].mxu1 }
 0x417   : > { %6831 = vst [vmem:[#allocation62_spill] sm:$0xff] %v5978_v55  ;;  %v5980_v5 = vpop.f32.mrb[35].mxu1  ;;  %2268 = vperm.xlu1 (!%p3841_p10), %4642, %v5978_v55  }
 0x418   : > { %6832 = vst [vmem:[#allocation63_spill] sm:$0xff] %v5980_v5  ;;  %2263 = vperm.xlu0 (!%p3841_p10), %4641, %v5980_v5  }
 0x41a   : > { %v5982_v0 = vpop.f32.mrb[36].mxu1 }
 0x41b   : > { %6833 = vst [vmem:[#allocation64_spill] sm:$0xff] %v5982_v0  ;;  %v5984_v27 = vpop.f32.mrb[37].mxu1  ;;  %2210 = sbr.rel (%p3841_p10) target bundleno = 1323 (0x52b), region = 84  ;;  %2278 = vperm.xlu1 (!%p3841_p10), %4642, %v5982_v0  }
 0x41c   : > { %6834 = vst [vmem:[#allocation65_spill] sm:$0xff] %v5984_v27  ;;  %2273 = vperm.xlu0 (!%p3841_p10), %4641, %v5984_v27  }
 0x41f   : > { %v5986_v12 = vpop.f32.mrb[38].mxu1 }
 0x420   : > { %6835 = vst [vmem:[#allocation66_spill] sm:$0xff] %v5986_v12  ;;  %v5988_v22 = vpop.f32.mrb[39].mxu1  ;;  %2288 = vperm.xlu1 (!%p3841_p10), %4642, %v5986_v12  }
 0x421   : > { %6836 = vst [vmem:[#allocation67_spill] sm:$0xff] %v5988_v22  ;;  %2283 = vperm.xlu0 (!%p3841_p10), %4641, %v5988_v22  }
 0x424   : > { %4644 = vset.pattern.permute.xlu1 %v4766_v52 }
 0x425   : > { %4643 = vset.pattern.permute.xlu0 %v4766_v52  ;;  %2349 = vperm.xlu1 %4644, %v5958_v53  }
 0x426   : > { %2345 = vperm.xlu0 %4643, %v5960_v48  }
 0x429   : > { %2353 = vperm.xlu1 %4644, %v5964_v23  }
 0x42a   : > { %2357 = vperm.xlu0 %4643, %v5962_v45  }
 0x42d   : > { %2361 = vperm.xlu1 %4644, %v5968_v43  }
 0x42e   : > { %2365 = vperm.xlu0 %4643, %v5966_v31  }
 0x431   : > { %2369 = vperm.xlu1 %4644, %v5972_v38  }
 0x432   : > { %2373 = vperm.xlu0 %4643, %v5970_v34  }
 0x435   : > { %2377 = vperm.xlu1 %4644, %v5976_v6  }
 0x436   : > { %2381 = vperm.xlu0 %4643, %v5974_v7  }
 0x439   : > { %2385 = vperm.xlu1 %4644, %v5980_v5  }
 0x43a   : > { %2389 = vperm.xlu0 %4643, %v5978_v55  }
 0x43d   : > { %2393 = vperm.xlu1 %4644, %v5984_v27  }
 0x43e   : > { %2397 = vperm.xlu0 %4643, %v5982_v0  }
 0x441   : > { %2401 = vperm.xlu1 %4644, %v5988_v22  }
 0x442   : > { %2405 = vperm.xlu0 %4643, %v5986_v12  }
 0x445   : > { %4645 = vset.pattern.permute.xlu1 %v4767_v62 }
 0x446   : > { %4646 = vset.pattern.permute.xlu0 %v4767_v62  ;;  %2462 = vperm.xlu1 %4645, %v5960_v48  }
 0x447   : > { %2466 = vperm.xlu0 %4646, %v5958_v53  }
 0x44a   : > { %2470 = vperm.xlu1 %4645, %v5964_v23  }
 0x44b   : > { %2478 = vperm.xlu0 %4646, %v5968_v43  }
 0x44e   : > { %2474 = vperm.xlu1 %4645, %v5962_v45  }
 0x44f   : > { %2486 = vperm.xlu0 %4646, %v5972_v38  }
 0x452   : > { %2482 = vperm.xlu1 %4645, %v5966_v31  }
 0x453   : > { %2494 = vperm.xlu0 %4646, %v5976_v6  }
 0x456   : > { %2490 = vperm.xlu1 %4645, %v5970_v34  }
 0x457   : > { %2498 = vperm.xlu0 %4646, %v5974_v7  }
 0x45a   : > { %4647 = vset.pattern.permute.xlu1 %v4768_v44 }
 0x45b   : > { %2514 = vperm.xlu0 %4646, %v5982_v0   ;;  %2579 = vperm.xlu1 %4647, %v5960_v48  }
 0x45f   : > { %4651 = vset.pattern.permute.xlu0 %v4768_v44  ;;  %2587 = vperm.xlu1 %4647, %v5964_v23  }
 0x460   : > { %2583 = vperm.xlu0 %4651, %v5958_v53  }
 0x463   : > { %2591 = vperm.xlu1 %4647, %v5962_v45  }
 0x464   : > { %2595 = vperm.xlu0 %4651, %v5968_v43  }
 0x467   : > { %2599 = vperm.xlu1 %4647, %v5966_v31  }
 0x468   : > { %2603 = vperm.xlu0 %4651, %v5972_v38  }
 0x46b   : > { %2607 = vperm.xlu1 %4647, %v5970_v34  }
 0x46c   : > { %2611 = vperm.xlu0 %4651, %v5976_v6  }
 0x46f   : > { %4648 = vset.pattern.permute.xlu1 %v4767_v62 }
 0x470   : > { %2623 = vperm.xlu0 %4651, %v5978_v55   ;;  %2502 = vperm.xlu1 %4648, %v5980_v5  }
 0x472   : > { %v2214_v29 = vpop.permute.xlu0 %2213 }
 0x473   : > { %v2291_v54 = vsel %vm5258_vm12, %v2214_v29, -1e+30 }
 0x474   : > { %2627 = vperm.xlu0 %4651, %v5984_v27   ;;  %2506 = vperm.xlu1 %4648, %v5978_v55   ;;  %v2307_v42 = vsel %vm6839_vm3, %v2291_v54, -inf  ;;  %vm6852_vm3 = vmmov %vm6840_vm0 }
 0x476   : > { %v2219_v17 = vpop.permute.xlu0 %2218 }
 0x477   : > { %v2224_v51 = vpop.permute.xlu1 %2223  ;;  %v2292_v18 = vsel %vm5291_vm2, %v2219_v17, -1e+30 }
 0x478   : > { %2639 = vperm.xlu0 %4651, %v5986_v12   ;;  %4649 = vset.pattern.permute.xlu1 %v4768_v44  ;;  %v2308_v10 = vsel %vm6840_vm0, %v2292_v18, -inf  ;;  %v2293_v17 = vsel %vm5308_vm10, %v2224_v51, -1e+30 }
 0x479   : > { %2615 = vperm.xlu1 %4649, %v5974_v7  }
 0x47b   : > { %v2229_v16 = vpop.permute.xlu1 %2228 }
 0x47c   : > { %v2234_v3 = vpop.permute.xlu0 %2233  ;;  %v2294_v54 = vsel %vm5344_vm9, %v2229_v16, -1e+30 }
 0x47d   : > { %2619 = vperm.xlu1 %4649, %v5980_v5   ;;  %v2295_v52 = vsel %vm5362_vm4, %v2234_v3, -1e+30  ;;  %v2310_v51 = vsel %vm6850_vm8, %v2294_v54, -inf }
 0x47e   : > { %v2311_v29 = vsel %vm6844_vm1, %v2295_v52, -inf  ;;  %v2309_v52 = vsel %vm6849_vm14, %v2293_v17, -inf  ;;  %vm6857_vm14 = vmmov %vm6844_vm1 }
 0x47f   : > { %v2239_v33 = vpop.permute.xlu1 %2238  ;;  %v2312_v18 = vmax.f32 %v2307_v42, %v2311_v29  ;;  %v6853_v29 = vld [vmem:[#allocation17_spill] sm:$0xff] }
 0x480   : > { %v2296_v21 = vsel %vm5401_vm13, %v2239_v33, -1e+30  ;;  %vm6854_vm0 = vnez %v6853_v29 }
 0x481   : > { %4650 = vset.pattern.permute.xlu1 %v4767_v62  ;;  %v2313_v62 = vsel %vm6843_vm6, %v2296_v21, -inf  ;;  %v2244_v33 = vpop.permute.xlu0 %2243  ;;  %vm6856_vm6 = vnez %v6855_v41 }
 0x482   : > { %2510 = vperm.xlu1 %4650, %v5984_v27   ;;  %v2314_v36 = vmax.f32 %v2308_v10, %v2313_v62  ;;  %v2297_v21 = vsel %vm5417_vm5, %v2244_v33, -1e+30 }
 0x483   : > { %v2249_v35 = vpop.permute.xlu1 %2248  ;;  %v2315_v16 = vsel %vm6852_vm3, %v2297_v21, -inf  ;;  %vm6862_vm3 = vmmov %vm6844_vm1 }
 0x484   : > { %v2298_v3 = vsel %vm5236_vm15, %v2249_v35, -1e+30 }
 0x485   : > { %v2317_v2 = vsel %vm6851_vm7, %v2298_v3, -inf }
 0x486   : > { %2518 = vperm.xlu1 %4650, %v5988_v22   ;;  %v2318_v42 = vmax.f32 %v2310_v51, %v2317_v2  ;;  %v6858_v2 = vld [vmem:[#allocation24_spill] sm:$0xff]  ;;  %v6860_v51 = vld [vmem:[#allocation26_spill] sm:$0xff] }
 0x487   : > { %vm6859_vm8 = vnez %v6858_v2  ;;  %vm6861_vm7 = vnez %v6860_v51 }
 0x48a   : > { %2522 = vperm.xlu1 %4650, %v5986_v12  }
 0x48d   : > { %v2259_v10 = vpop.permute.xlu1 %2258 }
 0x48e   : > { %4652 = vset.pattern.permute.xlu1 %v4768_v44  ;;  %v2316_v44 = vmax.f32 %v2309_v52, %v2315_v16  ;;  %v2254_v62 = vpop.permute.xlu0 %2253  ;;  %v2300_v35 = vsel %vm6854_vm0, %v2259_v10, -1e+30  ;;  %vm6863_vm0 = vmmov %vm6844_vm1 }
 0x48f   : > { %2631 = vperm.xlu1 %4652, %v5982_v0   ;;  %v2299_v33 = vsel %vm6856_vm6, %v2254_v62, -1e+30  ;;  %v2321_v17 = vsel %vm6844_vm1, %v2300_v35, -inf  ;;  %vm6865_vm1 = vnez %v6864_v32  ;;  %vm6868_vm6 = vmmov %vm6863_vm0 }
 0x490   : > { %v2319_v54 = vsel %vm6857_vm14, %v2299_v33, -inf  ;;  %v2322_v46 = vmax.f32 %v2314_v36, %v2321_v17 }
 0x491   : > { %v2320_v3 = vmax.f32 %v2312_v18, %v2319_v54  ;;  %v6866_v18 = vld [vmem:[#allocation34_spill] sm:$0xff] }
 0x492   : > { %vm6867_vm14 = vnez %v6866_v18 }
 0x493   : > { %2635 = vperm.xlu1 %4652, %v5988_v22  }
 0x496   : > { %v2269_v40 = vpop.permute.xlu1 %2268 }
 0x497   : > { %v2264_v21 = vpop.permute.xlu0 %2263  ;;  %v2302_v52 = vsel %vm6859_vm8, %v2269_v40, -1e+30  ;;  %vm6869_vm8 = vmmov %vm6863_vm0 }
 0x498   : > { %v2301_v16 = vsel %vm6861_vm7, %v2264_v21, -1e+30  ;;  %v2325_v28 = vsel %vm6862_vm3, %v2302_v52, -inf }
 0x499   : > { %v2323_v10 = vsel %vm6863_vm0, %v2301_v16, -inf  ;;  %v2326_v61 = vmax.f32 %v2318_v42, %v2325_v28  ;;  %v6870_v16 = vld [vmem:[#allocation40_spill] sm:$0xff]  ;;  %v6871_v42 = vld [vmem:[#allocation42_spill] sm:$0xff] }
 0x49a   : > { %v2324_v62 = vmax.f32 %v2316_v44, %v2323_v10  ;;  %v2279_v57 = vpop.permute.xlu1 %2278  ;;  %vm6872_vm0 = vnez %v6871_v42 }
 0x49b   : > { %v2274_v35 = vpop.permute.xlu0 %2273  ;;  %v2304_v36 = vsel %vm6865_vm1, %v2279_v57, -1e+30  ;;  %vm6873_vm1 = vmmov %vm6862_vm3 }
 0x49c   : > { %v2303_v33 = vsel %vm6867_vm14, %v2274_v35, -1e+30  ;;  %v2329_v17 = vsel %vm6868_vm6, %v2304_v36, -inf  ;;  %vm6874_vm6 = vmmov %vm6873_vm1 }
 0x49d   : > { %v2327_v40 = vsel %vm6869_vm8, %v2303_v33, -inf  ;;  %v2330_v54 = vmax.f32 %v2322_v46, %v2329_v17  ;;  %vm6875_vm8 = vmmov %vm6873_vm1 }
 0x49e   : > { %v2328_v21 = vmax.f32 %v2320_v3, %v2327_v40 }
 0x49f   : > { %v2289_v22 = vpop.permute.xlu1 %2288 }
 0x4a0   : > { %v2284_v52 = vpop.permute.xlu0 %2283  ;;  %v2335_v12 = vmax.f32 %v2328_v21, %v2330_v54  ;;  %v2306_v28 = vsel %vm5427_vm11, %v2289_v22, -1e+30 }
 0x4a1   : > { %v2305_v44 = vsel %vm6872_vm0, %v2284_v52, -1e+30  ;;  %v2333_v57 = vsel %vm6862_vm3, %v2306_v28, -inf  ;;  %vm6876_vm3 = vmmov %vm6873_vm1 }
 0x4a2   : > { %v2331_v10 = vsel %vm6873_vm1, %v2305_v44, -inf  ;;  %v2334_v35 = vmax.f32 %v2326_v61, %v2333_v57 }
 0x4a3   : > { %v2332_v27 = vmax.f32 %v2324_v62, %v2331_v10 }
 0x4a4   : > { %v2350_v0 = vpop.permute.xlu1 %2349 }
 0x4a5   : > { %v2336_v36 = vmax.f32 %v2332_v27, %v2334_v35  ;;  %v2346_v33 = vpop.permute.xlu0 %2345  ;;  %v2409_v22 = vsel %vm5291_vm2, %v2350_v0, -1e+30 }
 0x4a6   : > { %v2408_v40 = vsel %vm5258_vm12, %v2346_v33, -1e+30  ;;  %vm6878_vm12 = vmmov %vm6873_vm1 }
 0x4a7   : > { %v2337_v46 = vmax.f32 %v2335_v12, %v2336_v36  ;;  %v2424_v54 = vsel %vm6874_vm6, %v2408_v40, -inf  ;;  %v2425_v12 = vsel %vm6875_vm8, %v2409_v22, -inf  ;;  %vm6877_vm6 = vmmov %vm6873_vm1  ;;  %vm6879_vm8 = vnez %v6855_v41 }
 0x4a8   : > { %v2354_v3 = vpop.permute.xlu1 %2353 }
 0x4a9   : > { %v2358_v17 = vpop.permute.xlu0 %2357  ;;  %v2410_v44 = vsel %vm5308_vm10, %v2354_v3, -1e+30 }
 0x4aa   : > { %v2426_v33 = vsel %vm6877_vm6, %v2410_v44, -inf  ;;  %vm6881_vm6 = vmmov %vm6873_vm1 }
 0x4ac   : > { %v2362_v21 = vpop.permute.xlu1 %2361 }
 0x4ad   : > { %v2366_v52 = vpop.permute.xlu0 %2365  ;;  %v2412_v61 = vsel %vm5362_vm4, %v2362_v21, -1e+30 }
 0x4ae   : > { %v2413_v27 = vsel %vm5401_vm13, %v2366_v52, -1e+30  ;;  %v2428_v62 = vsel %vm6873_vm1, %v2412_v61, -inf  ;;  %v2411_v61 = vsel %vm5344_vm9, %v2358_v17, -1e+30  ;;  %vm6884_vm9 = vmmov %vm6873_vm1 }
 0x4af   : > { %v2430_v28 = vsel %vm6876_vm3, %v2413_v27, -inf  ;;  %v2429_v0 = vmax.f32 %v2424_v54, %v2428_v62  ;;  %vm6880_vm3 = vnez %v6853_v29 }
 0x4b0   : > { %v2431_v57 = vmax.f32 %v2425_v12, %v2430_v28  ;;  %v2370_v10 = vpop.permute.xlu1 %2369  ;;  %v2427_v28 = vsel %vm6881_vm6, %v2411_v61, -inf  ;;  %vm6886_vm6 = vnez %v6864_v32 }
 0x4b1   : > { %v2374_v35 = vpop.permute.xlu0 %2373  ;;  %v2414_v36 = vsel %vm5417_vm5, %v2370_v10, -1e+30 }
 0x4b2   : > { %v2432_v40 = vsel %vm6878_vm12, %v2414_v36, -inf  ;;  %v2415_v3 = vsel %vm5236_vm15, %v2374_v35, -1e+30  ;;  %vm6882_vm12 = vmmov %vm6873_vm1  ;;  %vm6883_vm15 = vnez %v6858_v2 }
 0x4b3   : > { %v2433_v21 = vmax.f32 %v2426_v33, %v2432_v40  ;;  %v2434_v44 = vsel %vm6882_vm12, %v2415_v3, -inf  ;;  %vm6887_vm12 = vmmov %vm6873_vm1 }
 0x4b4   : > { %v2378_v22 = vpop.permute.xlu1 %2377 }
 0x4b5   : > { %v2382_v52 = vpop.permute.xlu0 %2381  ;;  %v2416_v54 = vsel %vm6879_vm8, %v2378_v22, -1e+30  ;;  %vm6885_vm8 = vmmov %vm6873_vm1 }
 0x4b6   : > { %v2436_v27 = vsel %vm6873_vm1, %v2416_v54, -inf  ;;  %v2417_v62 = vsel %vm6880_vm3, %v2382_v52, -1e+30 }
 0x4b7   : > { %v2437_v12 = vmax.f32 %v2429_v0, %v2436_v27  ;;  %v2438_v33 = vsel %vm6884_vm9, %v2417_v62, -inf  ;;  %v2435_v0 = vmax.f32 %v2427_v28, %v2434_v44  ;;  %v2338_v62 = vrot.slane %v2337_v46, 4  ;;  %vm6889_vm9 = vmmov %vm6873_vm1 }
 0x4b8   : > { %v2386_v10 = vpop.permute.xlu1 %2385  ;;  %v2439_v27 = vmax.f32 %v2431_v57, %v2438_v33 }
 0x4b9   : > { %v2390_v36 = vpop.permute.xlu0 %2389  ;;  %v2418_v17 = vsel %vm6861_vm7, %v2386_v10, -1e+30 }
 0x4ba   : > { %v2419_v35 = vsel %vm6883_vm15, %v2390_v36, -1e+30  ;;  %v2440_v40 = vsel %vm6885_vm8, %v2418_v17, -inf  ;;  %vm6888_vm15 = vmmov %vm6873_vm1 }
 0x4bb   : > { %v2441_v22 = vmax.f32 %v2433_v21, %v2440_v40  ;;  %v2442_v52 = vsel %vm6873_vm1, %v2419_v35, -inf  ;;  %vm6890_vm8 = vmmov %vm6873_vm1  ;;  %vm6891_vm1 = vnez %v6837_v60 }
 0x4bc   : > { %v2394_v54 = vpop.permute.xlu1 %2393  ;;  %v2443_v55 = vmax.f32 %v2435_v0, %v2442_v52 }
 0x4bd   : > { %v2398_v61 = vpop.permute.xlu0 %2397  ;;  %v2420_v3 = vsel %vm6867_vm14, %v2394_v54, -1e+30 }
 0x4be   : > { %v2421_v10 = vsel %vm6886_vm6, %v2398_v61, -1e+30  ;;  %v2444_v5 = vsel %vm6887_vm12, %v2420_v3, -inf  ;;  %v2339_v61 = vmax.f32 %v2337_v46, %v2338_v62  ;;  %vm6892_vm12 = vmmov %vm6890_vm8 }
 0x4bf   : > { %v2446_v36 = vsel %vm6888_vm15, %v2421_v10, -inf  ;;  %v2445_v17 = vmax.f32 %v2437_v12, %v2444_v5  ;;  %vm2695_vm15 = vcmask 1040384  }
 0x4c0   : > { %v2447_v28 = vmax.f32 %v2439_v27, %v2446_v36  ;;  %v2402_v21 = vpop.permute.xlu1 %2401  ;;  %v2340_v12 = vrot.slane %v2339_v61, 2 }
 0x4c1   : > { %v2406_v44 = vpop.permute.xlu0 %2405  ;;  %v2422_v57 = vsel %vm6872_vm0, %v2402_v21, -1e+30 }
 0x4c2   : > { %v2452_v35 = vmax.f32 %v2445_v17, %v2447_v28  ;;  %v2423_v33 = vsel %vm5427_vm11, %v2406_v44, -1e+30  ;;  %v2448_v40 = vsel %vm6889_vm9, %v2422_v57, -inf  ;;  %v2341_v28 = vmax.f32 %v2339_v61, %v2340_v12  ;;  %vm6893_vm9 = vmmov %vm6890_vm8 }
 0x4c3   : > { %v2450_v54 = vsel %vm6890_vm8, %v2423_v33, -inf  ;;  %v2449_v3 = vmax.f32 %v2441_v22, %v2448_v40  ;;  %vm6895_vm11 = vnez %v6846_v9 }
 0x4c4   : > { %v2451_v10 = vmax.f32 %v2443_v55, %v2450_v54  ;;  %v2342_v44 = vrot.slane %v2341_v28, 1 }
 0x4c5   : > { %v2463_v0 = vpop.permute.xlu1 %2462 }
 0x4c6   : > { %v2453_v6 = vmax.f32 %v2449_v3, %v2451_v10  ;;  %v2467_v5 = vpop.permute.xlu0 %2466  ;;  %v2343_v46 = vmax.f32 %v2341_v28, %v2342_v44  ;;  %v2525_v23 = vsel %vm6891_vm1, %v2463_v0, -1e+30 }
 0x4c7   : > { %v2526_v44 = vsel %vm5291_vm2, %v2467_v5, -1e+30 }
 0x4c8   : > { %v2454_v52 = vmax.f32 %v2452_v35, %v2453_v6  ;;  %v2542_v45 = vsel %vm6892_vm12, %v2526_v44, -inf  ;;  %vm6896_vm12 = vnez %v6847_v58 }
 0x4c9   : > { %v2471_v36 = vpop.permute.xlu1 %2470 }
 0x4ca   : > { %v2455_v27 = vrot.slane %v2454_v52, 4  ;;  %v2479_v17 = vpop.permute.xlu0 %2478  ;;  %v2527_v48 = vsel %vm5308_vm10, %v2471_v36, -1e+30 }
 0x4cc   : > { %v2456_v21 = vmax.f32 %v2454_v52, %v2455_v27 }
 0x4cd   : > { %v2475_v38 = vpop.permute.xlu1 %2474 }
 0x4ce   : > { %v2457_v7 = vrot.slane %v2456_v21, 2  ;;  %v2487_v57 = vpop.permute.xlu0 %2486  ;;  %v2528_v0 = vsel %vm6895_vm11, %v2475_v38, -1e+30 }
 0x4d0   : > { %v2458_v34 = vmax.f32 %v2456_v21, %v2457_v7 }
 0x4d1   : > { %v2483_v33 = vpop.permute.xlu1 %2482 }
 0x4d2   : > { %v2459_v43 = vrot.slane %v2458_v34, 1  ;;  %v2495_v40 = vpop.permute.xlu0 %2494 }
 0x4d4   : > { %v2460_v55 = vmax.f32 %v2458_v34, %v2459_v43 }
 0x4d5   : > { %v2491_v62 = vpop.permute.xlu1 %2490 }
 0x4d6   : > { %v6151_v22 = vsel %vm2695_vm15, %v2343_v46, %v2460_v55  ;;  %v2499_v35 = vpop.permute.xlu0 %2498  ;;  %v2529_v46 = vsel %vm5362_vm4, %v2479_v17, -1e+30  ;;  %v2530_v55 = vsel %vm5401_vm13, %v2483_v33, -1e+30  ;;  %v2531_v17 = vsel %vm5417_vm5, %v2487_v57, -1e+30 }
 0x4d7   : > { %v2534_v53 = vsel %vm6880_vm3, %v2499_v35, -1e+30  ;;  %v2545_v5 = vsel %vm6893_vm9, %v2529_v46, -inf  ;;  %v2547_v33 = vsel %vm6890_vm8, %v2530_v55, -inf  ;;  %vm6894_vm15 = vnez %v6855_v41  ;;  %vm6897_vm9 = vmmov %vm6890_vm8 }
 0x4d8   : > { %v2533_v4 = vsel %vm6894_vm15, %v2495_v40, -1e+30  ;;  %v2532_v44 = vsel %vm6896_vm12, %v2491_v62, -1e+30  ;;  %v2541_v46 = vsel %vm6897_vm9, %v2525_v23, -inf  ;;  %vm6898_vm3 = vmmov %vm6890_vm8  ;;  %v2548_v47 = vmax.f32 %v2542_v45, %v2547_v33 }
 0x4d9   : > { %v2543_v57 = vsel %vm6898_vm3, %v2527_v48, -inf  ;;  %vm6899_vm5 = vmmov %vm6898_vm3  ;;  %v2546_v1 = vmax.f32 %v2541_v46, %v2545_v5  ;;  %vm6914_vm9 = vnez %v6847_v58 }
 0x4da   : > { %v2580_v6 = vpop.permute.xlu1 %2579  ;;  %v2515_v3 = vpop.permute.xlu0 %2514  ;;  %v2555_v55 = vsel %vm6899_vm5, %v2534_v53, -inf  ;;  %vm6900_vm8 = vmmov %vm6898_vm3  ;;  %vm6905_vm5 = vnez %v6858_v2 }
 0x4db   : > { %v2538_v36 = vsel %vm6886_vm6, %v2515_v3, -1e+30  ;;  %v2549_v40 = vsel %vm6900_vm8, %v2531_v17, -inf  ;;  %vm6901_vm15 = vmmov %vm6898_vm3  ;;  %v2642_v23 = vsel %vm6891_vm1, %v2580_v6, -1e+30  ;;  %v2556_v8 = vmax.f32 %v2548_v47, %v2555_v55 }
 0x4dc   : > { %v2553_v38 = vsel %vm6901_vm15, %v2533_v4, -inf  ;;  %vm6902_vm13 = vmmov %vm6898_vm3  ;;  %v2550_v4 = vmax.f32 %v2543_v57, %v2549_v40 }
 0x4dd   : > { %v2544_v62 = vsel %vm6902_vm13, %v2528_v0, -inf  ;;  %vm6903_vm12 = vmmov %vm6898_vm3  ;;  %v2554_v5 = vmax.f32 %v2546_v1, %v2553_v38 }
 0x4de   : > { %v2588_v54 = vpop.permute.xlu1 %2587  ;;  %v2551_v20 = vsel %vm6903_vm12, %v2532_v44, -inf  ;;  %vm6904_vm6 = vmmov %vm6898_vm3  ;;  %vm6913_vm12 = vnez %v6848_v37 }
 0x4df   : > { %v2584_v12 = vpop.permute.xlu0 %2583  ;;  %v2563_v3 = vsel %vm6904_vm6, %v2538_v36, -inf  ;;  %v2644_v17 = vsel %vm5308_vm10, %v2588_v54, -1e+30  ;;  %v2552_v6 = vmax.f32 %v2544_v62, %v2551_v20  ;;  %vm6906_vm13 = vmmov %vm6898_vm3 }
 0x4e0   : > { %v2643_v33 = vsel %vm5291_vm2, %v2584_v12, -1e+30  ;;  %v2564_v47 = vmax.f32 %v2556_v8, %v2563_v3  ;;  %vm6907_vm6 = vmmov %vm6898_vm3 }
 0x4e1   : > { %vm6908_vm10 = vmmov %vm6898_vm3 }
 0x4e2   : > { %v6153_v61 = vpop.permute.xlu1 %2591  ;;  %vm6909_vm1 = vmmov %vm6898_vm3 }
 0x4e3   : > { %v2596_v52 = vpop.permute.xlu0 %2595  ;;  %v2660_v25 = vsel %vm6909_vm1, %v2644_v17, -inf  ;;  %vm6910_vm2 = vmmov %vm6909_vm1  ;;  %v2645_v8 = vsel %vm6895_vm11, %v6153_v61, -1e+30  ;;  %vm6916_vm11 = vnez %v6870_v16 }
 0x4e4   : > { %v2659_v20 = vsel %vm6910_vm2, %v2643_v33, -inf  ;;  %vm6912_vm15 = vmmov %vm6909_vm1 }
 0x4e5   : > { %vm6915_vm8 = vmmov %vm6909_vm1 }
 0x4e6   : > { %v6155_v10 = vpop.permute.xlu1 %2599  ;;  %vm6921_vm2 = vmmov %vm6909_vm1 }
 0x4e7   : > { %v6159_v28 = vpop.permute.xlu0 %2603 }
 0x4ea   : > { %v6157_v7 = vpop.permute.xlu1 %2607 }
 0x4eb   : > { %v6163_v34 = vpop.permute.xlu0 %2611  ;;  %v2649_v44 = vsel %vm6914_vm9, %v6157_v7, -1e+30  ;;  %vm6926_vm9 = vmmov %vm6909_vm1 }
 0x4ef   : > { %v2503_v27 = vpop.permute.xlu1 %2502  ;;  %v6192_v35 = vpop.permute.xlu0 %2623 }
 0x4f0   : > { %v2535_v53 = vsel %vm6861_vm7, %v2503_v27, -1e+30  ;;  %v2646_v27 = vsel %vm5362_vm4, %v2596_v52, -1e+30  ;;  %vm6911_vm4 = vnez %v6841_v30  ;;  %v2648_v52 = vsel %vm6913_vm12, %v6159_v28, -1e+30  ;;  %vm6924_vm12 = vmmov %vm6909_vm1 }
 0x4f1   : > { %v2557_v1 = vsel %vm6898_vm3, %v2535_v53, -inf  ;;  %v2647_v39 = vsel %vm6911_vm4, %v6155_v10, -1e+30  ;;  %v2662_v12 = vsel %vm6912_vm15, %v2646_v27, -inf  ;;  %vm6918_vm3 = vnez %v6855_v41  ;;  %vm6922_vm4 = vmmov %vm6909_vm1 }
 0x4f2   : > { %v2558_v57 = vmax.f32 %v2550_v4, %v2557_v1  ;;  %v2650_v37 = vsel %vm6918_vm3, %v6163_v34, -1e+30  ;;  %v2664_v55 = vsel %vm6909_vm1, %v2647_v39, -inf  ;;  %v2666_v3 = vsel %vm6921_vm2, %v2648_v52, -inf  ;;  %vm6923_vm15 = vmmov %vm6909_vm1 }
 0x4f3   : > { %v2507_v21 = vpop.permute.xlu1 %2506  ;;  %v2628_v0 = vpop.permute.xlu0 %2627  ;;  %v2653_v41 = vsel %vm6905_vm5, %v6192_v35, -1e+30  ;;  %v2665_v4 = vmax.f32 %v2659_v20, %v2664_v55  ;;  %vm2697_vm3 = vcmask 1041408  }
 0x4f4   : > { %v2536_v48 = vsel %vm6905_vm5, %v2507_v21, -1e+30  ;;  %vm6925_vm5 = vnez %v6864_v32  ;;  %v2676_v51 = vsel %vm6926_vm9, %v2653_v41, -inf }
 0x4f5   : > { %v2559_v24 = vsel %vm6907_vm6, %v2536_v48, -inf  ;;  %vm6919_vm6 = vnez %v6853_v29 }
 0x4f6   : > { %v2560_v9 = vmax.f32 %v2552_v6, %v2559_v24 }
 0x4f7   : > { %v2640_v40 = vpop.permute.xlu0 %2639 }
 0x4f8   : > { %v6161_v43 = vpop.permute.xlu1 %2615  ;;  %v2657_v17 = vsel %vm6916_vm11, %v2640_v40, -1e+30 }
 0x4f9   : > { %v2651_v58 = vsel %vm6919_vm6, %v6161_v43, -1e+30  ;;  %v2670_v43 = vsel %vm6923_vm15, %v2650_v37, -inf  ;;  %vm2703_vm6 = vcmask 125952  }
 0x4fa   : > { %v2672_v34 = vsel %vm6924_vm12, %v2651_v58, -inf }
 0x4fc   : > { %v6171_v31 = vpop.permute.xlu1 %2619 }
 0x4fd   : > { %v2652_v29 = vsel %vm6861_vm7, %v6171_v31, -1e+30  ;;  %vm6927_vm7 = vmmov %vm6909_vm1 }
 0x4fe   : > { %v2674_v31 = vsel %vm6927_vm7, %v2652_v29, -inf }
 0x501   : > { %v2511_v26 = vpop.permute.xlu1 %2510 }
 0x502   : > { %v2537_v45 = vsel %vm6867_vm14, %v2511_v26, -1e+30  ;;  %v2658_v26 = vsel %vm6906_vm13, %v2642_v23, -inf  ;;  %vm6917_vm13 = vmmov %vm6909_vm1  ;;  %v2668_v23 = vsel %vm6922_vm4, %v2649_v44, -inf }
 0x503   : > { %v2561_v54 = vsel %vm6908_vm10, %v2537_v45, -inf  ;;  %v2661_v10 = vsel %vm6917_vm13, %v2645_v8, -inf  ;;  %vm6920_vm10 = vmmov %vm6909_vm1  ;;  %v2663_v28 = vmax.f32 %v2658_v26, %v2662_v12 }
 0x504   : > { %v2562_v61 = vmax.f32 %v2554_v5, %v2561_v54  ;;  %v2654_v5 = vsel %vm6867_vm14, %v2628_v0, -1e+30  ;;  %v2669_v6 = vmax.f32 %v2661_v10, %v2668_v23  ;;  %vm6929_vm13 = vmmov %vm6909_vm1 }
 0x505   : > { %v2519_v60 = vpop.permute.xlu1 %2518  ;;  %v2671_v27 = vmax.f32 %v2663_v28, %v2670_v43  ;;  %v2678_v18 = vsel %vm6929_vm13, %v2654_v5, -inf  ;;  %vm6930_vm14 = vmmov %vm6909_vm1 }
 0x506   : > { %v2539_v21 = vsel %vm6872_vm0, %v2519_v60, -1e+30  ;;  %v2569_v53 = vmax.f32 %v2562_v61, %v2564_v47  ;;  %v2667_v60 = vmax.f32 %v2660_v25, %v2666_v3  ;;  %v2673_v47 = vmax.f32 %v2665_v4, %v2672_v34 }
 0x507   : > { %v2565_v36 = vsel %vm6915_vm8, %v2539_v21, -inf  ;;  %vm6928_vm8 = vmmov %vm6909_vm1  ;;  %v2684_v0 = vsel %vm6930_vm14, %v2657_v17, -inf  ;;  %v2677_v26 = vmax.f32 %v2669_v6, %v2676_v51  ;;  %v2679_v8 = vmax.f32 %v2671_v27, %v2678_v18 }
 0x508   : > { %v2566_v38 = vmax.f32 %v2558_v57, %v2565_v36  ;;  %v2675_v32 = vmax.f32 %v2667_v60, %v2674_v31 }
 0x509   : > { %v2523_v46 = vpop.permute.xlu1 %2522  ;;  %v2685_v25 = vmax.f32 %v2677_v26, %v2684_v0 }
 0x50a   : > { %v2540_v30 = vsel %vm6916_vm11, %v2523_v46, -1e+30  ;;  %vm6931_vm11 = vmmov %vm6909_vm1 }
 0x50b   : > { %v2567_v7 = vsel %vm6920_vm10, %v2540_v30, -inf }
 0x50c   : > { %v2568_v62 = vmax.f32 %v2560_v9, %v2567_v7  ;;  %v2701_v7 = vld [vmem:[#allocation4] sm:$0xf] }
 0x50e   : > { %v2570_v48 = vmax.f32 %v2566_v38, %v2568_v62  ;;  %v2632_v45 = vpop.permute.xlu1 %2631 }
 0x50f   : > { %v2655_v2 = vsel %vm6925_vm5, %v2632_v45, -1e+30 }
 0x510   : > { %v2571_v35 = vmax.f32 %v2569_v53, %v2570_v48  ;;  %v2680_v33 = vsel %vm6928_vm8, %v2655_v2, -inf }
 0x511   : > { %v2681_v1 = vmax.f32 %v2673_v47, %v2680_v33 }
 0x512   : > { %v2572_v16 = vrot.slane %v2571_v35, 4  ;;  %v2636_v21 = vpop.permute.xlu1 %2635 }
 0x513   : > { %v2656_v24 = vsel %vm6872_vm0, %v2636_v21, -1e+30  ;;  %v2686_v52 = vmax.f32 %v2679_v8, %v2681_v1  ;;  %vm2699_vm0 = vcmask 1042432  }
 0x514   : > { %v2573_v54 = vmax.f32 %v2571_v35, %v2572_v16  ;;  %v2682_v20 = vsel %vm6931_vm11, %v2656_v24, -inf }
 0x515   : > { %v2683_v39 = vmax.f32 %v2675_v32, %v2682_v20 }
 0x516   : > { %v2574_v12 = vrot.slane %v2573_v54, 2 }
 0x517   : > { %v2687_v44 = vmax.f32 %v2683_v39, %v2685_v25 }
 0x518   : > { %v2575_v36 = vmax.f32 %v2573_v54, %v2574_v12 }
 0x519   : > { %v2688_v46 = vmax.f32 %v2686_v52, %v2687_v44 }
 0x51a   : > { %v2576_v57 = vrot.slane %v2575_v36, 1 }
 0x51b   : > { %v2689_v9 = vrot.slane %v2688_v46, 4 }
 0x51c   : > { %v2577_v61 = vmax.f32 %v2575_v36, %v2576_v57 }
 0x51d   : > { %v2690_v30 = vmax.f32 %v2688_v46, %v2689_v9 }
 0x51e   : > { %v2698_v10 = vsel %vm2697_vm3, %v6151_v22, %v2577_v61 }
 0x51f   : > { %v2691_v42 = vrot.slane %v2690_v30, 2 }
 0x521   : > { %v2692_v37 = vmax.f32 %v2690_v30, %v2691_v42 }
 0x523   : > { %v2693_v58 = vrot.slane %v2692_v37, 1 }
 0x525   : > { %v2694_v28 = vmax.f32 %v2692_v37, %v2693_v58 }
 0x527   : > { %v2700_v55 = vsel %vm2699_vm0, %v2698_v10, %v2694_v28 }
 0x528   : > { %v2702_v40 = vmax.f32 %v2701_v7, %v2700_v55 }
 0x52a   : > { %2704 = vst.msk [vmem:[#allocation4] sm:$0xf] %vm2703_vm6, %v2702_v40 }
 0x52b PF: > { %p2705_p11 = scmp.eq.s32.totalorder %s4745_s19, 1  ;;  %p3842_p12 = scmp.ne.s32.totalorder %s4745_s19, 1 }
 0x52c   : > { %v6932_v62 = vld [vmem:[#allocation22_spill] sm:$0xff] (!%p3842_p12)  ;;  %vm6933_vm10 = vcmask (!%p3842_p12), 130048   ;;  %v6936_v22 = vld [vmem:[#allocation27_spill] sm:$0xff] (!%p3842_p12)  ;;  %v6946_v43 = vld [vmem:[#allocation45_spill] sm:$0xff] (!%p3842_p12)  ;;  %v6966_v31 = vmax.f32 (!%p3842_p12), %v5665_v15, 0.0  ;;  %v6968_v27 = vmax.f32 (!%p3842_p12), %v5659_v49, 0.0 }
 0x52d   : > { %2708 = sbr.rel (%p3842_p12) target bundleno = 2065 (0x811), region = 88  ;;  %4261 = vmatprep.mubr.msk.f32.mxu0 (!%p3842_p12), %vm6933_vm10, %v6932_v62  ;;  %2908 = vxpose.xlu0.b32.start [1/16] (narrow) (!%p3842_p12), %v6932_v62, 16  ;;  %vm6934_vm1 = vmmov (!%p3842_p12), %vm6933_vm10  ;;  %v6938_v3 = vld [vmem:[#allocation30_spill] sm:$0xff] (!%p3842_p12)  ;;  %v6940_v23 = vld [vmem:[#allocation35_spill] sm:$0xff] (!%p3842_p12)  ;;  %v6970_v18 = vmax.f32 (!%p3842_p12), %v5715_v59, 0.0  ;;  %v6972_v0 = vmax.f32 (!%p3842_p12), %v5702_v13, 0.0 }
 0x52e   : > { %vm6935_vm2 = vmmov (!%p3842_p12), %vm6934_vm1  ;;  %v6942_v41 = vld [vmem:[#allocation38_spill] sm:$0xff] (!%p3842_p12)  ;;  %v6944_v29 = vld [vmem:[#allocation43_spill] sm:$0xff] (!%p3842_p12)  ;;  %v6974_v16 = vmax.f32 (!%p3842_p12), %v5755_v56, 0.0  ;;  %v6976_v21 = vmax.f32 (!%p3842_p12), %v5732_v11, 0.0  ;;  %v6978_v49 = vmax.f32 (!%p3842_p12), %v5786_v14, 0.0  ;;  %v6980_v59 = vmax.f32 (!%p3842_p12), %v5761_v19, 0.0 }
 0x52f   : > { %vm6937_vm4 = vmmov (!%p3842_p12), %vm6934_vm1  ;;  %v6948_v34 = vld [vmem:[#allocation15_spill] sm:$0xff] (!%p3842_p12)  ;;  %v6950_v53 = vld [vmem:[#allocation21_spill] sm:$0xff] (!%p3842_p12)  ;;  %v6982_v13 = vmax.f32 (!%p3842_p12), %v5861_v63, 0.0  ;;  %v6984_v56 = vmax.f32 (!%p3842_p12), %v5835_v50, 0.0  ;;  %s7020_s27 = sld [smem:[#allocation69_spill]] (!%p3842_p12) }
 0x530   : > { %vm6939_vm15 = vmmov (!%p3842_p12), %vm6934_vm1  ;;  %v6952_v48 = vld [vmem:[#allocation18_spill] sm:$0xff] (!%p3842_p12)  ;;  %v6954_v45 = vld [vmem:[#allocation29_spill] sm:$0xff] (!%p3842_p12) }
 0x531   : > { %v2709_v38 = vld [vmem:[#allocation4] sm:$0xf] (!%p3842_p12)  ;;  %2909 = vxpose.xlu0.b32.cont [2/16] (narrow) (!%p3842_p12), %v6936_v22, 16  ;;  %vm6941_vm12 = vmmov (!%p3842_p12), %vm6934_vm1  ;;  %v6962_v2 = vld [vmem:[#allocation44_spill] sm:$0xff] (!%p3842_p12) }
 0x532   : > { %4259 = vmatprep.subr.msk.mxu0 (!%p3842_p12), %vm6934_vm1, %v2709_v38  ;;  %vm6943_vm5 = vmmov (!%p3842_p12), %vm6934_vm1  ;;  %v6956_v4 = vld [vmem:[#allocation25_spill] sm:$0xff] (!%p3842_p12)  ;;  %v3021_v35 = vld [vmem:[%s6545_s10 + $0x8] sm:$0xff] (!%p3842_p12) }
 0x533   : > { %4260 = vmatpush3.xpose.msk.msra.mxu0 (!%p3842_p12), %vm6935_vm2, %v2709_v38  ;;  %vm6945_vm9 = vmmov (!%p3842_p12), %vm6934_vm1  ;;  %v6958_v5 = vld [vmem:[#allocation37_spill] sm:$0xff] (!%p3842_p12)  ;;  %vm6967_vm2 = vcmask (!%p3842_p12), 261120   ;;  %v3022_v60 = vld [vmem:[%s6545_s10 + $0x10] sm:$0xff] (!%p3842_p12) }
 0x534   : > { %vm6947_vm7 = vmmov %vm6934_vm1  ;;  %v6960_v17 = vld [vmem:[#allocation33_spill] sm:$0xff]  ;;  %v6989_v32 = vld [vmem:[#allocation48_spill] sm:$0xff] }
 0x535   : > { %2910 = vxpose.xlu0.b32.cont [3/16] (narrow) %v6938_v3, 16  ;;  %vm6949_vm8 = vmmov %vm6934_vm1  ;;  %v6964_v51 = vld [vmem:[#allocation41_spill] sm:$0xff]  ;;  %v6990_v14 = vmax.f32 %v6989_v32, 0.0  ;;  %v6992_v1 = vld [vmem:[#allocation46_spill] sm:$0xff] }
 0x536   : > { %4262 = vmatmul.mubr.msk.f32.vlgmr.msra.gmra.mrb[0].mxu0 %vm6937_vm4, %v6936_v22  ;;  %vm6951_vm13 = vmmov %vm6934_vm1  ;;  %v3020_v15 = vld [vmem:[%s6545_s10] sm:$0xff]  ;;  %v3023_v6 = vld [vmem:[%s6545_s10 + $0x18] sm:$0xff]  ;;  %v6993_v19 = vmax.f32 %v6992_v1, 0.0 }
 0x537   : > { %4264 = vmatprep.mubr.msk.f32.mxu0 %vm6939_vm15, %v6938_v3  ;;  %vm6953_vm14 = vmmov %vm6934_vm1  ;;  %v4490_v33 = vpack.c.bf16 %v3021_v35, %v3020_v15  ;;  %v4494_v47 = vpack.c.bf16 %v3023_v6, %v3022_v60  ;;  %v6986_v26 = vld [vmem:[#allocation49_spill] sm:$0xff]  ;;  %v6995_v24 = vld [vmem:[#allocation50_spill] sm:$0xff] }
 0x538   : > { %vm6955_vm11 = vmmov %vm6934_vm1  ;;  %v6987_v11 = vmax.f32 %v6986_v26, 0.0  ;;  %v6996_v63 = vmax.f32 %v6995_v24, 0.0  ;;  %v6998_v54 = vld [vmem:[#allocation47_spill] sm:$0xff]  ;;  %v7004_v12 = vld [vmem:[#allocation52_spill] sm:$0xff] }
 0x539   : > { %2911 = vxpose.xlu0.b32.cont [4/16] (narrow) %v6940_v23, 16  ;;  %vm6957_vm3 = vmmov %vm6934_vm1  ;;  %4491 = vmatprep.subr.bf16.mxu0 %v4490_v33  ;;  %v6999_v50 = vmax.f32 %v6998_v54, 0.0  ;;  %v7001_v8 = vld [vmem:[#allocation51_spill] sm:$0xff]  ;;  %v7005_v36 = vld [vmem:[#allocation53_spill] sm:$0xff] }
 0x53a   : > { %4265 = vmatmul.mubr.msk.f32.gmra.mrb[2].mxu0 %vm6941_vm12, %v6940_v23  ;;  %vm6959_vm0 = vmmov %vm6934_vm1  ;;  %v7002_v25 = vmax.f32 %v7001_v8, 0.0  ;;  %v7006_v30 = vld [vmem:[#allocation54_spill] sm:$0xff]  ;;  %v7007_v37 = vld [vmem:[#allocation55_spill] sm:$0xff] }
 0x53b   : > { %4267 = vmatprep.mubr.msk.f32.mxu0 %vm6943_vm5, %v6942_v41  ;;  %vm6961_vm6 = vmmov %vm6959_vm0  ;;  %4493 = vmatpush3.bf16.msra.mxu0 %v4490_v33  ;;  %v7008_v40 = vld [vmem:[#allocation56_spill] sm:$0xff]  ;;  %v7009_v22 = vld [vmem:[#allocation57_spill] sm:$0xff] }
 0x53c   : > { %vm6963_vm10 = vmmov %vm6959_vm0  ;;  %4495 = vmatprep.subr.bf16.mxu0 %v4494_v47  ;;  %v7013_v60 = vld [vmem:[#allocation61_spill] sm:$0xff]  ;;  %v7016_v24 = vld [vmem:[#allocation64_spill] sm:$0xff] }
 0x53d   : > { %2912 = vxpose.xlu0.b32.cont [5/16] (narrow) %v6942_v41, 16  ;;  %vm6965_vm1 = vmmov %vm6959_vm0 }
 0x53e   : > { %4268 = vmatmul.mubr.msk.f32.gmra.mrb[4].mxu0 %vm6945_vm9, %v6944_v29  ;;  %vm6969_vm4 = vmmov %vm6967_vm2 }
 0x53f   : > { %4270 = vmatprep.mubr.msk.f32.mxu0 %vm6947_vm7, %v6946_v43  ;;  %4497 = vmatpush3.bf16.msra.mxu0 %v4494_v47  ;;  %vm6971_vm15 = vmmov %vm6967_vm2 }
 0x540   : > { %vm6973_vm12 = vmmov %vm6967_vm2 }
 0x541   : > { %2913 = vxpose.xlu0.b32.cont [6/16] (narrow) %v6944_v29, 16  ;;  %vm6975_vm5 = vmmov %vm6967_vm2 }
 0x542   : > { %4271 = vmatmul.mubr.msk.f32.gmra.mrb[6].mxu0 %vm6949_vm8, %v6948_v34  ;;  %vm6977_vm9 = vmmov %vm6967_vm2 }
 0x543   : > { %4273 = vmatprep.mubr.msk.f32.mxu0 %vm6951_vm13, %v6950_v53  ;;  %vm6979_vm7 = vmmov %vm6967_vm2 }
 0x544   : > { %vm6981_vm8 = vmmov %vm6967_vm2 }
 0x545   : > { %2914 = vxpose.xlu0.b32.cont [7/16] (narrow) %v6946_v43, 16  ;;  %vm6983_vm13 = vmmov %vm6967_vm2  ;;  %v7010_v43 = vld [vmem:[#allocation58_spill] sm:$0xff] }
 0x546   : > { %4274 = vmatmul.mubr.msk.f32.gmra.mrb[8].mxu0 %vm6953_vm14, %v6952_v48  ;;  %vm6985_vm14 = vmmov %vm6967_vm2 }
 0x547   : > { %4276 = vmatprep.mubr.msk.f32.mxu0 %vm6955_vm11, %v6954_v45  ;;  %vm6988_vm11 = vmmov %vm6967_vm2 }
 0x549   : > { %2915 = vxpose.xlu0.b32.cont [8/16] (narrow) %v6948_v34, 16 }
 0x54a   : > { %4277 = vmatmul.mubr.msk.f32.gmra.mrb[10].mxu0 %vm6957_vm3, %v6956_v4  ;;  %vm6991_vm3 = vmmov %vm6967_vm2 }
 0x54b   : > { %4279 = vmatprep.mubr.msk.f32.mxu0 %vm6959_vm0, %v6958_v5  ;;  %vm6994_vm0 = vmmov %vm6967_vm2 }
 0x54d   : > { %2916 = vxpose.xlu0.b32.cont [9/16] (narrow) %v6950_v53, 16 }
 0x54e   : > { %4280 = vmatmul.mubr.msk.f32.gmra.mrb[12].mxu0 %vm6961_vm6, %v6960_v17  ;;  %vm6997_vm6 = vmmov %vm6994_vm0 }
 0x54f   : > { %4282 = vmatprep.mubr.msk.f32.mxu0 %vm6963_vm10, %v6962_v2  ;;  %vm7000_vm10 = vmmov %vm6994_vm0 }
 0x551   : > { %2917 = vxpose.xlu0.b32.cont [10/16] (narrow) %v6952_v48, 16  ;;  %v7011_v48 = vld [vmem:[#allocation59_spill] sm:$0xff] }
 0x552   : > { %4283 = vmatmul.mubr.msk.f32.gmra.mrb[14].mxu0 %vm6965_vm1, %v6964_v51  ;;  %vm7003_vm1 = vmmov %vm6994_vm0 }
 0x553   : > { %4328 = vmatprep.mubr.msk.f32.mxu0 %vm6967_vm2, %v6966_v31  ;;  %v7012_v31 = vld [vmem:[#allocation60_spill] sm:$0xff]  ;;  %vm3241_vm2 = vcmask 1043456  }
 0x555   : > { %2918 = vxpose.xlu0.b32.cont [11/16] (narrow) %v6954_v45, 16 }
 0x556   : > { %4329 = vmatmul.mubr.msk.f32.vlgmr.msra.gmra.mrb[16].mxu0 %vm6969_vm4, %v6968_v27  ;;  %vm3017_vm4 = vcmask 31744  }
 0x557   : > { %4331 = vmatprep.mubr.msk.f32.mxu0 %vm6971_vm15, %v6970_v18  ;;  %vm7021_vm15 = vmmov %vm6994_vm0 }
 0x559   : > { %2919 = vxpose.xlu0.b32.cont [12/16] (narrow) %v6956_v4, 16 }
 0x55a   : > { %4332 = vmatmul.mubr.msk.f32.gmra.mrb[18].mxu0 %vm6973_vm12, %v6972_v0  ;;  %vm7022_vm12 = vmmov %vm6994_vm0 }
 0x55b   : > { %4334 = vmatprep.mubr.msk.f32.mxu0 %vm6975_vm5, %v6974_v16  ;;  %vm7023_vm5 = vmmov %vm6994_vm0 }
 0x55d   : > { %2920 = vxpose.xlu0.b32.cont [13/16] (narrow) %v6958_v5, 16 }
 0x55e   : > { %4335 = vmatmul.mubr.msk.f32.gmra.mrb[20].mxu0 %vm6977_vm9, %v6976_v21  ;;  %v7014_v21 = vld [vmem:[#allocation62_spill] sm:$0xff]  ;;  %vm7024_vm9 = vmmov %vm6994_vm0 }
 0x55f   : > { %4337 = vmatprep.mubr.msk.f32.mxu0 %vm6979_vm7, %v6978_v49  ;;  %vm7025_vm7 = vmmov %vm6994_vm0 }
 0x561   : > { %2921 = vxpose.xlu0.b32.cont [14/16] (narrow) %v6960_v17, 16 }
 0x562   : > { %4338 = vmatmul.mubr.msk.f32.gmra.mrb[22].mxu0 %vm6981_vm8, %v6980_v59  ;;  %vm7026_vm8 = vmmov %vm6994_vm0 }
 0x563   : > { %4340 = vmatprep.mubr.msk.f32.mxu0 %vm6983_vm13, %v6982_v13  ;;  %vm7027_vm13 = vmmov %vm6994_vm0 }
 0x565   : > { %2922 = vxpose.xlu0.b32.cont [15/16] (narrow) %v6962_v2, 16 }
 0x566   : > { %4341 = vmatmul.mubr.msk.f32.gmra.mrb[24].mxu0 %vm6985_vm14, %v6984_v56  ;;  %v7015_v56 = vld [vmem:[#allocation63_spill] sm:$0xff]  ;;  %vm7028_vm14 = vmmov %vm6994_vm0 }
 0x567   : > { %4343 = vmatprep.mubr.msk.f32.mxu0 %vm6988_vm11, %v6987_v11  ;;  %vm7029_vm11 = vmmov %vm6994_vm0 }
 0x569   : > { %2923 = vxpose.xlu0.b32.end [16/16] (narrow) %v6964_v51, 16 }
 0x56a   : > { %4344 = vmatmul.mubr.msk.f32.gmra.mrb[26].mxu0 %vm6991_vm3, %v6990_v14  ;;  %vm7030_vm3 = vmmov %vm6994_vm0 }
 0x56b   : > { %4346 = vmatprep.mubr.msk.f32.mxu0 %vm6994_vm0, %v6993_v19 }
 0x56e   : > { %4347 = vmatmul.mubr.msk.f32.gmra.mrb[28].mxu0 %vm6997_vm6, %v6996_v63  ;;  %vm7031_vm6 = vmmov %vm6994_vm0 }
 0x56f   : > { %4349 = vmatprep.mubr.msk.f32.mxu0 %vm7000_vm10, %v6999_v50  ;;  %vm7032_vm10 = vmmov %vm6994_vm0 }
 0x572   : > { %4350 = vmatmul.mubr.msk.f32.gmra.mrb[30].mxu0 %vm7003_vm1, %v7002_v25  ;;  %vm7033_vm1 = vmmov %vm6994_vm0 }
 0x5ad   : > { %v2924_v20 = vpop.trf.xlu0 }
 0x5ae   : > { %4317 = vmatprep.mubr.f32.mxu1 %v2924_v20  ;;  %4410 = vmatprep.mubr.f32.mxu0 %v2924_v20  ;;  %v7017_v20 = vld [vmem:[#allocation65_spill] sm:$0xff] }
 0x609   : > { %v4263_v39 = vpop.f32.mrb[0].mxu0 }
 0x60a   : > { %v2859_v52 = vsub.f32 %v7004_v12, %v4263_v39  ;;  %v2779_v44 = vpop.f32.mrb[1].mxu0 }
 0x60b   : > { %v2858_v46 = vsub.f32 %v7005_v36, %v2779_v44  ;;  %v7018_v36 = vld [vmem:[#allocation66_spill] sm:$0xff] }
 0x60c   : > { %v2876_v57 = vmul.f32 1.442695, %v2859_v52 }
 0x60d   : > { %v2874_v9 = vmul.f32 1.442695, %v2858_v46  ;;  %v4266_v61 = vpop.f32.mrb[2].mxu0 }
 0x60e   : > { %4653 = vpow2.f32 %v2876_v57  ;;  %v2861_v10 = vsub.f32 %v7006_v30, %v4266_v61  ;;  %v2789_v42 = vpop.f32.mrb[3].mxu0  ;;  %v7019_v61 = vld [vmem:[#allocation67_spill] sm:$0xff] }
 0x60f   : > { %4655 = vpow2.f32 %v2874_v9  ;;  %v2860_v58 = vsub.f32 %v7007_v37, %v2789_v42 }
 0x610   : > { %v2880_v7 = vmul.f32 1.442695, %v2861_v10 }
 0x611   : > { %v2878_v28 = vmul.f32 1.442695, %v2860_v58  ;;  %v4269_v55 = vpop.f32.mrb[4].mxu0 }
 0x612   : > { %4657 = vpow2.f32 %v2880_v7  ;;  %v2863_v38 = vsub.f32 %v7008_v40, %v4269_v55  ;;  %v2799_v62 = vpop.f32.mrb[5].mxu0 }
 0x613   : > { %4659 = vpow2.f32 %v2878_v28  ;;  %v2862_v3 = vsub.f32 %v7009_v22, %v2799_v62 }
 0x614   : > { %v2884_v23 = vmul.f32 1.442695, %v2863_v38 }
 0x615   : > { %v2882_v41 = vmul.f32 1.442695, %v2862_v3  ;;  %v4272_v29 = vpop.f32.mrb[6].mxu0 }
 0x616   : > { %4661 = vpow2.f32 %v2884_v23  ;;  %v2865_v34 = vsub.f32 %v7010_v43, %v4272_v29  ;;  %v2809_v53 = vpop.f32.mrb[7].mxu0  ;;  %v3192_v29 = vld [vmem:[%s6548_s13] sm:$0xf]  ;;  %v6420_v43 = vpop.trf.xlu0 }
 0x617   : > { %4663 = vpow2.f32 %v2882_v41  ;;  %v2864_v45 = vsub.f32 %v7011_v48, %v2809_v53  ;;  %v3860_v53 = vld [vmem:[%s7020_s27] ss:$0 sm:$0xff] }
 0x618   : > { %v6394_v4 = vpop.eup %4653  ;;  %v2888_v5 = vmul.f32 1.442695, %v2865_v34 }
 0x619   : > { %v6396_v17 = vpop.eup %4655  ;;  %v2886_v2 = vmul.f32 1.442695, %v2864_v45  ;;  %v4275_v51 = vpop.f32.mrb[8].mxu0 }
 0x61a   : > { %4665 = vpow2.f32 %v2888_v5  ;;  %v2867_v15 = vsub.f32 %v7012_v31, %v4275_v51  ;;  %v2819_v35 = vpop.f32.mrb[9].mxu0  ;;  %v4458_v33 = vpack.c.bf16 %v6394_v4, %v6396_v17 }
 0x61b   : > { %4667 = vpow2.f32 %v2886_v2  ;;  %v2866_v6 = vsub.f32 %v7013_v60, %v2819_v35 }
 0x61c   : > { %v6402_v47 = vpop.eup %4657  ;;  %v2892_v27 = vmul.f32 1.442695, %v2867_v15  ;;  %4459 = vmatprep.subr.bf16.mxu1 %v4458_v33 }
 0x61d   : > { %v6404_v18 = vpop.eup %4659  ;;  %v2890_v0 = vmul.f32 1.442695, %v2866_v6  ;;  %v4278_v16 = vpop.f32.mrb[10].mxu0  ;;  %4461 = vmatpush3.bf16.msra.mxu1 %v4458_v33 }
 0x61e   : > { %4669 = vpow2.f32 %v2892_v27  ;;  %v2869_v49 = vsub.f32 %v7014_v21, %v4278_v16  ;;  %v2829_v59 = vpop.f32.mrb[11].mxu0  ;;  %v4462_v13 = vpack.c.bf16 %v6402_v47, %v6404_v18 }
 0x61f   : > { %4671 = vpow2.f32 %v2890_v0  ;;  %v2868_v26 = vsub.f32 %v7015_v56, %v2829_v59 }
 0x620   : > { %v6410_v11 = vpop.eup %4661  ;;  %v2896_v32 = vmul.f32 1.442695, %v2869_v49  ;;  %4463 = vmatprep.subr.bf16.mxu1 %v4462_v13 }
 0x621   : > { %v4664_v14 = vpop.eup %4663  ;;  %v2894_v1 = vmul.f32 1.442695, %v2868_v26  ;;  %v4281_v19 = vpop.f32.mrb[12].mxu0  ;;  %4465 = vmatpush3.bf16.msra.mxu1 %v4462_v13 }
 0x622   : > { %4673 = vpow2.f32 %v2896_v32  ;;  %v2871_v63 = vsub.f32 %v7016_v24, %v4281_v19  ;;  %v2839_v54 = vpop.f32.mrb[13].mxu0  ;;  %v4466_v50 = vpack.c.bf16 %v6410_v11, %v4664_v14 }
 0x623   : > { %4675 = vpow2.f32 %v2894_v1  ;;  %v2870_v8 = vsub.f32 %v7017_v20, %v2839_v54  ;;  %v2907_v54 = vld [vmem:[#allocation5 + $0x8] sm:$0xff] }
 0x624   : > { %v4666_v25 = vpop.eup %4665  ;;  %v2900_v39 = vmul.f32 1.442695, %v2871_v63  ;;  %4467 = vmatprep.subr.bf16.mxu1 %v4466_v50 }
 0x625   : > { %v4668_v12 = vpop.eup %4667  ;;  %v2898_v52 = vmul.f32 1.442695, %v2870_v8  ;;  %v4284_v44 = vpop.f32.mrb[14].mxu0  ;;  %4469 = vmatpush3.bf16.msra.mxu1 %v4466_v50  ;;  %v2906_v50 = vld [vmem:[#allocation5] sm:$0xff] }
 0x626   : > { %4677 = vpow2.f32 %v2900_v39  ;;  %v2873_v46 = vsub.f32 %v7018_v36, %v4284_v44  ;;  %v2849_v57 = vpop.f32.mrb[15].mxu0  ;;  %v4470_v9 = vpack.c.bf16 %v4666_v25, %v4668_v12 }
 0x627   : > { %4679 = vpow2.f32 %v2898_v52  ;;  %v2872_v30 = vsub.f32 %v7019_v61, %v2849_v57 }
 0x628   : > { %v4670_v10 = vpop.eup %4669  ;;  %v2904_v42 = vmul.f32 1.442695, %v2873_v46  ;;  %4471 = vmatprep.subr.bf16.mxu1 %v4470_v9 }
 0x629   : > { %v4672_v37 = vpop.eup %4671  ;;  %v2902_v58 = vmul.f32 1.442695, %v2872_v30  ;;  %4473 = vmatpush3.bf16.msra.mxu1 %v4470_v9  ;;  %v4330_v34 = vpop.f32.mrb[16].mxu0 }
 0x62a   : > { %4681 = vpow2.f32 %v2904_v42  ;;  %v4474_v7 = vpack.c.bf16 %v4670_v10, %v4672_v37  ;;  %v3097_v48 = vpop.f32.mrb[17].mxu0  ;;  %v3103_v45 = vadd.f32 %v4330_v34, %v3860_v53 }
 0x62b   : > { %4683 = vpow2.f32 %v2902_v58 }
 0x62c   : > { %v4674_v28 = vpop.eup %4673  ;;  %4475 = vmatprep.subr.bf16.mxu1 %v4474_v7  ;;  %3177 = vst.msk [vmem:[%s4910_s26 + $0x8] sm:$0xff] %vm7021_vm15, %v3103_v45  ;;  %vm7035_vm15 = vmmov %vm6994_vm0 }
 0x62d   : > { %v4676_v55 = vpop.eup %4675  ;;  %4477 = vmatpush3.bf16.msra.mxu1 %v4474_v7  ;;  %v4333_v5 = vpop.f32.mrb[18].mxu0 }
 0x62e   : > { %v4478_v40 = vpack.c.bf16 %v4674_v28, %v4676_v55  ;;  %v3107_v2 = vpop.f32.mrb[19].mxu0 }
 0x62f   : > { %v3108_v51 = vadd.f32 %v3860_v53, %v3107_v2 }
 0x630   : > { %v4678_v38 = vpop.eup %4677  ;;  %4479 = vmatprep.subr.bf16.mxu1 %v4478_v40 }
 0x631   : > { %v4680_v62 = vpop.eup %4679  ;;  %4481 = vmatpush3.bf16.msra.mxu1 %v4478_v40  ;;  %3178 = vst.msk [vmem:[%s4910_s26 + $0x10] sm:$0xff] %vm7024_vm9, %v3108_v51  ;;  %v4336_v31 = vpop.f32.mrb[20].mxu0 }
 0x632   : > { %v4482_v22 = vpack.c.bf16 %v4678_v38, %v4680_v62  ;;  %v3123_v15 = vadd.f32 %v4336_v31, %v3860_v53  ;;  %v3117_v35 = vpop.f32.mrb[21].mxu0 }
 0x633   : > { %v3118_v33 = vadd.f32 %v3860_v53, %v3117_v35 }
 0x634   : > { %v4682_v3 = vpop.eup %4681  ;;  %4483 = vmatprep.subr.bf16.mxu1 %v4482_v22  ;;  %3181 = vst.msk [vmem:[%s4910_s26 + $0x28] sm:$0xff] %vm7025_vm7, %v3123_v15 }
 0x635   : > { %v4684_v23 = vpop.eup %4683  ;;  %4485 = vmatpush3.bf16.msra.mxu1 %v4482_v22  ;;  %3180 = vst.msk [vmem:[%s4910_s26 + $0x20] sm:$0xff] %vm7026_vm8, %v3118_v33  ;;  %v4339_v60 = vpop.f32.mrb[22].mxu0 }
 0x636   : > { %v4486_v41 = vpack.c.bf16 %v4682_v3, %v4684_v23  ;;  %v3133_v6 = vadd.f32 %v4339_v60, %v3860_v53 }
 0x638   : > { %4487 = vmatprep.subr.bf16.mxu1 %v4486_v41  ;;  %3183 = vst.msk [vmem:[%s4910_s26 + $0x38] sm:$0xff] %vm7027_vm13, %v3133_v6 }
 0x639   : > { %4489 = vmatpush3.bf16.msra.mxu1 %v4486_v41 }
 0x63a   : > { %4352 = vmatprep.subr.msk.mxu1 %vm3241_vm2, %v3192_v29 }
 0x63c   : > { %4318 = vmatmul.mubr.f32.vlgmr.msra.gmra.mrb[0].mxu1 %v6420_v43 }
 0x63d   : > { %4353 = vmatpush3.msk.msra.mxu1 %vm3241_vm2, %v3192_v29  ;;  %4354 = vmatprep.mubr.msk.f32.mxu1 %vm3017_vm4, %v6396_v17  ;;  %v3113_v17 = vadd.f32 %v4333_v5, %v3860_v53  ;;  %vm7034_vm2 = vmmov %vm6994_vm0 }
 0x63f   : > { %3179 = vst.msk [vmem:[%s4910_s26 + $0x18] sm:$0xff] %vm7023_vm5, %v3113_v17 }
 0x640   : > { %4355 = vmatmul.mubr.msk.f32.vlgmr.msra.gmra.mrb[2].mxu1 %vm3017_vm4, %v6394_v4  ;;  %v3098_v4 = vadd.f32 %v3860_v53, %v3097_v48 }
 0x641   : > { %4357 = vmatprep.mubr.msk.f32.mxu1 %vm3017_vm4, %v6404_v18 }
 0x642   : > { %3176 = vst.msk [vmem:[%s4910_s26] sm:$0xff] %vm7022_vm12, %v3098_v4  ;;  %vm7037_vm12 = vmmov %vm6994_vm0 }
 0x644   : > { %4358 = vmatmul.mubr.msk.f32.gmra.mrb[4].mxu1 %vm3017_vm4, %v6402_v47  ;;  %v3127_v47 = vpop.f32.mrb[23].mxu0 }
 0x645   : > { %4360 = vmatprep.mubr.msk.f32.mxu1 %vm3017_vm4, %v4664_v14  ;;  %v3128_v27 = vadd.f32 %v3860_v53, %v3127_v47  ;;  %v4342_v18 = vpop.f32.mrb[24].mxu0 }
 0x646   : > { %v3143_v0 = vadd.f32 %v4342_v18, %v3860_v53  ;;  %v3137_v16 = vpop.f32.mrb[25].mxu0  ;;  %v3406_v18 = vld [vmem:[#allocation6] sm:$0xff] }
 0x647   : > { %3182 = vst.msk [vmem:[%s4910_s26 + $0x30] sm:$0xff] %vm7028_vm14, %v3128_v27  ;;  %v3138_v21 = vadd.f32 %v3860_v53, %v3137_v16  ;;  %v4345_v49 = vpop.f32.mrb[26].mxu0 }
 0x648   : > { %4361 = vmatmul.mubr.msk.f32.gmra.mrb[6].mxu1 %vm3017_vm4, %v6410_v11  ;;  %3185 = vst.msk [vmem:[%s4910_s26 + $0x48] sm:$0xff] %vm7029_vm11, %v3143_v0  ;;  %v3153_v59 = vadd.f32 %v4345_v49, %v3860_v53  ;;  %v3147_v13 = vpop.f32.mrb[27].mxu0 }
 0x649   : > { %4363 = vmatprep.mubr.msk.f32.mxu1 %vm3017_vm4, %v4668_v12  ;;  %3184 = vst.msk [vmem:[%s4910_s26 + $0x40] sm:$0xff] %vm7030_vm3, %v3138_v21  ;;  %v3148_v56 = vadd.f32 %v3860_v53, %v3147_v13  ;;  %v4348_v26 = vpop.f32.mrb[28].mxu0 }
 0x64a   : > { %3187 = vst.msk [vmem:[%s4910_s26 + $0x58] sm:$0xff] %vm6994_vm0, %v3153_v59  ;;  %v3163_v11 = vadd.f32 %v4348_v26, %v3860_v53  ;;  %v3157_v32 = vpop.f32.mrb[29].mxu0 }
 0x64b   : > { %3186 = vst.msk [vmem:[%s4910_s26 + $0x50] sm:$0xff] %vm7031_vm6, %v3148_v56  ;;  %v3158_v14 = vadd.f32 %v3860_v53, %v3157_v32  ;;  %v4351_v1 = vpop.f32.mrb[30].mxu0 }
 0x64c   : > { %4364 = vmatmul.mubr.msk.f32.gmra.mrb[8].mxu1 %vm3017_vm4, %v4666_v25  ;;  %3189 = vst.msk [vmem:[%s4910_s26 + $0x68] sm:$0xff] %vm7032_vm10, %v3163_v11  ;;  %v3173_v19 = vadd.f32 %v4351_v1, %v3860_v53  ;;  %v3167_v24 = vpop.f32.mrb[31].mxu0 }
 0x64d   : > { %4366 = vmatprep.mubr.msk.f32.mxu1 %vm3017_vm4, %v4672_v37  ;;  %3188 = vst.msk [vmem:[%s4910_s26 + $0x60] sm:$0xff] %vm7033_vm1, %v3158_v14  ;;  %v3168_v63 = vadd.f32 %v3860_v53, %v3167_v24 }
 0x64e   : > { %3191 = vst.msk [vmem:[%s4910_s26 + $0x78] sm:$0xff] %vm7034_vm2, %v3173_v19 }
 0x64f   : > { %3190 = vst.msk [vmem:[%s4910_s26 + $0x70] sm:$0xff] %vm7035_vm15, %v3168_v63 }
 0x650   : > { %4367 = vmatmul.mubr.msk.f32.gmra.mrb[10].mxu1 %vm3017_vm4, %v4670_v10 }
 0x651   : > { %4369 = vmatprep.mubr.msk.f32.mxu1 %vm3017_vm4, %v4676_v55 }
 0x654   : > { %4370 = vmatmul.mubr.msk.f32.gmra.mrb[12].mxu1 %vm3017_vm4, %v4674_v28 }
 0x655   : > { %4372 = vmatprep.mubr.msk.f32.mxu1 %vm3017_vm4, %v4680_v62 }
 0x658   : > { %4373 = vmatmul.mubr.msk.f32.gmra.mrb[14].mxu1 %vm3017_vm4, %v4678_v38 }
 0x659   : > { %4375 = vmatprep.mubr.msk.f32.mxu1 %vm3017_vm4, %v4684_v23 }
 0x65c   : > { %4376 = vmatmul.mubr.msk.f32.gmra.mrb[16].mxu1 %vm3017_vm4, %v4682_v3 }
 0x70f   : > { %v4319_v20 = vpop.f32.mrb[0].mxu1 }
 0x710   : > { %v3016_v8 = vadd.f32 %v4319_v20, %v2907_v54  ;;  %v3006_v25 = vpop.f32.mrb[1].mxu1 }
 0x711   : > { %v3015_v39 = vadd.f32 %v3006_v25, %v2906_v50 }
 0x712   : > { %3019 = vst.msk [vmem:[#allocation5 + $0x8] sm:$0xff] %vm3017_vm4, %v3016_v8 }
 0x713   : > { %3018 = vst.msk [vmem:[#allocation5] sm:$0xff] %vm3017_vm4, %v3015_v39  ;;  %v4356_v12 = vpop.f32.mrb[2].mxu1  ;;  %vm7036_vm4 = vmmov %vm6994_vm0 }
 0x714   : > { %v3391_v52 = vmul.f32 %v4356_v12, %v3103_v45  ;;  %v3311_v44 = vpop.f32.mrb[3].mxu1 }
 0x715   : > { %v3390_v36 = vmul.f32 %v3311_v44, %v3098_v4 }
 0x717   : > { %v4498_v46 = vpack.c.bf16 %v3391_v52, %v3390_v36  ;;  %v4359_v57 = vpop.f32.mrb[4].mxu1 }
 0x718   : > { %v3393_v9 = vmul.f32 %v4359_v57, %v3113_v17  ;;  %v3321_v61 = vpop.f32.mrb[5].mxu1 }
 0x719   : > { %v3392_v30 = vmul.f32 %v3321_v61, %v3108_v51  ;;  %4499 = vmatprep.subr.bf16.mxu0 %v4498_v46 }
 0x71a   : > { %4501 = vmatpush3.bf16.msra.mxu0 %v4498_v46 }
 0x71b   : > { %v4502_v10 = vpack.c.bf16 %v3393_v9, %v3392_v30  ;;  %v4362_v42 = vpop.f32.mrb[6].mxu1 }
 0x71c   : > { %v3395_v37 = vmul.f32 %v4362_v42, %v3123_v15  ;;  %v3331_v58 = vpop.f32.mrb[7].mxu1 }
 0x71d   : > { %v3394_v7 = vmul.f32 %v3331_v58, %v3118_v33  ;;  %4503 = vmatprep.subr.bf16.mxu0 %v4502_v10 }
 0x71e   : > { %4505 = vmatpush3.bf16.msra.mxu0 %v4502_v10 }
 0x71f   : > { %v4506_v28 = vpack.c.bf16 %v3395_v37, %v3394_v7  ;;  %v4365_v55 = vpop.f32.mrb[8].mxu1 }
 0x720   : > { %v3397_v40 = vmul.f32 %v4365_v55, %v3133_v6  ;;  %v3341_v38 = vpop.f32.mrb[9].mxu1 }
 0x721   : > { %v3396_v62 = vmul.f32 %v3341_v38, %v3128_v27  ;;  %4507 = vmatprep.subr.bf16.mxu0 %v4506_v28  ;;  %v3407_v27 = vld [vmem:[#allocation6 + $0x8] sm:$0xff] }
 0x722   : > { %4509 = vmatpush3.bf16.msra.mxu0 %v4506_v28 }
 0x723   : > { %v4510_v22 = vpack.c.bf16 %v3397_v40, %v3396_v62  ;;  %v4368_v3 = vpop.f32.mrb[10].mxu1 }
 0x724   : > { %v3399_v23 = vmul.f32 %v4368_v3, %v3143_v0  ;;  %v3351_v41 = vpop.f32.mrb[11].mxu1 }
 0x725   : > { %v3398_v29 = vmul.f32 %v3351_v41, %v3138_v21  ;;  %4511 = vmatprep.subr.bf16.mxu0 %v4510_v22 }
 0x726   : > { %4513 = vmatpush3.bf16.msra.mxu0 %v4510_v22 }
 0x727   : > { %v4514_v34 = vpack.c.bf16 %v3399_v23, %v3398_v29  ;;  %v4371_v53 = vpop.f32.mrb[12].mxu1 }
 0x728   : > { %v3401_v48 = vmul.f32 %v4371_v53, %v3153_v59  ;;  %v3361_v45 = vpop.f32.mrb[13].mxu1 }
 0x729   : > { %v3400_v4 = vmul.f32 %v3361_v45, %v3148_v56  ;;  %4515 = vmatprep.subr.bf16.mxu0 %v4514_v34 }
 0x72a   : > { %4517 = vmatpush3.bf16.msra.mxu0 %v4514_v34 }
 0x72b   : > { %v4518_v5 = vpack.c.bf16 %v3401_v48, %v3400_v4  ;;  %v4374_v17 = vpop.f32.mrb[14].mxu1 }
 0x72c   : > { %v3403_v2 = vmul.f32 %v4374_v17, %v3163_v11  ;;  %v3371_v51 = vpop.f32.mrb[15].mxu1 }
 0x72d   : > { %v3402_v31 = vmul.f32 %v3371_v51, %v3158_v14  ;;  %4519 = vmatprep.subr.bf16.mxu0 %v4518_v5 }
 0x72e   : > { %4521 = vmatpush3.bf16.msra.mxu0 %v4518_v5 }
 0x72f   : > { %v4522_v15 = vpack.c.bf16 %v3403_v2, %v3402_v31  ;;  %v4377_v35 = vpop.f32.mrb[16].mxu1 }
 0x730   : > { %v3405_v33 = vmul.f32 %v4377_v35, %v3173_v19  ;;  %v3381_v60 = vpop.f32.mrb[17].mxu1 }
 0x731   : > { %v3404_v6 = vmul.f32 %v3381_v60, %v3168_v63  ;;  %4523 = vmatprep.subr.bf16.mxu0 %v4522_v15 }
 0x732   : > { %4525 = vmatpush3.bf16.msra.mxu0 %v4522_v15 }
 0x733   : > { %v4526_v47 = vpack.c.bf16 %v3405_v33, %v3404_v6 }
 0x735   : > { %4527 = vmatprep.subr.bf16.mxu0 %v4526_v47 }
 0x736   : > { %4529 = vmatpush3.bf16.msra.mxu0 %v4526_v47 }
 0x739   : > { %4411 = vmatmul.mubr.f32.vlgmr.msra.gmra.mrb[32].mxu0 %v6420_v43 }
 0x80c   : > { %v4412_v0 = vpop.f32.mrb[32].mxu0 }
 0x80d   : > { %v3484_v16 = vadd.f32 %v4412_v0, %v3407_v27  ;;  %v3474_v21 = vpop.f32.mrb[33].mxu0 }
 0x80e   : > { %v3483_v49 = vadd.f32 %v3474_v21, %v3406_v18 }
 0x80f   : > { %3486 = vst.msk [vmem:[#allocation6 + $0x8] sm:$0xff] %vm7036_vm4, %v3484_v16 }
 0x810   : > { %3485 = vst.msk [vmem:[#allocation6] sm:$0xff] %vm7037_vm12, %v3483_v49 }
 0x811 PF: > { %p3487_p13 = scmp.eq.s32.totalorder %s4741_s18, 1 }
 0x813   : > { %p3488_p0 = pnand %p3487_p13, %p2705_p11 }
 0x814   : > { %v3494_v43 = vld [vmem:[%s6548_s13] sm:$0xf] (!%p3488_p0)  ;;  %vm3504_vm5 = vcmask (!%p3488_p0), 1043456   ;;  %v3492_v59 = vld [vmem:[#allocation5] sm:$0xff] (!%p3488_p0)  ;;  %vm3497_vm9 = vcmask (!%p3488_p0), 31744   ;;  %v3493_v13 = vld [vmem:[#allocation5 + $0x8] sm:$0xff] (!%p3488_p0) }
 0x815   : > { %3491 = sbr.rel (%p3488_p0) target bundleno = 2300 (0x8fc), region = 92  ;;  %4413 = vmatprep.subr.msk.mxu0 (!%p3488_p0), %vm3504_vm5, %v3494_v43  ;;  %4415 = vmatprep.mubr.msk.f32.mxu0 (!%p3488_p0), %vm3497_vm9, %v3492_v59  ;;  %vm7038_vm7 = vcmask (!%p3488_p0), 261120  }
 0x816   : > { %4414 = vmatpush3.msk.msra.mxu0 (!%p3488_p0), %vm3504_vm5, %v3494_v43  ;;  %v3496_v14 = vld [vmem:[#allocation6 + $0x8] sm:$0xff] (!%p3488_p0)  ;;  %vm7039_vm8 = vmmov (!%p3488_p0), %vm7038_vm7 }
 0x817   : > { %4416 = vmatmul.mubr.msk.f32.vlgmr.msra.gmra.mrb[0].mxu0 (!%p3488_p0), %vm3497_vm9, %v3493_v13  ;;  %v3495_v1 = vld [vmem:[#allocation6] sm:$0xff] (!%p3488_p0) }
 0x8ea   : > { %v4417_v56 = vpop.f32.mrb[0].mxu0 }
 0x8eb   : > { %v3580_v26 = vadd.f32 1e-16, %v4417_v56  ;;  %v3574_v11 = vpop.f32.mrb[1].mxu0 }
 0x8ec   : > { %v3575_v32 = vadd.f32 1e-16, %v3574_v11 }
 0x8ed   : > { %4685 = vrcp.f32 %v3580_v26 }
 0x8ee   : > { %4687 = vrcp.f32 %v3575_v32 }
 0x8f7   : > { %v4686_v19 = vpop.eup %4685 }
 0x8f8   : > { %v4688_v24 = vpop.eup %4687  ;;  %v3586_v63 = vmul.f32 %v4686_v19, %v3496_v14 }
 0x8f9   : > { %v3585_v54 = vmul.f32 %v4688_v24, %v3495_v1 }
 0x8fa   : > { %3588 = vst.msk [vmem:[#allocation6 + $0x8] sm:$0xff] %vm7038_vm7, %v3586_v63 }
 0x8fb   : > { %3587 = vst.msk [vmem:[#allocation6] sm:$0xff] %vm7039_vm8, %v3585_v54 }
 0x8fc PF: > { %s7040_s18 = sld [smem:[#allocation11_spill]]  ;;  %s4769_s23 = smov [#allocation6]  }
 0x8fd   : > { %s3601_s25 = sshll.u32 %s4769_s23, 4  ;;  %s3602_s25 = int_to_ptr.vmem [resolvable:$true] %s3601_s25 }
 0x8fe   : > { %s4689_s20 = scalar_lea.vmem %s3602_s25, 256  ;;  %p4696_p5 = scmp.lt.s32.totalorder %s3602_s25, %s3602_s25 }
 0x8ff   : > { %p4690_p2 = scmp.ne.s32.totalorder %s3602_s25, %s4689_s20  ;;  %p4697_p6 = scmp.lt.s32.totalorder %s4689_s20, %s4689_s20 }
 0x901   : > { %p4698_p7 = por %p4697_p6, %p4696_p5 }
 0x902   : > { %s7041_s19 = sadd.s32 4294967295, %s7040_s18  }
 0x903   : > { %p6494_p1 = scmp.eq.s32.totalorder %s7041_s19, 3 }
 0x905   : > { %p4691_p3 = pnand %p4690_p2, %p6494_p1 }
 0x907   : > { %p4692_p4 = pneg %p4691_p3 }
 0x909   : > { %p4699_p8 = pnand %p4698_p7, %p4692_p4 }
 0x90b   : > { %4702 = shalt.err (!%p4699_p8)
}
 0x90c   : > { %s7043_s11 = sld [smem:[#allocation70_spill]] }
 0x912   : > { %s4703_s22 = scalar_lea.hbm %s7043_s11, 256 }
 0x913   : > { %p4704_p9 = scmp.ne.s32.totalorder %s7043_s11, %s4703_s22  ;;  %p4709_p12 = scmp.lt.u32.totalorder %s4703_s22, %s7043_s11 }
 0x915   : > { %p4705_p10 = pnand %p4704_p9, %p6494_p1 }
 0x917   : > { %p4706_p11 = pneg %p4705_p10 }
 0x919   : > { %p4711_p13 = pnand %p4709_p12, %p4706_p11 }
 0x91b   : > { %4714 = shalt.err (!%p4711_p13)
}
 0x91c   : > { %s4770_s29 = smov 128   ;;  %s4771_s27 = smov 8  }
 0x91d   : > { %4549 = dma.vmem_to_hbm [thread:$0]  (%p6494_p1), %s3602_s25, 256, %s7043_s11, [#allocation7], %s4770_s29, %s4770_s29, %s4771_s27  }
 0x91e   : > { %4736 = dma.done.wait (%p6494_p1), [#allocation7], 256  }
 0x91f   : > { %4738 = vsyncadd (%p6494_p1), [#allocation7], 4294967040 }
 0x920 PF: > { %s7044_s18 = sld [smem:[#allocation11_spill]]  ;;  %s7046_s19 = sld [smem:[#allocation10_spill]] }
 0x921   : > { %s7047_s20 = sld [smem:[#allocation12_spill]]  ;;  %s7048_s21 = sld [smem:[#allocation13_spill]] }
 0x926   : > { %s27_s22 = sadd.s32 1, %s7044_s18   ;;  %s7045_s18 = sld [smem:[#allocation9_spill]] }
 0x927   : > { %p24_p0 = scmp.ge.s32.totalorder %s27_s22, 6  }
 0x929   :  { %26 = sbr.rel (!%p24_p0) target bundleno = 7 (0x7), region = 137 }
 0x930   :  { %3631 = vsyncpa [#allocation7], 1 }
 0x931   :  { %3633 = vsyncpa [#allocation7 + $0x1], 1 }

</bundles_post_ra>
